<compile_context>
chip_gen: v6e
topology: v6e:2x2x1
jax: 0.10.0
libtpu: 0.0.40
codegen_flags: <defaults>
</compile_context>

<pallas_src>
import functools

import jax
import jax.numpy as jnp
from jax.experimental import pallas as pl
from jax.experimental.pallas import tpu as pltpu

LANE = 128
VMEM_LIMIT = 32 * 1024 * 1024  # safe on v5e/v6e (128 MiB phys) and v7x (64 MiB phys)


def _round_up(x, m):
    return (x + m - 1) // m * m


def _padded_n(n):
    # pad N so the fast 256/512 tiles always divide the grid (no full-extent fallback,
    # no silently dropped remainder rows)
    return _round_up(n, 256) if n <= 256 else _round_up(n, 512)


def _pick_tiles(n_pad):
    # tm (row tile): cap at 512 and keep >= 2 row tiles when possible so the
    # "parallel" grid axis can shard rows across v7x's two TensorCores.
    tm = 512 if n_pad >= 1024 else min(256, n_pad)
    # tk (reduction tile): single K step when the whole extent fits comfortably in
    # VMEM (int8 A tile <= 1 MiB double-buffered), else 1024/512 (mem-bound sweet spot).
    if n_pad <= 2048:
        tk = n_pad
    elif n_pad % 1024 == 0:
        tk = 1024
    else:
        tk = 512
    return tm, tk


def _to_bf16(a_i8):
    # int8 {0,1} -> bf16 via f32 (two well-supported converts; values stay exact)
    return a_i8.astype(jnp.float32).astype(jnp.bfloat16)


# ----------------------------- Pallas kernels -----------------------------

def _sage_conv1_kernel(a_ref, xk_ref, xi_ref, invd_ref, ws_t_ref, wn_t_ref, b_ref,
                       wp_t_ref, h1_ref, p_ref, acc_ref):
    """Fused SageConv #1: accumulate A_bin @ X over K tiles; at K==last apply the
    1/deg row scale, project + bias + ReLU into one lane-dense 128-wide slab, and
    emit P = H1 @ Wn2^T for conv2's neighbor path."""
    k = pl.program_id(1)

    @pl.when(k == 0)
    def _init():
        acc_ref[...] = jnp.zeros_like(acc_ref)

    acc_ref[...] += jnp.dot(_to_bf16(a_ref[...]), xk_ref[...],
                            preferred_element_type=jnp.float32)

    @pl.when(k == pl.num_programs(1) - 1)
    def _finalize():
        agg = (acc_ref[...] * invd_ref[...]).astype(jnp.bfloat16)  # f32 1/deg row scale
        # ws_t / wn_t / b are pre-padded to the full 128-lane output slab
        # ([hs | hn | 0]), so this is a single unmasked 128-wide store.
        h1 = jnp.maximum(
            jnp.dot(xi_ref[...], ws_t_ref[...], preferred_element_type=jnp.float32)
            + jnp.dot(agg, wn_t_ref[...], preferred_element_type=jnp.float32)
            + b_ref[...], 0.0)
        h1_16 = h1.astype(jnp.bfloat16)
        h1_ref[...] = h1_16
        # P = H1 @ Wn2^T (rows 2h: of wp_t are zero) -> conv2 streams 32-wide P
        p_ref[...] = jnp.dot(h1_16, wp_t_ref[...],
                             preferred_element_type=jnp.float32).astype(jnp.bfloat16)
        # TODO(synk): dropout(p=0.1) only applies in training mode; this is eval-mode.


def _sage_conv2_head_kernel(a_ref, pk_ref, h1i_ref, invd_ref, ws_t_ref, bs_ref,
                            bn_ref, wcs_t_ref, wcn_t_ref, bc_ref, out_ref, acc_ref):
    """Fused SageConv #2 + F.normalize + classifier.

    Neighbor path uses the precomputed P = H1 @ Wn2^T, so the accumulated (and
    streamed) aggregation width is h (32), not 128, and the projection is never
    recomputed per row tile.
    """
    k = pl.program_id(1)

    @pl.when(k == 0)
    def _init():
        acc_ref[...] = jnp.zeros_like(acc_ref)

    acc_ref[...] += jnp.dot(_to_bf16(a_ref[...]), pk_ref[...],
                            preferred_element_type=jnp.float32)

    @pl.when(k == pl.num_programs(1) - 1)
    def _finalize():
        hs = jnp.maximum(
            jnp.dot(h1i_ref[...], ws_t_ref[...],
                    preferred_element_type=jnp.float32) + bs_ref[...], 0.0)
        hn = jnp.maximum(acc_ref[...] * invd_ref[...] + bn_ref[...], 0.0)
        # F.normalize(p=2, dim=1) over concat([hs, hn]) without materializing the concat
        sq = (jnp.sum(hs * hs, axis=1, keepdims=True)
              + jnp.sum(hn * hn, axis=1, keepdims=True))
        inv = jax.lax.rsqrt(jnp.maximum(sq, 1e-24))  # == 1 / max(||x||_2, 1e-12)
        hs_n = (hs * inv).astype(jnp.bfloat16)
        hn_n = (hn * inv).astype(jnp.bfloat16)
        logits = (jnp.dot(hs_n, wcs_t_ref[...], preferred_element_type=jnp.float32)
                  + jnp.dot(hn_n, wcn_t_ref[...], preferred_element_type=jnp.float32)
                  + bc_ref[...])
        out_ref[...] = logits  # single lane-dense 128-wide store (padded logits)


# ----------------------------- pallas_call wrappers -----------------------------

def _full(shape):
    return pl.BlockSpec(shape, lambda i, k: (0, 0))


def sage_conv1(a_bin, x, inv_deg, ws_t, wn_t, b, wp_t, *, tm, tk):
    n, d_in = x.shape
    p1 = ws_t.shape[1]     # padded H1 width (128)
    h = wp_t.shape[1]      # hidden (32) — width of P
    grid = (n // tm, n // tk)
    return pl.pallas_call(
        _sage_conv1_kernel,
        out_shape=(jax.ShapeDtypeStruct((n, p1), jnp.bfloat16),   # H1 (lane-padded)
                   jax.ShapeDtypeStruct((n, h), jnp.bfloat16)),   # P = H1 @ Wn2^T
        grid_spec=pltpu.PrefetchScalarGridSpec(
            num_scalar_prefetch=0,
            grid=grid,
            in_specs=[
                pl.BlockSpec((tm, tk), lambda i, k: (i, k)),      # A_bin tile (int8)
                pl.BlockSpec((tk, d_in), lambda i, k: (k, 0)),    # X rows (aggregation)
                pl.BlockSpec((tm, d_in), lambda i, k: (i, 0)),    # X rows (self path)
                pl.BlockSpec((tm, 1), lambda i, k: (i, 0)),       # 1/deg per row (f32)
                _full((d_in, p1)), _full((d_in, p1)),             # lane-padded Ws1^T, Wn1^T
                _full((1, p1)),                                   # fused padded bias
                _full((p1, h)),                                   # row-padded Wn2^T (for P)
            ],
            out_specs=(pl.BlockSpec((tm, p1), lambda i, k: (i, 0)),
                       pl.BlockSpec((tm, h), lambda i, k: (i, 0))),
            scratch_shapes=[pltpu.VMEM((tm, d_in), jnp.float32)],
        ),
        compiler_params=pltpu.CompilerParams(
            dimension_semantics=("parallel", "arbitrary"),
            vmem_limit_bytes=VMEM_LIMIT),
    )(a_bin, x, x, inv_deg, ws_t, wn_t, b, wp_t)


def sage_conv2_head(a_bin, p, h1, inv_deg, ws_t, bs, bn, wcs_t, wcn_t, bc, *, tm, tk):
    n, d1 = h1.shape
    h = ws_t.shape[1]
    pc = wcs_t.shape[1]
    grid = (n // tm, n // tk)
    return pl.pallas_call(
        _sage_conv2_head_kernel,
        out_shape=jax.ShapeDtypeStruct((n, pc), jnp.float32),
        grid_spec=pltpu.PrefetchScalarGridSpec(
            num_scalar_prefetch=0,
            grid=grid,
            in_specs=[
                pl.BlockSpec((tm, tk), lambda i, k: (i, k)),   # A_bin tile (int8)
                pl.BlockSpec((tk, h), lambda i, k: (k, 0)),    # P rows (32-wide aggregation operand)
                pl.BlockSpec((tm, d1), lambda i, k: (i, 0)),   # H1 rows (self path)
                pl.BlockSpec((tm, 1), lambda i, k: (i, 0)),    # 1/deg per row (f32)
                _full((d1, h)),                                # row-padded Ws2^T
                _full((1, h)), _full((1, h)),                  # bs2, bn2
                _full((h, pc)), _full((h, pc)),                # classifier weight halves
                _full((1, pc)),                                # classifier bias (padded)
            ],
            out_specs=pl.BlockSpec((tm, pc), lambda i, k: (i, 0)),
            scratch_shapes=[pltpu.VMEM((tm, h), jnp.float32)],
        ),
        compiler_params=pltpu.CompilerParams(
            dimension_semantics=("parallel", "arbitrary"),
            vmem_limit_bytes=VMEM_LIMIT),
    )(a_bin, p, h1, inv_deg, ws_t, bs, bn, wcs_t, wcn_t, bc)


# ----------------------------- one-time prep (hoisted) -----------------------------

def prepare_params(params, *, lane=LANE):
    """Pre-transpose / pre-pad weights once (hoisted out of the forward pass)."""
    c1, c2, cl = params["conv1"], params["conv2"], params["classifier"]
    h, d_in = c1["w_self"].shape
    p1 = _round_up(2 * h, lane)               # padded H1 width
    pc = _round_up(cl["w"].shape[0], lane)    # padded classifier output width

    # conv1: fold self/neighbor projections + biases into the full 128-lane output
    # slab [hs | hn | 0] -> epilogue is two matmuls + one unmasked 128-wide store.
    ws1 = jnp.zeros((d_in, p1), jnp.float32).at[:, :h].set(c1["w_self"].T)
    wn1 = jnp.zeros((d_in, p1), jnp.float32).at[:, h:2 * h].set(c1["w_neigh"].T)
    b1 = (jnp.zeros((1, p1), jnp.float32)
          .at[0, :h].set(c1["b_self"]).at[0, h:2 * h].set(c1["b_neigh"]))

    def pad_rows_t(w, rows):                  # torch [out, in] -> [in, out], zero-pad rows
        wt = jnp.asarray(w.T, jnp.float32)
        return jnp.pad(wt, ((0, rows - wt.shape[0]), (0, 0)))

    ws2_t = pad_rows_t(c2["w_self"], p1)      # [p1, h]
    wn2_t = pad_rows_t(c2["w_neigh"], p1)     # [p1, h] — consumed in conv1 (P precompute)

    wc_t = jnp.pad(jnp.asarray(cl["w"].T, jnp.float32),
                   ((0, 0), (0, pc - cl["w"].shape[0])))       # [2h, pc]
    bc = jnp.pad(cl["b"].astype(jnp.float32), (0, pc - cl["b"].shape[0]))

    return {
        "conv1": {"ws_t": ws1.astype(jnp.bfloat16), "wn_t": wn1.astype(jnp.bfloat16),
                  "b": b1, "wp_t": wn2_t.astype(jnp.bfloat16)},
        "conv2": {"ws_t": ws2_t.astype(jnp.bfloat16),
                  "bs": c2["b_self"].astype(jnp.float32)[None, :],
                  "bn": c2["b_neigh"].astype(jnp.float32)[None, :]},
        "classifier": {"wcs_t": wc_t[:h].astype(jnp.bfloat16),
                       "wcn_t": wc_t[h:2 * h].astype(jnp.bfloat16),
                       "bc": bc[None, :]},
    }


def prepare_graph_and_features(edge_norm, x):
    """One-time prep: factor A_norm = diag(1/deg) @ A_bin (int8 adjacency halves the
    dominant HBM stream and 0/1 + f32 row scale is exact), cast features to bf16,
    and zero-pad rows/cols so the fast tiles always divide the grid."""
    n = x.shape[0]
    n_pad = _padded_n(n)
    pad = n_pad - n
    a_bin = (edge_norm > 0).astype(jnp.int8)
    deg = jnp.sum(a_bin.astype(jnp.float32), axis=1, keepdims=True)
    inv_deg = jnp.where(deg > 0, 1.0 / jnp.maximum(deg, 1.0), 0.0)  # zero-deg guard
    a_bin = jnp.pad(a_bin, ((0, pad), (0, pad)))
    inv_deg = jnp.pad(inv_deg, ((0, pad), (0, 0)))
    x16 = jnp.pad(x.astype(jnp.bfloat16), ((0, pad), (0, 0)))
    return a_bin, inv_deg, x16


# ----------------------------- forward -----------------------------

def net_forward(prepped, x16, a_bin, inv_deg, *, n, dim_out):
    n_pad = x16.shape[0]
    tm, tk = _pick_tiles(n_pad)
    c1, c2, cl = prepped["conv1"], prepped["conv2"], prepped["classifier"]
    h1, p = sage_conv1(a_bin, x16, inv_deg,
                       c1["ws_t"], c1["wn_t"], c1["b"], c1["wp_t"], tm=tm, tk=tk)
    logits_pad = sage_conv2_head(a_bin, p, h1, inv_deg,
                                 c2["ws_t"], c2["bs"], c2["bn"],
                                 cl["wcs_t"], cl["wcn_t"], cl["bc"], tm=tm, tk=tk)
    return logits_pad[:n, :dim_out]


# ----------------------------- reference / setup -----------------------------

def reference_forward(params, x, edge_norm):
    c1, c2, cl = params["conv1"], params["conv2"], params["classifier"]

    def sage(p, feats):
        hs = feats @ p["w_self"].T + p["b_self"]
        hn = (edge_norm @ feats) @ p["w_neigh"].T + p["b_neigh"]
        return jnp.maximum(jnp.concatenate([hs, hn], axis=1), 0.0)

    h1 = sage(c1, x)
    h2 = sage(c2, h1)
    h2 = h2 / jnp.maximum(jnp.linalg.norm(h2, axis=1, keepdims=True), 1e-12)
    return h2 @ cl["w"].T + cl["b"]


def _linear_init(key, d_out, d_in, xavier=False):
    kw, kb = jax.random.split(key)
    bound = (6.0 / (d_in + d_out)) ** 0.5 if xavier else (1.0 / d_in) ** 0.5
    w = jax.random.uniform(kw, (d_out, d_in), jnp.float32, -bound, bound)
    b = jax.random.uniform(kb, (d_out,), jnp.float32, -bound, bound)
    return w, b


def init_params(key, dim_in, dim_out, hidden):
    keys = jax.random.split(key, 5)
    w1s, b1s = _linear_init(keys[0], hidden, dim_in)
    w1n, b1n = _linear_init(keys[1], hidden, dim_in)
    w2s, b2s = _linear_init(keys[2], hidden, 2 * hidden)
    w2n, b2n = _linear_init(keys[3], hidden, 2 * hidden)
    wc, bc = _linear_init(keys[4], dim_out, 2 * hidden, xavier=True)
    return {
        "conv1": {"w_self": w1s, "b_self": b1s, "w_neigh": w1n, "b_neigh": b1n},
        "conv2": {"w_self": w2s, "b_self": b2s, "w_neigh": w2n, "b_neigh": b2n},
        "classifier": {"w": wc, "b": bc},
    }


def mp_matrix(key, n):
    # synthetic graph: random adjacency + self loops, row-normalized (D^-1 A)
    a = (jax.random.uniform(key, (n, n)) < 0.25).astype(jnp.float32)
    a = jnp.minimum(a + jnp.eye(n, dtype=jnp.float32), 1.0)
    deg = jnp.sum(a, axis=1, keepdims=True)
    return a / deg


if __name__ == "__main__":
    N, DIM_IN, HIDDEN, DIM_OUT = 512, 16, 32, 4

    root = jax.random.PRNGKey(0)
    k_x, k_g, k_p = jax.random.split(root, 3)

    x = jax.random.normal(k_x, (N, DIM_IN), jnp.float32)
    edge_norm = mp_matrix(k_g, N)
    params = init_params(k_p, DIM_IN, DIM_OUT, HIDDEN)

    # one-time prep (hoisted out of the per-forward path)
    prepped = prepare_params(params)
    a_bin, inv_deg, x16 = prepare_graph_and_features(edge_norm, x)

    fwd = jax.jit(functools.partial(net_forward, n=N, dim_out=DIM_OUT))
    out = jax.block_until_ready(fwd(prepped, x16, a_bin, inv_deg))
    assert out.shape == (N, DIM_OUT) and out.dtype == jnp.float32
    assert bool(jnp.all(jnp.isfinite(out)))

    # sanity check vs. pure-JAX f32 reference (bf16 streams -> loose tolerance)
    ref = reference_forward(params, x, edge_norm)
    assert float(jnp.max(jnp.abs(out - ref))) < 0.1
    print("KERNEL_OK")
</pallas_src>

<mosaic_0001>
module attributes {stable_mosaic.version = 11 : i64} {
  func.func @_sage_conv1_kernel(%arg0: i32, %arg1: i32, %arg2: memref<256x512xi8, #tpu.memory_space<vmem>>, %arg3: memref<512x16xbf16, #tpu.memory_space<vmem>>, %arg4: memref<256x16xbf16, #tpu.memory_space<vmem>>, %arg5: memref<256x1xf32, #tpu.memory_space<vmem>>, %arg6: memref<16x128xbf16, #tpu.memory_space<vmem>>, %arg7: memref<16x128xbf16, #tpu.memory_space<vmem>>, %arg8: memref<1x128xf32, #tpu.memory_space<vmem>>, %arg9: memref<128x32xbf16, #tpu.memory_space<vmem>>, %arg10: memref<256x128xbf16, #tpu.memory_space<vmem>>, %arg11: memref<256x32xbf16, #tpu.memory_space<vmem>>, %arg12: memref<256x16xf32, #tpu.memory_space<vmem>>) attributes {dimension_semantics = [#tpu.dimension_semantics<parallel>, #tpu.dimension_semantics<arbitrary>], iteration_bounds = array<i64: 2, 1>, scalar_prefetch = 0 : i64, scratch_operands = 1 : i64, tpu.core_type = #tpu.core_type<tc>, window_params = [{transform_indices = @transform_0, window_bounds = array<i64: 256, 512>}, {transform_indices = @transform_1, window_bounds = array<i64: 512, 16>}, {transform_indices = @transform_2, window_bounds = array<i64: 256, 16>}, {transform_indices = @transform_3, window_bounds = array<i64: 256, 1>}, {pipeline_mode = #tpu.pipeline_mode<synchronous>, transform_indices = @transform_4, window_bounds = array<i64: 16, 128>}, {pipeline_mode = #tpu.pipeline_mode<synchronous>, transform_indices = @transform_5, window_bounds = array<i64: 16, 128>}, {pipeline_mode = #tpu.pipeline_mode<synchronous>, transform_indices = @transform_6, window_bounds = array<i64: 1, 128>}, {pipeline_mode = #tpu.pipeline_mode<synchronous>, transform_indices = @transform_7, window_bounds = array<i64: 128, 32>}, {transform_indices = @transform_8, window_bounds = array<i64: 256, 128>}, {transform_indices = @transform_9, window_bounds = array<i64: 256, 32>}]} {
    %c0_i32 = arith.constant 0 : i32
    %0 = arith.cmpi eq, %arg1, %c0_i32 : i32
    %1 = arith.extui %0 : i1 to i32
    %c0_i32_0 = arith.constant 0 : i32
    %2 = arith.cmpi ne, %1, %c0_i32_0 : i32
    scf.if %2 {
      %cst_10 = arith.constant 0.000000e+00 : f32
      %14 = vector.broadcast %cst_10 : f32 to vector<256x16xf32>
      %c0_11 = arith.constant 0 : index
      %c0_12 = arith.constant 0 : index
      %15 = vector.load %arg12[%c0_11, %c0_12] : memref<256x16xf32, #tpu.memory_space<vmem>>, vector<256x16xf32>
      tpu.vector_store %arg12[%c0_11, %c0_12], %14 {strides = array<i32>} : memref<256x16xf32, #tpu.memory_space<vmem>>, vector<256x16xf32>,
    } else {
    }
    %c0 = arith.constant 0 : index
    %c0_1 = arith.constant 0 : index
    %3 = vector.load %arg12[%c0, %c0_1] : memref<256x16xf32, #tpu.memory_space<vmem>>, vector<256x16xf32>
    %c0_2 = arith.constant 0 : index
    %c0_3 = arith.constant 0 : index
    %4 = vector.load %arg2[%c0_2, %c0_3] : memref<256x512xi8, #tpu.memory_space<vmem>>, vector<256x512xi8>
    %5 = arith.sitofp %4 : vector<256x512xi8> to vector<256x512xf32>
    %6 = arith.truncf %5 : vector<256x512xf32> to vector<256x512xbf16>
    %c0_4 = arith.constant 0 : index
    %c0_5 = arith.constant 0 : index
    %7 = vector.load %arg3[%c0_4, %c0_5] : memref<512x16xbf16, #tpu.memory_space<vmem>>, vector<512x16xbf16>
    %cst = arith.constant dense<0.000000e+00> : vector<256x16xf32>
    %8 = tpu.matmul %6, %7, %cst {dimension_numbers = #tpu.dot_dimension_numbers<[1], [0], [0], [1], [0, 0, 1, 1], [], []>} : vector<256x512xbf16>, vector<512x16xbf16>, vector<256x16xf32> -> vector<256x16xf32>
    %9 = arith.addf %3, %8 : vector<256x16xf32>
    %c0_6 = arith.constant 0 : index
    %c0_7 = arith.constant 0 : index
    %10 = vector.load %arg12[%c0_6, %c0_7] : memref<256x16xf32, #tpu.memory_space<vmem>>, vector<256x16xf32>
    tpu.vector_store %arg12[%c0_6, %c0_7], %9 {strides = array<i32>} : memref<256x16xf32, #tpu.memory_space<vmem>>, vector<256x16xf32>,
    %c0_i32_8 = arith.constant 0 : i32
    %11 = arith.cmpi eq, %arg1, %c0_i32_8 : i32
    %12 = arith.extui %11 : i1 to i32
    %c0_i32_9 = arith.constant 0 : i32
    %13 = arith.cmpi ne, %12, %c0_i32_9 : i32
    scf.if %13 {
      %c0_10 = arith.constant 0 : index
      %c0_11 = arith.constant 0 : index
      %14 = vector.load %arg12[%c0_10, %c0_11] : memref<256x16xf32, #tpu.memory_space<vmem>>, vector<256x16xf32>
      %c0_12 = arith.constant 0 : index
      %c0_13 = arith.constant 0 : index
      %15 = vector.load %arg5[%c0_12, %c0_13] : memref<256x1xf32, #tpu.memory_space<vmem>>, vector<256x1xf32>
      %16 = vector.broadcast %15 : vector<256x1xf32> to vector<256x16xf32>
      %17 = arith.mulf %14, %16 : vector<256x16xf32>
      %18 = arith.truncf %17 : vector<256x16xf32> to vector<256x16xbf16>
      %c0_14 = arith.constant 0 : index
      %c0_15 = arith.constant 0 : index
      %19 = vector.load %arg4[%c0_14, %c0_15] : memref<256x16xbf16, #tpu.memory_space<vmem>>, vector<256x16xbf16>
      %c0_16 = arith.constant 0 : index
      %c0_17 = arith.constant 0 : index
      %20 = vector.load %arg6[%c0_16, %c0_17] : memref<16x128xbf16, #tpu.memory_space<vmem>>, vector<16x128xbf16>
      %cst_18 = arith.constant dense<0.000000e+00> : vector<256x128xf32>
      %21 = tpu.matmul %19, %20, %cst_18 {dimension_numbers = #tpu.dot_dimension_numbers<[1], [0], [0], [1], [0, 0, 1, 1], [], []>} : vector<256x16xbf16>, vector<16x128xbf16>, vector<256x128xf32> -> vector<256x128xf32>
      %c0_19 = arith.constant 0 : index
      %c0_20 = arith.constant 0 : index
      %22 = vector.load %arg7[%c0_19, %c0_20] : memref<16x128xbf16, #tpu.memory_space<vmem>>, vector<16x128xbf16>
      %cst_21 = arith.constant dense<0.000000e+00> : vector<256x128xf32>
      %23 = tpu.matmul %18, %22, %cst_21 {dimension_numbers = #tpu.dot_dimension_numbers<[1], [0], [0], [1], [0, 0, 1, 1], [], []>} : vector<256x16xbf16>, vector<16x128xbf16>, vector<256x128xf32> -> vector<256x128xf32>
      %24 = arith.addf %21, %23 : vector<256x128xf32>
      %c0_22 = arith.constant 0 : index
      %c0_23 = arith.constant 0 : index
      %25 = vector.load %arg8[%c0_22, %c0_23] : memref<1x128xf32, #tpu.memory_space<vmem>>, vector<1x128xf32>
      %26 = vector.broadcast %25 : vector<1x128xf32> to vector<256x128xf32>
      %27 = arith.addf %24, %26 : vector<256x128xf32>
      %cst_24 = arith.constant 0.000000e+00 : f32
      %28 = vector.broadcast %cst_24 : f32 to vector<256x128xf32>
      %29 = arith.maximumf %27, %28 : vector<256x128xf32>
      %30 = arith.truncf %29 : vector<256x128xf32> to vector<256x128xbf16>
      %c0_25 = arith.constant 0 : index
      %c0_26 = arith.constant 0 : index
      %31 = vector.load %arg10[%c0_25, %c0_26] : memref<256x128xbf16, #tpu.memory_space<vmem>>, vector<256x128xbf16>
      tpu.vector_store %arg10[%c0_25, %c0_26], %30 {strides = array<i32>} : memref<256x128xbf16, #tpu.memory_space<vmem>>, vector<256x128xbf16>,
      %c0_27 = arith.constant 0 : index
      %c0_28 = arith.constant 0 : index
      %32 = vector.load %arg9[%c0_27, %c0_28] : memref<128x32xbf16, #tpu.memory_space<vmem>>, vector<128x32xbf16>
      %cst_29 = arith.constant dense<0.000000e+00> : vector<256x32xf32>
      %33 = tpu.matmul %30, %32, %cst_29 {dimension_numbers = #tpu.dot_dimension_numbers<[1], [0], [0], [1], [0, 0, 1, 1], [], []>} : vector<256x128xbf16>, vector<128x32xbf16>, vector<256x32xf32> -> vector<256x32xf32>
      %34 = arith.truncf %33 : vector<256x32xf32> to vector<256x32xbf16>
      %c0_30 = arith.constant 0 : index
      %c0_31 = arith.constant 0 : index
      %35 = vector.load %arg11[%c0_30, %c0_31] : memref<256x32xbf16, #tpu.memory_space<vmem>>, vector<256x32xbf16>
      tpu.vector_store %arg11[%c0_30, %c0_31], %34 {strides = array<i32>} : memref<256x32xbf16, #tpu.memory_space<vmem>>, vector<256x32xbf16>,
    } else {
    }
    return
  }
  func.func @transform_0(%arg0: i32, %arg1: i32) -> (i32, i32) {
    %c0_i32 = arith.constant 0 : i32
    return %arg0, %arg1 : i32, i32
  }
  func.func @transform_1(%arg0: i32, %arg1: i32) -> (i32, i32) {
    %c0_i32 = arith.constant 0 : i32
    %c0_i32_0 = arith.constant 0 : i32
    return %arg1, %c0_i32 : i32, i32
  }
  func.func @transform_2(%arg0: i32, %arg1: i32) -> (i32, i32) {
    %c0_i32 = arith.constant 0 : i32
    %c0_i32_0 = arith.constant 0 : i32
    return %arg0, %c0_i32 : i32, i32
  }
  func.func @transform_3(%arg0: i32, %arg1: i32) -> (i32, i32) {
    %c0_i32 = arith.constant 0 : i32
    %c0_i32_0 = arith.constant 0 : i32
    return %arg0, %c0_i32 : i32, i32
  }
  func.func @transform_4(%arg0: i32, %arg1: i32) -> (i32, i32) {
    %c0_i32 = arith.constant 0 : i32
    %c0_i32_0 = arith.constant 0 : i32
    %c0_i32_1 = arith.constant 0 : i32
    return %c0_i32, %c0_i32_0 : i32, i32
  }
  func.func @transform_5(%arg0: i32, %arg1: i32) -> (i32, i32) {
    %c0_i32 = arith.constant 0 : i32
    %c0_i32_0 = arith.constant 0 : i32
    %c0_i32_1 = arith.constant 0 : i32
    return %c0_i32, %c0_i32_0 : i32, i32
  }
  func.func @transform_6(%arg0: i32, %arg1: i32) -> (i32, i32) {
    %c0_i32 = arith.constant 0 : i32
    %c0_i32_0 = arith.constant 0 : i32
    %c0_i32_1 = arith.constant 0 : i32
    return %c0_i32, %c0_i32_0 : i32, i32
  }
  func.func @transform_7(%arg0: i32, %arg1: i32) -> (i32, i32) {
    %c0_i32 = arith.constant 0 : i32
    %c0_i32_0 = arith.constant 0 : i32
    %c0_i32_1 = arith.constant 0 : i32
    return %c0_i32, %c0_i32_0 : i32, i32
  }
  func.func @transform_8(%arg0: i32, %arg1: i32) -> (i32, i32) {
    %c0_i32 = arith.constant 0 : i32
    %c0_i32_0 = arith.constant 0 : i32
    return %arg0, %c0_i32 : i32, i32
  }
  func.func @transform_9(%arg0: i32, %arg1: i32) -> (i32, i32) {
    %c0_i32 = arith.constant 0 : i32
    %c0_i32_0 = arith.constant 0 : i32
    return %arg0, %c0_i32 : i32, i32
  }
}

module attributes {stable_mosaic.version = 11 : i64} {
  func.func @_sage_conv2_head_kernel(%arg0: i32, %arg1: i32, %arg2: memref<256x512xi8, #tpu.memory_space<vmem>>, %arg3: memref<512x32xbf16, #tpu.memory_space<vmem>>, %arg4: memref<256x128xbf16, #tpu.memory_space<vmem>>, %arg5: memref<256x1xf32, #tpu.memory_space<vmem>>, %arg6: memref<128x32xbf16, #tpu.memory_space<vmem>>, %arg7: memref<1x32xf32, #tpu.memory_space<vmem>>, %arg8: memref<1x32xf32, #tpu.memory_space<vmem>>, %arg9: memref<32x128xbf16, #tpu.memory_space<vmem>>, %arg10: memref<32x128xbf16, #tpu.memory_space<vmem>>, %arg11: memref<1x128xf32, #tpu.memory_space<vmem>>, %arg12: memref<256x128xf32, #tpu.memory_space<vmem>>, %arg13: memref<256x32xf32, #tpu.memory_space<vmem>>) attributes {dimension_semantics = [#tpu.dimension_semantics<parallel>, #tpu.dimension_semantics<arbitrary>], iteration_bounds = array<i64: 2, 1>, scalar_prefetch = 0 : i64, scratch_operands = 1 : i64, tpu.core_type = #tpu.core_type<tc>, window_params = [{transform_indices = @transform_0, window_bounds = array<i64: 256, 512>}, {transform_indices = @transform_1, window_bounds = array<i64: 512, 32>}, {transform_indices = @transform_2, window_bounds = array<i64: 256, 128>}, {transform_indices = @transform_3, window_bounds = array<i64: 256, 1>}, {pipeline_mode = #tpu.pipeline_mode<synchronous>, transform_indices = @transform_4, window_bounds = array<i64: 128, 32>}, {pipeline_mode = #tpu.pipeline_mode<synchronous>, transform_indices = @transform_5, window_bounds = array<i64: 1, 32>}, {pipeline_mode = #tpu.pipeline_mode<synchronous>, transform_indices = @transform_6, window_bounds = array<i64: 1, 32>}, {pipeline_mode = #tpu.pipeline_mode<synchronous>, transform_indices = @transform_7, window_bounds = array<i64: 32, 128>}, {pipeline_mode = #tpu.pipeline_mode<synchronous>, transform_indices = @transform_8, window_bounds = array<i64: 32, 128>}, {pipeline_mode = #tpu.pipeline_mode<synchronous>, transform_indices = @transform_9, window_bounds = array<i64: 1, 128>}, {transform_indices = @transform_10, window_bounds = array<i64: 256, 128>}]} {
    %c0_i32 = arith.constant 0 : i32
    %0 = arith.cmpi eq, %arg1, %c0_i32 : i32
    %1 = arith.extui %0 : i1 to i32
    %c0_i32_0 = arith.constant 0 : i32
    %2 = arith.cmpi ne, %1, %c0_i32_0 : i32
    scf.if %2 {
      %cst_10 = arith.constant 0.000000e+00 : f32
      %14 = vector.broadcast %cst_10 : f32 to vector<256x32xf32>
      %c0_11 = arith.constant 0 : index
      %c0_12 = arith.constant 0 : index
      %15 = vector.load %arg13[%c0_11, %c0_12] : memref<256x32xf32, #tpu.memory_space<vmem>>, vector<256x32xf32>
      tpu.vector_store %arg13[%c0_11, %c0_12], %14 {strides = array<i32>} : memref<256x32xf32, #tpu.memory_space<vmem>>, vector<256x32xf32>,
    } else {
    }
    %c0 = arith.constant 0 : index
    %c0_1 = arith.constant 0 : index
    %3 = vector.load %arg13[%c0, %c0_1] : memref<256x32xf32, #tpu.memory_space<vmem>>, vector<256x32xf32>
    %c0_2 = arith.constant 0 : index
    %c0_3 = arith.constant 0 : index
    %4 = vector.load %arg2[%c0_2, %c0_3] : memref<256x512xi8, #tpu.memory_space<vmem>>, vector<256x512xi8>
    %5 = arith.sitofp %4 : vector<256x512xi8> to vector<256x512xf32>
    %6 = arith.truncf %5 : vector<256x512xf32> to vector<256x512xbf16>
    %c0_4 = arith.constant 0 : index
    %c0_5 = arith.constant 0 : index
    %7 = vector.load %arg3[%c0_4, %c0_5] : memref<512x32xbf16, #tpu.memory_space<vmem>>, vector<512x32xbf16>
    %cst = arith.constant dense<0.000000e+00> : vector<256x32xf32>
    %8 = tpu.matmul %6, %7, %cst {dimension_numbers = #tpu.dot_dimension_numbers<[1], [0], [0], [1], [0, 0, 1, 1], [], []>} : vector<256x512xbf16>, vector<512x32xbf16>, vector<256x32xf32> -> vector<256x32xf32>
    %9 = arith.addf %3, %8 : vector<256x32xf32>
    %c0_6 = arith.constant 0 : index
    %c0_7 = arith.constant 0 : index
    %10 = vector.load %arg13[%c0_6, %c0_7] : memref<256x32xf32, #tpu.memory_space<vmem>>, vector<256x32xf32>
    tpu.vector_store %arg13[%c0_6, %c0_7], %9 {strides = array<i32>} : memref<256x32xf32, #tpu.memory_space<vmem>>, vector<256x32xf32>,
    %c0_i32_8 = arith.constant 0 : i32
    %11 = arith.cmpi eq, %arg1, %c0_i32_8 : i32
    %12 = arith.extui %11 : i1 to i32
    %c0_i32_9 = arith.constant 0 : i32
    %13 = arith.cmpi ne, %12, %c0_i32_9 : i32
    scf.if %13 {
      %c0_10 = arith.constant 0 : index
      %c0_11 = arith.constant 0 : index
      %14 = vector.load %arg4[%c0_10, %c0_11] : memref<256x128xbf16, #tpu.memory_space<vmem>>, vector<256x128xbf16>
      %c0_12 = arith.constant 0 : index
      %c0_13 = arith.constant 0 : index
      %15 = vector.load %arg6[%c0_12, %c0_13] : memref<128x32xbf16, #tpu.memory_space<vmem>>, vector<128x32xbf16>
      %cst_14 = arith.constant dense<0.000000e+00> : vector<256x32xf32>
      %16 = tpu.matmul %14, %15, %cst_14 {dimension_numbers = #tpu.dot_dimension_numbers<[1], [0], [0], [1], [0, 0, 1, 1], [], []>} : vector<256x128xbf16>, vector<128x32xbf16>, vector<256x32xf32> -> vector<256x32xf32>
      %c0_15 = arith.constant 0 : index
      %c0_16 = arith.constant 0 : index
      %17 = vector.load %arg7[%c0_15, %c0_16] : memref<1x32xf32, #tpu.memory_space<vmem>>, vector<1x32xf32>
      %18 = vector.broadcast %17 : vector<1x32xf32> to vector<256x32xf32>
      %19 = arith.addf %16, %18 : vector<256x32xf32>
      %cst_17 = arith.constant 0.000000e+00 : f32
      %20 = vector.broadcast %cst_17 : f32 to vector<256x32xf32>
      %21 = arith.maximumf %19, %20 : vector<256x32xf32>
      %c0_18 = arith.constant 0 : index
      %c0_19 = arith.constant 0 : index
      %22 = vector.load %arg13[%c0_18, %c0_19] : memref<256x32xf32, #tpu.memory_space<vmem>>, vector<256x32xf32>
      %c0_20 = arith.constant 0 : index
      %c0_21 = arith.constant 0 : index
      %23 = vector.load %arg5[%c0_20, %c0_21] : memref<256x1xf32, #tpu.memory_space<vmem>>, vector<256x1xf32>
      %24 = vector.broadcast %23 : vector<256x1xf32> to vector<256x32xf32>
      %25 = arith.mulf %22, %24 : vector<256x32xf32>
      %c0_22 = arith.constant 0 : index
      %c0_23 = arith.constant 0 : index
      %26 = vector.load %arg8[%c0_22, %c0_23] : memref<1x32xf32, #tpu.memory_space<vmem>>, vector<1x32xf32>
      %27 = vector.broadcast %26 : vector<1x32xf32> to vector<256x32xf32>
      %28 = arith.addf %25, %27 : vector<256x32xf32>
      %cst_24 = arith.constant 0.000000e+00 : f32
      %29 = vector.broadcast %cst_24 : f32 to vector<256x32xf32>
      %30 = arith.maximumf %28, %29 : vector<256x32xf32>
      %31 = arith.mulf %21, %21 : vector<256x32xf32>
      %cst_25 = arith.constant dense<0.000000e+00> : vector<256xf32>
      %32 = vector.multi_reduction <add>, %31, %cst_25 [1] : vector<256x32xf32> to vector<256xf32>
      %33 = vector.shape_cast %32 : vector<256xf32> to vector<256x1xf32>
      %34 = arith.mulf %30, %30 : vector<256x32xf32>
      %cst_26 = arith.constant dense<0.000000e+00> : vector<256xf32>
      %35 = vector.multi_reduction <add>, %34, %cst_26 [1] : vector<256x32xf32> to vector<256xf32>
      %36 = vector.shape_cast %35 : vector<256xf32> to vector<256x1xf32>
      %37 = arith.addf %33, %36 : vector<256x1xf32>
      %cst_27 = arith.constant 1.000000e-24 : f32
      %38 = vector.broadcast %cst_27 : f32 to vector<256x1xf32>
      %39 = arith.maximumf %37, %38 : vector<256x1xf32>
      %40 = math.rsqrt %39 : vector<256x1xf32>
      %41 = vector.broadcast %40 : vector<256x1xf32> to vector<256x32xf32>
      %42 = arith.mulf %21, %41 : vector<256x32xf32>
      %43 = arith.truncf %42 : vector<256x32xf32> to vector<256x32xbf16>
      %44 = vector.broadcast %40 : vector<256x1xf32> to vector<256x32xf32>
      %45 = arith.mulf %30, %44 : vector<256x32xf32>
      %46 = arith.truncf %45 : vector<256x32xf32> to vector<256x32xbf16>
      %c0_28 = arith.constant 0 : index
      %c0_29 = arith.constant 0 : index
      %47 = vector.load %arg9[%c0_28, %c0_29] : memref<32x128xbf16, #tpu.memory_space<vmem>>, vector<32x128xbf16>
      %cst_30 = arith.constant dense<0.000000e+00> : vector<256x128xf32>
      %48 = tpu.matmul %43, %47, %cst_30 {dimension_numbers = #tpu.dot_dimension_numbers<[1], [0], [0], [1], [0, 0, 1, 1], [], []>} : vector<256x32xbf16>, vector<32x128xbf16>, vector<256x128xf32> -> vector<256x128xf32>
      %c0_31 = arith.constant 0 : index
      %c0_32 = arith.constant 0 : index
      %49 = vector.load %arg10[%c0_31, %c0_32] : memref<32x128xbf16, #tpu.memory_space<vmem>>, vector<32x128xbf16>
      %cst_33 = arith.constant dense<0.000000e+00> : vector<256x128xf32>
      %50 = tpu.matmul %46, %49, %cst_33 {dimension_numbers = #tpu.dot_dimension_numbers<[1], [0], [0], [1], [0, 0, 1, 1], [], []>} : vector<256x32xbf16>, vector<32x128xbf16>, vector<256x128xf32> -> vector<256x128xf32>
      %51 = arith.addf %48, %50 : vector<256x128xf32>
      %c0_34 = arith.constant 0 : index
      %c0_35 = arith.constant 0 : index
      %52 = vector.load %arg11[%c0_34, %c0_35] : memref<1x128xf32, #tpu.memory_space<vmem>>, vector<1x128xf32>
      %53 = vector.broadcast %52 : vector<1x128xf32> to vector<256x128xf32>
      %54 = arith.addf %51, %53 : vector<256x128xf32>
      %c0_36 = arith.constant 0 : index
      %c0_37 = arith.constant 0 : index
      %55 = vector.load %arg12[%c0_36, %c0_37] : memref<256x128xf32, #tpu.memory_space<vmem>>, vector<256x128xf32>
      tpu.vector_store %arg12[%c0_36, %c0_37], %54 {strides = array<i32>} : memref<256x128xf32, #tpu.memory_space<vmem>>, vector<256x128xf32>,
    } else {
    }
    return
  }
  func.func @transform_0(%arg0: i32, %arg1: i32) -> (i32, i32) {
    %c0_i32 = arith.constant 0 : i32
    return %arg0, %arg1 : i32, i32
  }
  func.func @transform_1(%arg0: i32, %arg1: i32) -> (i32, i32) {
    %c0_i32 = arith.constant 0 : i32
    %c0_i32_0 = arith.constant 0 : i32
    return %arg1, %c0_i32 : i32, i32
  }
  func.func @transform_2(%arg0: i32, %arg1: i32) -> (i32, i32) {
    %c0_i32 = arith.constant 0 : i32
    %c0_i32_0 = arith.constant 0 : i32
    return %arg0, %c0_i32 : i32, i32
  }
  func.func @transform_3(%arg0: i32, %arg1: i32) -> (i32, i32) {
    %c0_i32 = arith.constant 0 : i32
    %c0_i32_0 = arith.constant 0 : i32
    return %arg0, %c0_i32 : i32, i32
  }
  func.func @transform_4(%arg0: i32, %arg1: i32) -> (i32, i32) {
    %c0_i32 = arith.constant 0 : i32
    %c0_i32_0 = arith.constant 0 : i32
    %c0_i32_1 = arith.constant 0 : i32
    return %c0_i32, %c0_i32_0 : i32, i32
  }
  func.func @transform_5(%arg0: i32, %arg1: i32) -> (i32, i32) {
    %c0_i32 = arith.constant 0 : i32
    %c0_i32_0 = arith.constant 0 : i32
    %c0_i32_1 = arith.constant 0 : i32
    return %c0_i32, %c0_i32_0 : i32, i32
  }
  func.func @transform_6(%arg0: i32, %arg1: i32) -> (i32, i32) {
    %c0_i32 = arith.constant 0 : i32
    %c0_i32_0 = arith.constant 0 : i32
    %c0_i32_1 = arith.constant 0 : i32
    return %c0_i32, %c0_i32_0 : i32, i32
  }
  func.func @transform_7(%arg0: i32, %arg1: i32) -> (i32, i32) {
    %c0_i32 = arith.constant 0 : i32
    %c0_i32_0 = arith.constant 0 : i32
    %c0_i32_1 = arith.constant 0 : i32
    return %c0_i32, %c0_i32_0 : i32, i32
  }
  func.func @transform_8(%arg0: i32, %arg1: i32) -> (i32, i32) {
    %c0_i32 = arith.constant 0 : i32
    %c0_i32_0 = arith.constant 0 : i32
    %c0_i32_1 = arith.constant 0 : i32
    return %c0_i32, %c0_i32_0 : i32, i32
  }
  func.func @transform_9(%arg0: i32, %arg1: i32) -> (i32, i32) {
    %c0_i32 = arith.constant 0 : i32
    %c0_i32_0 = arith.constant 0 : i32
    %c0_i32_1 = arith.constant 0 : i32
    return %c0_i32, %c0_i32_0 : i32, i32
  }
  func.func @transform_10(%arg0: i32, %arg1: i32) -> (i32, i32) {
    %c0_i32 = arith.constant 0 : i32
    %c0_i32_0 = arith.constant 0 : i32
    return %arg0, %c0_i32 : i32, i32
  }
}

</mosaic_0001>

<bundles_post_ra>
// kernel: net_forward.3
= control target key start
LH: loop header
LB: loop body
LE: loop exit
PB: predicated region body
PF: predicated region fallthrough
CT: control target
= control target key end

     0   :  { %s3837_s13 = smov 0   ;;  %s3839_s14 = smov 0   ;;  %s4904_s0 = inlined_call_operand.vmem [shape: s8[512,512], index: 0, kind: input, shape index: {}]   ;;  %s4905_s1 = inlined_call_operand.vmem [shape: bf16[512,32], index: 1, kind: input, shape index: {}]   ;;  %s4906_s2 = inlined_call_operand.vmem [shape: bf16[512,128], index: 2, kind: input, shape index: {}]   ;;  %s4907_s3 = inlined_call_operand.vmem [shape: f32[512,1], index: 3, kind: input, shape index: {}]   ;;  %s4908_s4 = inlined_call_operand.vmem [shape: bf16[128,32], index: 4, kind: input, shape index: {}]   ;;  %s4909_s5 = inlined_call_operand.vmem [shape: f32[1,32], index: 5, kind: input, shape index: {}]   ;;  %s4910_s6 = inlined_call_operand.vmem [shape: f32[1,32], index: 6, kind: input, shape index: {}]   ;;  %s4911_s7 = inlined_call_operand.vmem [shape: bf16[32,128], index: 7, kind: input, shape index: {}]   ;;  %s4912_s8 = inlined_call_operand.vmem [shape: bf16[32,128], index: 8, kind: input, shape index: {}]   ;;  %s4913_s9 = inlined_call_operand.vmem [shape: f32[1,128], index: 9, kind: input, shape index: {}]   ;;  %s4914_s10 = inlined_call_operand.vmem [shape: f32[512,128], index: 10, kind: output, shape index: {}]  }
   0x1   :  { %s3841_s15 = smov 0  }
   0x2 LB: > { %s32_s16 = sadd.s32 1, %s3774_s14  ;;  %p3075_p0 = scmp.ge.s32.totalorder %s3778_s15, 1  ;;  %s3778_s15 = sphi %s3841_s15, %s20_s15   ;;  %s3774_s14 = sphi %s3839_s14, %s5004_s14   ;;  %s3770_s13 = sphi %s3837_s13, %s5003_s13  }
   0x3   : > { %p34_p1 = scmp.ge.s32.totalorder %s32_s16, 2  ;;  %p366_p2 = scmp.lt.s32.totalorder %s3778_s15, 3 }
   0x5   : > { %s5006_s16 = smov (%p34_p1, %s32_s16), 0  ;;  %p367_p3 = pnand %p3075_p0, %p366_p2 }
   0x7   : > { %370 = sbr.rel (%p367_p3) target bundleno = 808 (0x328), region = 60 }
   0xc   : > { %v3631_v0 = vld [vmem:[%s4905_s1 + $0x78] sm:$0xff]   ;;  %s3076_s19 = sshll.u32 %s3770_s13, 3  ;;  %v3633_v2 = vld [vmem:[%s4905_s1 + $0x70] sm:$0xff]   ;;  %v3635_v4 = vld [vmem:[%s4905_s1 + $0x68] sm:$0xff]   ;;  %v3780_v5 = vmov 0   ;;  %s3079_s27 = sshll.u32 %s3770_s13, 5 }
   0xd   : > { %v3632_v1 = vld [vmem:[%s4905_s1 + $0x38] sm:$0xff]   ;;  %p426_p4 = scmp.lt.s32.totalorder %s3076_s19, 15  ;;  %3183 = vmatprep.subr.bf16.mxu0 %v3631_v0  ;;  %3587 = vmatprep.subr.bf16.mxu1 %v3631_v0  ;;  %v3634_v3 = vld [vmem:[%s4905_s1 + $0x30] sm:$0xff]   ;;  %v3636_v6 = vld [vmem:[%s4905_s1 + $0x28] sm:$0xff]   ;;  %p3925_p5 = scmp.lt.s32.totalorder %s3079_s27, 63  ;;  %vm465_vm0 = vcmask 261120  }
   0xe   : > { %3184 = vmatpush3.bf16.msra.mxu0 %v3632_v1  ;;  %3595 = vmatpush3.bf16.msra.mxu1 %v3632_v1  ;;  %v3637_v7 = vld [vmem:[%s4905_s1 + $0x60] sm:$0xff]   ;;  %v3639_v9 = vld [vmem:[%s4905_s1 + $0x58] sm:$0xff]   ;;  %v3641_v11 = vld [vmem:[%s4905_s1 + $0x50] sm:$0xff]  }
   0xf   : > { %3185 = vmatprep.subr.bf16.mxu0 %v3633_v2  ;;  %3588 = vmatprep.subr.bf16.mxu1 %v3633_v2  ;;  %s5008_s19 = smov (!%p426_p4, %s3076_s19), 15  ;;  %v3638_v8 = vld [vmem:[%s4905_s1 + $0x20] sm:$0xff]   ;;  %v3640_v10 = vld [vmem:[%s4905_s1 + $0x18] sm:$0xff]   ;;  %v3642_v16 = vld [vmem:[%s4905_s1 + $0x10] sm:$0xff]   ;;  %s5010_s27 = smov (!%p3925_p5, %s3079_s27), 63 }
  0x10   : > { %3629 = vset.pattern.permute.xlu0 %v3780_v5  ;;  %3630 = vset.pattern.permute.xlu1 %v3780_v5  ;;  %s3182_s12 = sshll.u32 %s5008_s19, 5  ;;  %v3643_v17 = vld [vmem:[%s4905_s1 + $0x48] sm:$0xff]   ;;  %v3645_v19 = vld [vmem:[%s4905_s1 + $0x40] sm:$0xff]   ;;  %v3647_v23 = vld [vmem:[%s4905_s1 + $0xf8] sm:$0xff]   ;;  %s3082_s28 = sshll.u32 %s5010_s27, 3 }
  0x11   : > { %s3888_s24 = scalar_lea.vmem %s4904_s0, %s3182_s12  ;;  %v3644_v18 = vld [vmem:[%s4905_s1 + $0x8] sm:$0xff]   ;;  %v3646_v20 = vld [vmem:[%s4905_s1] sm:$0xff]   ;;  %v3648_v24 = vld [vmem:[%s4908_s4 + $0x38] sm:$0xff]   ;;  %s3965_s18 = scalar_lea.vmem %s4907_s3, %s3082_s28 }
  0x12   : > { %3186 = vmatpush3.bf16.msra.mxu0 %v3634_v3  ;;  %3596 = vmatpush3.bf16.msra.mxu1 %v3634_v3  ;;  %v531_v12 = vld [vmem:[%s3888_s24 + $0x8] sm:$0xff]  ;;  %v530_v21 = vld [vmem:[%s3888_s24] sm:$0xff]  ;;  %v3649_v27 = vld [vmem:[%s4905_s1 + $0xb8] sm:$0xff]   ;;  %s3080_s26 = sshll.u32 %s5010_s27, 2  ;;  %s4829_s25 = scalar_lea.vmem %s4914_s10, %s3082_s28 }
  0x13   : > { %3187 = vmatprep.subr.bf16.mxu0 %v3635_v4  ;;  %3589 = vmatprep.subr.bf16.mxu1 %v3635_v4  ;;  %v555_v13 = vld [vmem:[%s3888_s24 + $0xc8] sm:$0xff]  ;;  %v563_v14 = vunpack.c.l.s8.bf16 %v531_v12  ;;  %v554_v22 = vld [vmem:[%s3888_s24 + $0xc0] sm:$0xff]  ;;  %v562_v25 = vunpack.c.l.s8.bf16 %v530_v21  ;;  %v567_v28 = vunpack.c.h.s8.bf16 %v531_v12  ;;  %v3650_v29 = vld [vmem:[%s4905_s1 + $0xf0] sm:$0xff]   ;;  %v566_v37 = vunpack.c.h.s8.bf16 %v530_v21  ;;  %s3997_s19 = scalar_lea.vmem %s4906_s2, %s3080_s26 }
  0x14   : > { %v611_v15 = vunpack.c.l.s8.bf16 %v555_v13  ;;  %v610_v26 = vunpack.c.l.s8.bf16 %v554_v22  ;;  %v615_v30 = vunpack.c.h.s8.bf16 %v555_v13  ;;  %v3651_v31 = vld [vmem:[%s4905_s1 + $0xb0] sm:$0xff]   ;;  %v3652_v33 = vld [vmem:[%s4905_s1 + $0xe8] sm:$0xff]   ;;  %v614_v38 = vunpack.c.h.s8.bf16 %v554_v22  ;;  %v3654_v41 = vld [vmem:[%s4905_s1 + $0xe0] sm:$0xff]  }
  0x15   : > { %914 = vmatprep.mubr.bf16.mxu0 %v563_v14  ;;  %v3655_v32 = vld [vmem:[%s4908_s4 + $0x30] sm:$0xff]   ;;  %v535_v34 = vld [vmem:[%s3888_s24 + $0x28] sm:$0xff]  ;;  %v3666_v43 = vld [vmem:[%s4908_s4 + $0x20] sm:$0xff]  }
  0x16   : > { %3188 = vmatpush3.bf16.msra.mxu0 %v3636_v6  ;;  %3597 = vmatpush3.bf16.msra.mxu1 %v3636_v6  ;;  %v3662_v35 = vld [vmem:[%s4908_s4 + $0x28] sm:$0xff]   ;;  %v571_v40 = vunpack.c.l.s8.bf16 %v535_v34  ;;  %v3656_v44 = vld [vmem:[%s4905_s1 + $0xa0] sm:$0xff]   ;;  %v3657_v47 = vld [vmem:[%s4905_s1 + $0xd8] sm:$0xff]   ;;  %v575_v52 = vunpack.c.h.s8.bf16 %v535_v34 }
  0x17   : > { %3189 = vmatprep.subr.bf16.mxu0 %v3637_v7  ;;  %3590 = vmatprep.subr.bf16.mxu1 %v3637_v7  ;;  %v559_v36 = vld [vmem:[%s3888_s24 + $0xe8] sm:$0xff]  ;;  %v534_v45 = vld [vmem:[%s3888_s24 + $0x20] sm:$0xff]  ;;  %v3658_v51 = vld [vmem:[%s4905_s1 + $0x98] sm:$0xff]  }
  0x18   : > { %1010 = vmatprep.mubr.bf16.mxu1 %v611_v15  ;;  %v3653_v39 = vld [vmem:[%s4905_s1 + $0xa8] sm:$0xff]   ;;  %v619_v42 = vunpack.c.l.s8.bf16 %v559_v36  ;;  %v558_v46 = vld [vmem:[%s3888_s24 + $0xe0] sm:$0xff]  ;;  %v570_v49 = vunpack.c.l.s8.bf16 %v534_v45  ;;  %v1698_v53 = vld [vmem:[%s3965_s18 + $0x10] sm:$0xff]  ;;  %v623_v55 = vunpack.c.h.s8.bf16 %v559_v36  ;;  %v574_v0 = vunpack.c.h.s8.bf16 %v534_v45 }
  0x19   : > { %v1696_v48 = vld [vmem:[%s3965_s18] sm:$0xff]  ;;  %v618_v50 = vunpack.c.l.s8.bf16 %v558_v46  ;;  %v3659_v54 = vld [vmem:[%s4905_s1 + $0xd0] sm:$0xff]   ;;  %1740 = vperm.xlu1 %3630, %v1698_v53   ;;  %v3667_v56 = vld [vmem:[%s4908_s4 + $0x18] sm:$0xff]   ;;  %v622_v1 = vunpack.c.h.s8.bf16 %v558_v46 }
  0x1a   : > { %3190 = vmatpush3.bf16.msra.mxu0 %v3638_v8  ;;  %3598 = vmatpush3.bf16.msra.mxu1 %v3638_v8  ;;  %v3660_v57 = vld [vmem:[%s4905_s1 + $0x90] sm:$0xff]   ;;  %v1697_v59 = vld [vmem:[%s3965_s18 + $0x8] sm:$0xff]  ;;  %v1699_v60 = vld [vmem:[%s3965_s18 + $0x18] sm:$0xff] }
  0x1b   : > { %3191 = vmatprep.subr.bf16.mxu0 %v3639_v9  ;;  %3591 = vmatprep.subr.bf16.mxu1 %v3639_v9  ;;  %v3668_v58 = vld [vmem:[%s4908_s4 + $0x10] sm:$0xff]   ;;  %v3661_v61 = vld [vmem:[%s4905_s1 + $0xc8] sm:$0xff]   ;;  %v533_v63 = vld [vmem:[%s3888_s24 + $0x18] sm:$0xff] }
  0x1c   : > { %1730 = vperm.xlu0 %3629, %v1696_v48   ;;  %v539_v62 = vld [vmem:[%s3888_s24 + $0x48] sm:$0xff]  ;;  %v1700_v2 = vld [vmem:[%s3965_s18 + $0x20] sm:$0xff]  ;;  %v565_v6 = vunpack.c.l.s8.bf16 %v533_v63  ;;  %v532_v9 = vld [vmem:[%s3888_s24 + $0x10] sm:$0xff] }
  0x1d   : > { %1745 = vperm.xlu1 %3630, %v1699_v60   ;;  %v3663_v3 = vld [vmem:[%s4905_s1 + $0x88] sm:$0xff]   ;;  %v579_v4 = vunpack.c.l.s8.bf16 %v539_v62  ;;  %v3664_v5 = vld [vmem:[%s4905_s1 + $0xc0] sm:$0xff]   ;;  %v1702_v12 = vld [vmem:[%s3965_s18 + $0x30] sm:$0xff]  ;;  %v564_v14 = vunpack.c.l.s8.bf16 %v532_v9 }
  0x1e   : > { %3192 = vmatpush3.bf16.msra.mxu0 %v3640_v10  ;;  %3599 = vmatpush3.bf16.msra.mxu1 %v3640_v10  ;;  %v3665_v7 = vld [vmem:[%s4905_s1 + $0x80] sm:$0xff]   ;;  %v3669_v10 = vld [vmem:[%s4908_s4 + $0x8] sm:$0xff]   ;;  %v1703_v15 = vld [vmem:[%s3965_s18 + $0x38] sm:$0xff] }
  0x1f   : > { %3193 = vmatprep.subr.bf16.mxu0 %v3641_v11  ;;  %3592 = vmatprep.subr.bf16.mxu1 %v3641_v11  ;;  %v538_v8 = vld [vmem:[%s3888_s24 + $0x40] sm:$0xff]  ;;  %v1701_v11 = vld [vmem:[%s3965_s18 + $0x28] sm:$0xff]  ;;  %v537_v22 = vld [vmem:[%s3888_s24 + $0x38] sm:$0xff] }
  0x20   : > { %1735 = vperm.xlu0 %3629, %v1697_v59   ;;  %v578_v13 = vunpack.c.l.s8.bf16 %v538_v8  ;;  %v543_v21 = vld [vmem:[%s3888_s24 + $0x68] sm:$0xff]  ;;  %v1711_v34 = vld [vmem:[%s3965_s18 + $0x78] sm:$0xff]  ;;  %v1718_v53 = vld [vmem:[%s3965_s18 + $0xb0] sm:$0xff] }
  0x21   : > { %1755 = vperm.xlu1 %3630, %v1701_v11   ;;  %v1715_v46 = vld [vmem:[%s3965_s18 + $0x98] sm:$0xff]  ;;  %v1720_v59 = vld [vmem:[%s3965_s18 + $0xc0] sm:$0xff]  ;;  %v1721_v60 = vld [vmem:[%s3965_s18 + $0xc8] sm:$0xff] }
  0x22   : > { %3194 = vmatpush3.bf16.msra.mxu0 %v3642_v16  ;;  %3600 = vmatpush3.bf16.msra.mxu1 %v3642_v16  ;;  %v583_v16 = vunpack.c.h.s8.bf16 %v539_v62  ;;  %v545_v62 = vld [vmem:[%s3888_s24 + $0x78] sm:$0xff] }
  0x23   : > { %3195 = vmatprep.subr.bf16.mxu0 %v3643_v17  ;;  %3593 = vmatprep.subr.bf16.mxu1 %v3643_v17  ;;  %v569_v17 = vunpack.c.h.s8.bf16 %v533_v63  ;;  %v1722_v63 = vld [vmem:[%s3965_s18 + $0xd0] sm:$0xff] }
  0x24   : > { %1750 = vperm.xlu0 %3629, %v1700_v2   ;;  %v1723_v2 = vld [vmem:[%s3965_s18 + $0xd8] sm:$0xff] }
  0x25   : > { %1765 = vperm.xlu1 %3630, %v1703_v15   ;;  %v549_v15 = vld [vmem:[%s3888_s24 + $0x98] sm:$0xff] }
  0x26   : > { %3196 = vmatpush3.bf16.msra.mxu0 %v3644_v18  ;;  %3601 = vmatpush3.bf16.msra.mxu1 %v3644_v18  ;;  %v3670_v18 = vld [vmem:[%s4908_s4] sm:$0xff]  }
  0x27   : > { %3197 = vmatprep.subr.bf16.mxu0 %v3645_v19  ;;  %3594 = vmatprep.subr.bf16.mxu1 %v3645_v19  ;;  %v1704_v19 = vld [vmem:[%s3965_s18 + $0x40] sm:$0xff] }
  0x28   : > { %1760 = vperm.xlu0 %3629, %v1702_v12   ;;  %v1727_v12 = vld [vmem:[%s3965_s18 + $0xf8] sm:$0xff] }
  0x2a   : > { %3198 = vmatpush3.bf16.msra.mxu0 %v3646_v20  ;;  %3602 = vmatpush3.bf16.msra.mxu1 %v3646_v20  ;;  %v1705_v20 = vld [vmem:[%s3965_s18 + $0x48] sm:$0xff] }
  0x2b   : > { %3295 = vmatprep.subr.bf16.mxu1 %v3647_v23  ;;  %3467 = vmatprep.subr.bf16.mxu0 %v3648_v24  ;;  %v1706_v23 = vld [vmem:[%s3965_s18 + $0x50] sm:$0xff] }
  0x2c   : > { %1770 = vperm.xlu0 %3629, %v1704_v19   ;;  %1775 = vperm.xlu1 %3630, %v1705_v20   ;;  %v3671_v19 = vld [vmem:[%s3997_s19] sm:$0xff]   ;;  %v548_v20 = vld [vmem:[%s3888_s24 + $0x90] sm:$0xff] }
  0x2d   : > { %915 = vmatmul.mubr.bf16.vlgmr.msra.gmra.mxu0 %v562_v25  ;;  %1011 = vmatmul.mubr.bf16.vlgmr.msra.gmra.mxu1 %v610_v26  ;;  %v568_v25 = vunpack.c.h.s8.bf16 %v532_v9  ;;  %v1707_v26 = vld [vmem:[%s3965_s18 + $0x58] sm:$0xff]  ;;  %v1726_v9 = vld [vmem:[%s3965_s18 + $0xf0] sm:$0xff] }
  0x2e   : > { %3296 = vmatpush3.bf16.msra.mxu1 %v3649_v27  ;;  %3468 = vmatpush3.bf16.msra.mxu0 %v3648_v24  ;;  %v582_v24 = vunpack.c.h.s8.bf16 %v538_v8  ;;  %v587_v27 = vunpack.c.l.s8.bf16 %v543_v21  ;;  %v544_v8 = vld [vmem:[%s3888_s24 + $0x70] sm:$0xff] }
  0x2f   : > { %3297 = vmatprep.subr.bf16.mxu1 %v3650_v29  ;;  %922 = vmatprep.mubr.bf16.mxu0 %v567_v28  ;;  %v573_v28 = vunpack.c.l.s8.bf16 %v537_v22  ;;  %v542_v29 = vld [vmem:[%s3888_s24 + $0x60] sm:$0xff]  ;;  %v588_v11 = vunpack.c.l.s8.bf16 %v544_v8 }
  0x30   : > { %1018 = vmatprep.mubr.bf16.mxu1 %v615_v30  ;;  %3469 = vmatprep.subr.bf16.mxu0 %v3655_v32  ;;  %v1708_v30 = vld [vmem:[%s3965_s18 + $0x60] sm:$0xff] }
  0x31   : > { %1780 = vperm.xlu0 %3629, %v1706_v23   ;;  %1785 = vperm.xlu1 %3630, %v1707_v26   ;;  %v601_v23 = vunpack.c.h.s8.bf16 %v549_v15  ;;  %v553_v26 = vld [vmem:[%s3888_s24 + $0xb8] sm:$0xff] }
  0x32   : > { %3298 = vmatpush3.bf16.msra.mxu1 %v3651_v31  ;;  %3470 = vmatpush3.bf16.msra.mxu0 %v3655_v32  ;;  %v1709_v31 = vld [vmem:[%s3965_s18 + $0x68] sm:$0xff]  ;;  %v536_v32 = vld [vmem:[%s3888_s24 + $0x30] sm:$0xff] }
  0x33   : > { %3299 = vmatprep.subr.bf16.mxu1 %v3652_v33  ;;  %3471 = vmatprep.subr.bf16.mxu0 %v3662_v35  ;;  %v1710_v33 = vld [vmem:[%s3965_s18 + $0x70] sm:$0xff]  ;;  %v572_v36 = vunpack.c.l.s8.bf16 %v536_v32  ;;  %v576_v45 = vunpack.c.h.s8.bf16 %v536_v32 }
  0x35   : > { %923 = vmatmul.mubr.bf16.gmra.mxu0 %v566_v37  ;;  %1019 = vmatmul.mubr.bf16.gmra.mxu1 %v614_v38  ;;  %v591_v37 = vunpack.c.h.s8.bf16 %v543_v21  ;;  %v577_v38 = vunpack.c.h.s8.bf16 %v537_v22  ;;  %v596_v21 = vunpack.c.l.s8.bf16 %v548_v20  ;;  %v3672_v22 = vld [vmem:[%s3997_s19 + $0x8] sm:$0xff]  }
  0x36   : > { %3300 = vmatpush3.bf16.msra.mxu1 %v3653_v39  ;;  %930 = vmatprep.mubr.bf16.mxu0 %v571_v40  ;;  %v1712_v39 = vld [vmem:[%s3965_s18 + $0x80] sm:$0xff]  ;;  %v1713_v40 = vld [vmem:[%s3965_s18 + $0x88] sm:$0xff] }
  0x37   : > { %3301 = vmatprep.subr.bf16.mxu1 %v3654_v41  ;;  %1026 = vmatprep.mubr.bf16.mxu1 %v619_v42  ;;  %v547_v41 = vld [vmem:[%s3888_s24 + $0x88] sm:$0xff]  ;;  %v541_v42 = vld [vmem:[%s3888_s24 + $0x58] sm:$0xff] }
  0x38   : > { %3472 = vmatpush3.bf16.msra.mxu0 %v3662_v35  ;;  %1790 = vperm.xlu0 %3629, %v1708_v30   ;;  %v586_v35 = vunpack.c.l.s8.bf16 %v542_v29  ;;  %v581_v48 = vunpack.c.l.s8.bf16 %v541_v42  ;;  %v3675_v30 = vld [vmem:[%s3997_s19 + $0x20] sm:$0xff]  }
  0x39   : > { %3473 = vmatprep.subr.bf16.mxu0 %v3666_v43  ;;  %1795 = vperm.xlu1 %3630, %v1709_v31   ;;  %v552_v31 = vld [vmem:[%s3888_s24 + $0xb0] sm:$0xff] }
  0x3a   : > { %3302 = vmatpush3.bf16.msra.mxu1 %v3656_v44  ;;  %v590_v44 = vunpack.c.h.s8.bf16 %v542_v29  ;;  %v605_v29 = vunpack.c.l.s8.bf16 %v553_v26  ;;  %v604_v32 = vunpack.c.l.s8.bf16 %v552_v31 }
  0x3b   : > { %3303 = vmatprep.subr.bf16.mxu1 %v3657_v47  ;;  %v595_v47 = vunpack.c.l.s8.bf16 %v547_v41 }
  0x3c   : > { %3474 = vmatpush3.bf16.msra.mxu0 %v3666_v43  ;;  %1800 = vperm.xlu0 %3629, %v1710_v33   ;;  %v1714_v43 = vld [vmem:[%s3965_s18 + $0x90] sm:$0xff]  ;;  %v3676_v33 = vld [vmem:[%s3997_s19 + $0x28] sm:$0xff]  }
  0x3d   : > { %931 = vmatmul.mubr.bf16.gmra.mxu0 %v570_v49  ;;  %1027 = vmatmul.mubr.bf16.gmra.mxu1 %v618_v50  ;;  %v1716_v49 = vld [vmem:[%s3965_s18 + $0xa0] sm:$0xff]  ;;  %v1717_v50 = vld [vmem:[%s3965_s18 + $0xa8] sm:$0xff] }
  0x3e   : > { %3304 = vmatpush3.bf16.msra.mxu1 %v3658_v51  ;;  %938 = vmatprep.mubr.bf16.mxu0 %v575_v52  ;;  %v546_v51 = vld [vmem:[%s3888_s24 + $0x80] sm:$0xff]  ;;  %v540_v52 = vld [vmem:[%s3888_s24 + $0x50] sm:$0xff] }
  0x3f   : > { %3305 = vmatprep.subr.bf16.mxu1 %v3659_v54  ;;  %1034 = vmatprep.mubr.bf16.mxu1 %v623_v55  ;;  %v594_v54 = vunpack.c.l.s8.bf16 %v546_v51  ;;  %v580_v55 = vunpack.c.l.s8.bf16 %v540_v52 }
  0x40   : > { %3475 = vmatprep.subr.bf16.mxu0 %v3667_v56  ;;  %1805 = vperm.xlu1 %3630, %v1711_v34   ;;  %v609_v34 = vunpack.c.h.s8.bf16 %v553_v26 }
  0x41   : > { %3476 = vmatpush3.bf16.msra.mxu0 %v3667_v56  ;;  %1810 = vperm.xlu0 %3629, %v1712_v39   ;;  %v1719_v56 = vld [vmem:[%s3965_s18 + $0xb8] sm:$0xff] }
  0x42   : > { %3306 = vmatpush3.bf16.msra.mxu1 %v3660_v57  ;;  %3477 = vmatprep.subr.bf16.mxu0 %v3668_v58  ;;  %v599_v57 = vunpack.c.h.s8.bf16 %v547_v41  ;;  %v556_v41 = vld [vmem:[%s3888_s24 + $0xd0] sm:$0xff] }
  0x43   : > { %3307 = vmatprep.subr.bf16.mxu1 %v3661_v61  ;;  %v551_v61 = vld [vmem:[%s3888_s24 + $0xa8] sm:$0xff] }
  0x44   : > { %1815 = vperm.xlu1 %3630, %v1713_v40   ;;  %v3679_v40 = vld [vmem:[%s3997_s19 + $0x40] sm:$0xff]  }
  0x45   : > { %939 = vmatmul.mubr.bf16.gmra.mxu0 %v574_v0  ;;  %1035 = vmatmul.mubr.bf16.gmra.mxu1 %v622_v1  ;;  %v598_v0 = vunpack.c.h.s8.bf16 %v546_v51  ;;  %v584_v1 = vunpack.c.h.s8.bf16 %v540_v52  ;;  %v560_v51 = vld [vmem:[%s3888_s24 + $0xf0] sm:$0xff] }
  0x46   : > { %3308 = vmatpush3.bf16.msra.mxu1 %v3663_v3  ;;  %946 = vmatprep.mubr.bf16.mxu0 %v579_v4  ;;  %v603_v3 = vunpack.c.l.s8.bf16 %v551_v61  ;;  %v589_v4 = vunpack.c.l.s8.bf16 %v545_v62  ;;  %v620_v52 = vunpack.c.l.s8.bf16 %v560_v51 }
  0x47   : > { %3309 = vmatprep.subr.bf16.mxu1 %v3664_v5  ;;  %1075 = vmatprep.mubr.bf16.mxu1 %v565_v6  ;;  %v1724_v5 = vld [vmem:[%s3965_s18 + $0xe0] sm:$0xff]  ;;  %v1725_v6 = vld [vmem:[%s3965_s18 + $0xe8] sm:$0xff] }
  0x48   : > { %3478 = vmatpush3.bf16.msra.mxu0 %v3668_v58  ;;  %1820 = vperm.xlu0 %3629, %v1714_v43   ;;  %v585_v58 = vunpack.c.h.s8.bf16 %v541_v42  ;;  %v612_v42 = vunpack.c.l.s8.bf16 %v556_v41  ;;  %v3680_v43 = vld [vmem:[%s3997_s19 + $0x48] sm:$0xff]  }
  0x49   : > { %3479 = vmatprep.subr.bf16.mxu0 %v3669_v10  ;;  %1825 = vperm.xlu1 %3630, %v1715_v46   ;;  %v561_v46 = vld [vmem:[%s3888_s24 + $0xf8] sm:$0xff] }
  0x4a   : > { %3310 = vmatpush3.bf16.msra.mxu1 %v3665_v7  ;;  %v550_v7 = vld [vmem:[%s3888_s24 + $0xa0] sm:$0xff] }
  0x4c   : > { %3480 = vmatpush3.bf16.msra.mxu0 %v3669_v10  ;;  %1830 = vperm.xlu0 %3629, %v1716_v49   ;;  %v602_v10 = vunpack.c.l.s8.bf16 %v550_v7  ;;  %v621_v49 = vunpack.c.l.s8.bf16 %v561_v46 }
  0x4d   : > { %947 = vmatmul.mubr.bf16.gmra.mxu0 %v578_v13  ;;  %1076 = vmatmul.mubr.bf16.vlgmr.msra.gmra.mxu1 %v564_v14  ;;  %v607_v13 = vunpack.c.h.s8.bf16 %v551_v61  ;;  %v593_v14 = vunpack.c.h.s8.bf16 %v545_v62 }
  0x4e   : > { %954 = vmatprep.mubr.bf16.mxu0 %v583_v16  ;;  %1083 = vmatprep.mubr.bf16.mxu1 %v569_v17  ;;  %v606_v16 = vunpack.c.h.s8.bf16 %v550_v7  ;;  %v592_v17 = vunpack.c.h.s8.bf16 %v544_v8 }
  0x4f   : > { %3481 = vmatprep.subr.bf16.mxu0 %v3670_v18  ;;  %1835 = vperm.xlu1 %3630, %v1717_v50   ;;  %v3683_v50 = vld [vmem:[%s3997_s19 + $0x60] sm:$0xff]  }
  0x50   : > { %3482 = vmatpush3.bf16.msra.mxu0 %v3670_v18  ;;  %1840 = vperm.xlu0 %3629, %v1718_v53   ;;  %v597_v18 = vunpack.c.l.s8.bf16 %v549_v15  ;;  %v3684_v53 = vld [vmem:[%s3997_s19 + $0x68] sm:$0xff]  }
  0x53   : > { %1845 = vperm.xlu1 %3630, %v1719_v56   ;;  %v624_v56 = vunpack.c.h.s8.bf16 %v560_v51 }
  0x54   : > { %1850 = vperm.xlu0 %3629, %v1720_v59  }
  0x55   : > { %955 = vmatmul.mubr.bf16.gmra.mxu0 %v582_v24  ;;  %1084 = vmatmul.mubr.bf16.gmra.mxu1 %v568_v25  ;;  %v3673_v24 = vld [vmem:[%s3997_s19 + $0x10] sm:$0xff]   ;;  %v3781_v25 = vmov 0.0  }
  0x56   : > { %962 = vmatprep.mubr.bf16.mxu0 %v587_v27  ;;  %1091 = vmatprep.mubr.bf16.mxu1 %v573_v28  ;;  %466 = vst.msk [vmem:[#allocation2] sm:$0xff] %vm465_vm0, %v3781_v25  ;;  %467 = vst.msk [vmem:[#allocation2 + $0x8] sm:$0xff] %vm465_vm0, %v3781_v25  ;;  %v600_v27 = vunpack.c.h.s8.bf16 %v548_v20  ;;  %v3674_v28 = vld [vmem:[%s3997_s19 + $0x18] sm:$0xff]  }
  0x57   : > { %1855 = vperm.xlu1 %3630, %v1721_v60   ;;  %468 = vst.msk [vmem:[#allocation2 + $0x10] sm:$0xff] %vm465_vm0, %v3781_v25  ;;  %469 = vst.msk [vmem:[#allocation2 + $0x18] sm:$0xff] %vm465_vm0, %v3781_v25 }
  0x58   : > { %1860 = vperm.xlu0 %3629, %v1722_v63   ;;  %470 = vst.msk [vmem:[#allocation2 + $0x20] sm:$0xff] %vm465_vm0, %v3781_v25  ;;  %471 = vst.msk [vmem:[#allocation2 + $0x28] sm:$0xff] %vm465_vm0, %v3781_v25 }
  0x59   : > { %472 = vst.msk [vmem:[#allocation2 + $0x30] sm:$0xff] %vm465_vm0, %v3781_v25  ;;  %473 = vst.msk [vmem:[#allocation2 + $0x38] sm:$0xff] %vm465_vm0, %v3781_v25 }
  0x5a   : > { %474 = vst.msk [vmem:[#allocation2 + $0x40] sm:$0xff] %vm465_vm0, %v3781_v25  ;;  %475 = vst.msk [vmem:[#allocation2 + $0x48] sm:$0xff] %vm465_vm0, %v3781_v25 }
  0x5b   : > { %1865 = vperm.xlu1 %3630, %v1723_v2   ;;  %476 = vst.msk [vmem:[#allocation2 + $0x50] sm:$0xff] %vm465_vm0, %v3781_v25  ;;  %477 = vst.msk [vmem:[#allocation2 + $0x58] sm:$0xff] %vm465_vm0, %v3781_v25 }
  0x5c   : > { %1870 = vperm.xlu0 %3629, %v1724_v5   ;;  %478 = vst.msk [vmem:[#allocation2 + $0x60] sm:$0xff] %vm465_vm0, %v3781_v25  ;;  %479 = vst.msk [vmem:[#allocation2 + $0x68] sm:$0xff] %vm465_vm0, %v3781_v25 }
  0x5d   : > { %963 = vmatmul.mubr.bf16.gmra.mxu0 %v586_v35  ;;  %1092 = vmatmul.mubr.bf16.gmra.mxu1 %v572_v36  ;;  %480 = vst.msk [vmem:[#allocation2 + $0x70] sm:$0xff] %vm465_vm0, %v3781_v25  ;;  %481 = vst.msk [vmem:[#allocation2 + $0x78] sm:$0xff] %vm465_vm0, %v3781_v25  ;;  %v3677_v35 = vld [vmem:[%s3997_s19 + $0x30] sm:$0xff]   ;;  %v557_v36 = vld [vmem:[%s3888_s24 + $0xd8] sm:$0xff] }
  0x5e   : > { %970 = vmatprep.mubr.bf16.mxu0 %v591_v37  ;;  %1099 = vmatprep.mubr.bf16.mxu1 %v577_v38  ;;  %482 = vst.msk [vmem:[#allocation2 + $0x80] sm:$0xff] %vm465_vm0, %v3781_v25  ;;  %483 = vst.msk [vmem:[#allocation2 + $0x88] sm:$0xff] %vm465_vm0, %v3781_v25  ;;  %v608_v37 = vunpack.c.h.s8.bf16 %v552_v31  ;;  %v3678_v38 = vld [vmem:[%s3997_s19 + $0x38] sm:$0xff]   ;;  %v613_v39 = vunpack.c.l.s8.bf16 %v557_v36 }
  0x5f   : > { %1875 = vperm.xlu1 %3630, %v1725_v6   ;;  %484 = vst.msk [vmem:[#allocation2 + $0x90] sm:$0xff] %vm465_vm0, %v3781_v25  ;;  %485 = vst.msk [vmem:[#allocation2 + $0x98] sm:$0xff] %vm465_vm0, %v3781_v25 }
  0x60   : > { %1880 = vperm.xlu0 %3629, %v1726_v9   ;;  %486 = vst.msk [vmem:[#allocation2 + $0xa0] sm:$0xff] %vm465_vm0, %v3781_v25  ;;  %487 = vst.msk [vmem:[#allocation2 + $0xa8] sm:$0xff] %vm465_vm0, %v3781_v25 }
  0x61   : > { %488 = vst.msk [vmem:[#allocation2 + $0xb0] sm:$0xff] %vm465_vm0, %v3781_v25  ;;  %489 = vst.msk [vmem:[#allocation2 + $0xb8] sm:$0xff] %vm465_vm0, %v3781_v25 }
  0x62   : > { %490 = vst.msk [vmem:[#allocation2 + $0xc0] sm:$0xff] %vm465_vm0, %v3781_v25  ;;  %491 = vst.msk [vmem:[#allocation2 + $0xc8] sm:$0xff] %vm465_vm0, %v3781_v25 }
  0x63   : > { %1885 = vperm.xlu1 %3630, %v1727_v12   ;;  %492 = vst.msk [vmem:[#allocation2 + $0xd0] sm:$0xff] %vm465_vm0, %v3781_v25  ;;  %493 = vst.msk [vmem:[#allocation2 + $0xd8] sm:$0xff] %vm465_vm0, %v3781_v25 }
  0x64   : > { %494 = vst.msk [vmem:[#allocation2 + $0xe0] sm:$0xff] %vm465_vm0, %v3781_v25  ;;  %495 = vst.msk [vmem:[#allocation2 + $0xe8] sm:$0xff] %vm465_vm0, %v3781_v25 }
  0x65   : > { %971 = vmatmul.mubr.bf16.gmra.mxu0 %v590_v44  ;;  %1100 = vmatmul.mubr.bf16.gmra.mxu1 %v576_v45  ;;  %496 = vst.msk [vmem:[#allocation2 + $0xf0] sm:$0xff] %vm465_vm0, %v3781_v25  ;;  %497 = vst.msk [vmem:[#allocation2 + $0xf8] sm:$0xff] %vm465_vm0, %v3781_v25  ;;  %v617_v44 = vunpack.c.h.s8.bf16 %v557_v36  ;;  %v3681_v45 = vld [vmem:[%s3997_s19 + $0x50] sm:$0xff]  }
  0x66   : > { %978 = vmatprep.mubr.bf16.mxu0 %v595_v47  ;;  %1107 = vmatprep.mubr.bf16.mxu1 %v581_v48  ;;  %v616_v47 = vunpack.c.h.s8.bf16 %v556_v41  ;;  %v3682_v48 = vld [vmem:[%s3997_s19 + $0x58] sm:$0xff]  }
  0x6d   : > { %979 = vmatmul.mubr.bf16.gmra.mxu0 %v594_v54  ;;  %1108 = vmatmul.mubr.bf16.gmra.mxu1 %v580_v55  ;;  %v625_v54 = vunpack.c.h.s8.bf16 %v561_v46  ;;  %v3685_v55 = vld [vmem:[%s3997_s19 + $0x70] sm:$0xff]  }
  0x6e   : > { %986 = vmatprep.mubr.bf16.mxu0 %v599_v57  ;;  %1115 = vmatprep.mubr.bf16.mxu1 %v585_v58  ;;  %v3686_v57 = vld [vmem:[%s3997_s19 + $0x78] sm:$0xff]  }
  0x75   : > { %987 = vmatmul.mubr.bf16.gmra.mxu0 %v598_v0  ;;  %1116 = vmatmul.mubr.bf16.gmra.mxu1 %v584_v1 }
  0x76   : > { %994 = vmatprep.mubr.bf16.mxu0 %v603_v3  ;;  %1123 = vmatprep.mubr.bf16.mxu1 %v589_v4 }
  0x7d   : > { %995 = vmatmul.mubr.bf16.gmra.mxu0 %v602_v10  ;;  %1124 = vmatmul.mubr.bf16.gmra.mxu1 %v588_v11 }
  0x7e   : > { %1002 = vmatprep.mubr.bf16.mxu0 %v607_v13  ;;  %1131 = vmatprep.mubr.bf16.mxu1 %v593_v14 }
  0x85   : > { %1003 = vmatmul.mubr.bf16.gmra.mxu0 %v606_v16  ;;  %1132 = vmatmul.mubr.bf16.gmra.mxu1 %v592_v17 }
  0x86   : > { %1139 = vmatprep.mubr.bf16.mxu1 %v597_v18  ;;  %3483 = vmatprep.mubr.bf16.mxu0 %v3671_v19 }
  0x8d   : > { %1140 = vmatmul.mubr.bf16.gmra.mxu1 %v596_v21  ;;  %3484 = vmatmul.mubr.bf16.vlgmr.msra.gmra.mxu0 %v3672_v22 }
  0x8e   : > { %1147 = vmatprep.mubr.bf16.mxu1 %v601_v23  ;;  %3487 = vmatprep.mubr.bf16.mxu0 %v3673_v24 }
  0x95   : > { %1148 = vmatmul.mubr.bf16.gmra.mxu1 %v600_v27  ;;  %3488 = vmatmul.mubr.bf16.gmra.mxu0 %v3674_v28 }
  0x96   : > { %1155 = vmatprep.mubr.bf16.mxu1 %v605_v29  ;;  %3491 = vmatprep.mubr.bf16.mxu0 %v3675_v30 }
  0x9d   : > { %1156 = vmatmul.mubr.bf16.gmra.mxu1 %v604_v32  ;;  %3492 = vmatmul.mubr.bf16.gmra.mxu0 %v3676_v33 }
  0x9e   : > { %1163 = vmatprep.mubr.bf16.mxu1 %v609_v34  ;;  %3495 = vmatprep.mubr.bf16.mxu0 %v3677_v35 }
  0xa5   : > { %1164 = vmatmul.mubr.bf16.gmra.mxu1 %v608_v37  ;;  %3496 = vmatmul.mubr.bf16.gmra.mxu0 %v3678_v38 }
  0xa6   : > { %1171 = vmatprep.mubr.bf16.mxu1 %v613_v39  ;;  %3499 = vmatprep.mubr.bf16.mxu0 %v3679_v40  ;;  %v498_v40 = vld [vmem:[#allocation2] sm:$0xff] }
  0xad   : > { %1172 = vmatmul.mubr.bf16.gmra.mxu1 %v612_v42  ;;  %3500 = vmatmul.mubr.bf16.gmra.mxu0 %v3680_v43 }
  0xae   : > { %1179 = vmatprep.mubr.bf16.mxu1 %v617_v44  ;;  %3503 = vmatprep.mubr.bf16.mxu0 %v3681_v45 }
  0xb5   : > { %1180 = vmatmul.mubr.bf16.gmra.mxu1 %v616_v47  ;;  %3504 = vmatmul.mubr.bf16.gmra.mxu0 %v3682_v48 }
  0xb6   : > { %1187 = vmatprep.mubr.bf16.mxu1 %v621_v49  ;;  %3507 = vmatprep.mubr.bf16.mxu0 %v3683_v50  ;;  %v499_v49 = vld [vmem:[#allocation2 + $0x8] sm:$0xff] }
  0xbd   : > { %1188 = vmatmul.mubr.bf16.gmra.mxu1 %v620_v52  ;;  %3508 = vmatmul.mubr.bf16.gmra.mxu0 %v3684_v53 }
  0xbe   : > { %1195 = vmatprep.mubr.bf16.mxu1 %v625_v54  ;;  %3511 = vmatprep.mubr.bf16.mxu0 %v3685_v55 }
  0xc5   : > { %1196 = vmatmul.mubr.bf16.gmra.mxu1 %v624_v56  ;;  %3512 = vmatmul.mubr.bf16.gmra.mxu0 %v3686_v57 }
  0xed   : > { %v3199_v58 = vpop.f32.mrf.mxu0  ;;  %v3271_v59 = vpop.f32.mrf.mxu1 }
  0xef   : > { %v3200_v60 = vpop.f32.mrf.mxu0  ;;  %v3272_v61 = vpop.f32.mrf.mxu1 }
  0xf0   : > { %v4118_v62 = vadd.f32 %v3272_v61, %v3271_v59  ;;  %v3201_v38 = vadd.f32 %v3200_v60, %v3199_v58  ;;  %v500_v58 = vld [vmem:[#allocation2 + $0x10] sm:$0xff]  ;;  %v1731_v61 = vpop.permute.xlu0 %1730 }
  0xf1   : > { %v3202_v63 = vpop.f32.mrf.mxu0  ;;  %v3274_v0 = vpop.f32.mrf.mxu1 }
  0xf3   : > { %v3203_v1 = vpop.f32.mrf.mxu0  ;;  %v3275_v2 = vpop.f32.mrf.mxu1 }
  0xf4   : > { %v4120_v3 = vadd.f32 %v3275_v2, %v3274_v0  ;;  %v3204_v46 = vadd.f32 %v3203_v1, %v3202_v63 }
  0xf5   : > { %v3205_v4 = vpop.f32.mrf.mxu0  ;;  %v3277_v5 = vpop.f32.mrf.mxu1 }
  0xf7   : > { %v3206_v6 = vpop.f32.mrf.mxu0  ;;  %v3278_v7 = vpop.f32.mrf.mxu1 }
  0xf8   : > { %v4122_v8 = vadd.f32 %v3278_v7, %v3277_v5  ;;  %v3207_v55 = vadd.f32 %v3206_v6, %v3205_v4 }
  0xf9   : > { %v3208_v9 = vpop.f32.mrf.mxu0  ;;  %v3280_v10 = vpop.f32.mrf.mxu1 }
  0xfb   : > { %v3209_v11 = vpop.f32.mrf.mxu0  ;;  %v3281_v12 = vpop.f32.mrf.mxu1 }
  0xfc   : > { %v4124_v13 = vadd.f32 %v3281_v12, %v3280_v10  ;;  %v3210_v2 = vadd.f32 %v3209_v11, %v3208_v9  ;;  %v501_v10 = vld [vmem:[#allocation2 + $0x18] sm:$0xff]  ;;  %v1736_v9 = vpop.permute.xlu0 %1735 }
  0xfd   : > { %v4126_v14 = vpop.f32.mrf.mxu0  ;;  %v3283_v15 = vpop.f32.mrf.mxu1 }
  0xff   : > { %v4128_v16 = vpop.f32.mrf.mxu0  ;;  %v3284_v17 = vpop.f32.mrf.mxu1 }
 0x100   : > { %v4130_v18 = vadd.f32 %v3284_v17, %v3283_v15  ;;  %v4173_v15 = vld [vmem:[%s4910_s6] ss:$0 sm:$0xff]  ;;  %v3213_v11 = vadd.f32 %v4128_v16, %v4126_v14  ;;  %v3687_v14 = vld [vmem:[%s4912_s8 + $0x8] sm:$0xff]  }
 0x101   : > { %v4132_v19 = vpop.f32.mrf.mxu0  ;;  %v3286_v20 = vpop.f32.mrf.mxu1  ;;  %3515 = vmatprep.subr.bf16.mxu1 %v3687_v14 }
 0x102   : > { %3516 = vmatpush3.bf16.msra.mxu1 %v3687_v14 }
 0x103   : > { %v4134_v21 = vpop.f32.mrf.mxu0  ;;  %v3287_v22 = vpop.f32.mrf.mxu1 }
 0x104   : > { %v4136_v23 = vadd.f32 %v3287_v22, %v3286_v20 }
 0x105   : > { %v4138_v24 = vpop.f32.mrf.mxu0  ;;  %v3289_v25 = vpop.f32.mrf.mxu1 }
 0x107   : > { %v4140_v26 = vpop.f32.mrf.mxu0  ;;  %v3290_v27 = vpop.f32.mrf.mxu1 }
 0x108   : > { %v4142_v28 = vadd.f32 %v3290_v27, %v3289_v25 }
 0x109   : > { %v4144_v29 = vpop.f32.mrf.mxu0  ;;  %v3292_v30 = vpop.f32.mrf.mxu1 }
 0x10b   : > { %v4146_v31 = vpop.f32.mrf.mxu0  ;;  %v3293_v32 = vpop.f32.mrf.mxu1 }
 0x10c   : > { %v4148_v33 = vadd.f32 %v3293_v32, %v3292_v30 }
 0x10d   : > { %v4150_v34 = vpop.f32.mrf.mxu0  ;;  %v3311_v35 = vpop.f32.mrf.mxu1 }
 0x10f   : > { %v4152_v36 = vpop.f32.mrf.mxu0  ;;  %v3312_v37 = vpop.f32.mrf.mxu1 }
 0x110   : > { %v3313_v39 = vadd.f32 %v3312_v37, %v3311_v35  ;;  %v502_v35 = vld [vmem:[#allocation2 + $0x20] sm:$0xff] }
 0x111   : > { %v4154_v41 = vpop.f32.mrf.mxu0  ;;  %v3314_v42 = vpop.f32.mrf.mxu1 }
 0x112   : > { %v1078_v43 = vadd.f32 %v3313_v39, %v3201_v38 }
 0x113   : > { %v4156_v44 = vpop.f32.mrf.mxu0  ;;  %v3315_v45 = vpop.f32.mrf.mxu1 }
 0x114   : > { %v1204_v47 = vadd.f32 %v1078_v43, %v498_v40  ;;  %v3316_v48 = vadd.f32 %v3315_v45, %v3314_v42  ;;  %v1741_v40 = vpop.permute.xlu1 %1740 }
 0x115   : > { %v4158_v50 = vpop.f32.mrf.mxu0  ;;  %v3317_v51 = vpop.f32.mrf.mxu1 }
 0x116   : > { %1237 = vst.msk [vmem:[#allocation2] sm:$0xff] %vm465_vm0, %v1204_v47  ;;  %v1081_v52 = vadd.f32 %v3316_v48, %v3204_v46  ;;  %v3216_v47 = vadd.f32 %v4134_v21, %v4132_v19 }
 0x117   : > { %v4161_v53 = vpop.f32.mrf.mxu0  ;;  %v3318_v54 = vpop.f32.mrf.mxu1 }
 0x118   : > { %v1205_v56 = vadd.f32 %v1081_v52, %v499_v49  ;;  %v3319_v57 = vadd.f32 %v3318_v54, %v3317_v51  ;;  %v503_v52 = vld [vmem:[#allocation2 + $0x28] sm:$0xff] }
 0x119   : > { %v4163_v59 = vpop.f32.mrf.mxu0  ;;  %v3320_v60 = vpop.f32.mrf.mxu1 }
 0x11a   : > { %1238 = vst.msk [vmem:[#allocation2 + $0x8] sm:$0xff] %vm465_vm0, %v1205_v56  ;;  %v1086_v63 = vadd.f32 %v3319_v57, %v3207_v55 }
 0x11b   : > { %v4166_v0 = vpop.f32.mrf.mxu0  ;;  %v3321_v1 = vpop.f32.mrf.mxu1 }
 0x11c   : > { %v1206_v5 = vadd.f32 %v1086_v63, %v500_v58  ;;  %v3322_v7 = vadd.f32 %v3321_v1, %v3320_v60  ;;  %v1746_v1 = vpop.permute.xlu1 %1745 }
 0x11d   : > { %v4168_v12 = vpop.f32.mrf.mxu0  ;;  %v3323_v4 = vpop.f32.mrf.mxu1  ;;  %v1664_v6 = vld [vmem:[#allocation2] sm:$0xff] }
 0x11e   : > { %1239 = vst.msk [vmem:[#allocation2 + $0x10] sm:$0xff] %vm465_vm0, %v1206_v5  ;;  %v1089_v17 = vadd.f32 %v3322_v7, %v3210_v2  ;;  %v1888_v20 = vmul.f32 %v1731_v61, %v1664_v6  ;;  %v3219_v2 = vadd.f32 %v4140_v26, %v4138_v24 }
 0x11f   : > { %v4176_v22 = vpop.f32.mrf.mxu0  ;;  %v3324_v25 = vpop.f32.mrf.mxu1 }
 0x120   : > { %v1207_v27 = vadd.f32 %v1089_v17, %v501_v10  ;;  %v3325_v30 = vadd.f32 %v3324_v25, %v3323_v4  ;;  %v1927_v32 = vadd.f32 %v4173_v15, %v1888_v20  ;;  %v504_v4 = vld [vmem:[#allocation2 + $0x30] sm:$0xff] }
 0x121   : > { %v4181_v37 = vpop.f32.mrf.mxu0  ;;  %v3326_v38 = vpop.f32.mrf.mxu1  ;;  %v1665_v39 = vld [vmem:[#allocation2 + $0x8] sm:$0xff] }
 0x122   : > { %1240 = vst.msk [vmem:[#allocation2 + $0x18] sm:$0xff] %vm465_vm0, %v1207_v27  ;;  %v1094_v42 = vadd.f32 %v3325_v30, %v3213_v11  ;;  %v4184_v43 = vmax.f32 %v1927_v32, 0.0  ;;  %v1889_v45 = vmul.f32 %v1736_v9, %v1665_v39  ;;  %v1751_v32 = vpop.permute.xlu0 %1750 }
 0x123   : > { %v4189_v16 = vpop.f32.mrf.mxu0  ;;  %v3327_v46 = vpop.f32.mrf.mxu1 }
 0x124   : > { %v1208_v48 = vadd.f32 %v1094_v42, %v502_v35  ;;  %v3328_v49 = vadd.f32 %v3327_v46, %v3326_v38  ;;  %v2119_v51 = vmul.f32 %v4184_v43, %v4184_v43  ;;  %v1928_v56 = vadd.f32 %v4173_v15, %v1889_v45  ;;  %v505_v42 = vld [vmem:[#allocation2 + $0x38] sm:$0xff] }
 0x125   : > { %v4195_v54 = vpop.f32.mrf.mxu0  ;;  %v3329_v55 = vpop.f32.mrf.mxu1  ;;  %v1666_v57 = vld [vmem:[#allocation2 + $0x10] sm:$0xff]  ;;  %v3222_v35 = vadd.f32 %v4146_v31, %v4144_v29 }
 0x126   : > { %1241 = vst.msk [vmem:[#allocation2 + $0x20] sm:$0xff] %vm465_vm0, %v1208_v48  ;;  %v1097_v58 = vadd.f32 %v3328_v49, %v3216_v47  ;;  %v2151_v60 = vsel %vm465_vm0, %v2119_v51, 0.0  ;;  %v1890_v19 = vmul.f32 %v1741_v40, %v1666_v57  ;;  %v4202_v63 = vmax.f32 %v1928_v56, 0.0 }
 0x127   : > { %v4200_v21 = vpop.f32.mrf.mxu0  ;;  %v3330_v61 = vpop.f32.mrf.mxu1  ;;  %2152 = vadd.xlane.f32.xlu0 %v2151_v60  ;;  %v3225_v56 = vadd.f32 %v4152_v36, %v4150_v34 }
 0x128   : > { %v1209_v5 = vadd.f32 %v1097_v58, %v503_v52  ;;  %v3331_v7 = vadd.f32 %v3330_v61, %v3329_v55  ;;  %v1929_v10 = vadd.f32 %v4173_v15, %v1890_v19  ;;  %v2120_v20 = vmul.f32 %v4202_v63, %v4202_v63  ;;  %v1756_v55 = vpop.permute.xlu1 %1755  ;;  %v506_v19 = vld [vmem:[#allocation2 + $0x40] sm:$0xff] }
 0x129   : > { %v4207_v6 = vpop.f32.mrf.mxu0  ;;  %v3332_v17 = vpop.f32.mrf.mxu1  ;;  %v1667_v25 = vld [vmem:[#allocation2 + $0x18] sm:$0xff] }
 0x12a   : > { %1242 = vst.msk [vmem:[#allocation2 + $0x28] sm:$0xff] %vm465_vm0, %v1209_v5  ;;  %v1102_v9 = vadd.f32 %v3331_v7, %v3219_v2  ;;  %v4212_v11 = vmax.f32 %v1929_v10, 0.0  ;;  %v1891_v27 = vmul.f32 %v1746_v1, %v1667_v25  ;;  %v2154_v26 = vsel %vm465_vm0, %v2120_v20, 0.0  ;;  %v1761_v20 = vpop.permute.xlu0 %1760 }
 0x12b   : > { %v4214_v30 = vpop.f32.mrf.mxu0  ;;  %v3333_v24 = vpop.f32.mrf.mxu1  ;;  %2155 = vadd.xlane.f32.xlu0 %v2154_v26  ;;  %v3228_v25 = vadd.f32 %v4156_v44, %v4154_v41  ;;  %v507_v26 = vld [vmem:[#allocation2 + $0x48] sm:$0xff] }
 0x12c   : > { %v1210_v38 = vadd.f32 %v1102_v9, %v504_v4  ;;  %v3334_v39 = vadd.f32 %v3333_v24, %v3332_v17  ;;  %v2121_v40 = vmul.f32 %v4212_v11, %v4212_v11  ;;  %v1930_v46 = vadd.f32 %v4173_v15, %v1891_v27 }
 0x12d   : > { %v4221_v45 = vpop.f32.mrf.mxu0  ;;  %v3335_v14 = vpop.f32.mrf.mxu1  ;;  %v1668_v47 = vld [vmem:[#allocation2 + $0x20] sm:$0xff] }
 0x12e   : > { %1243 = vst.msk [vmem:[#allocation2 + $0x30] sm:$0xff] %vm465_vm0, %v1210_v38  ;;  %v1105_v48 = vadd.f32 %v3334_v39, %v3222_v35  ;;  %v2157_v49 = vsel %vm465_vm0, %v2121_v40, 0.0  ;;  %v1892_v51 = vmul.f32 %v1751_v32, %v1668_v47  ;;  %v4228_v52 = vmax.f32 %v1930_v46, 0.0  ;;  %v1766_v47 = vpop.permute.xlu1 %1765 }
 0x12f   : > { %v4226_v29 = vpop.f32.mrf.mxu0  ;;  %v3336_v31 = vpop.f32.mrf.mxu1  ;;  %2158 = vadd.xlane.f32.xlu1 %v2157_v49 }
 0x130   : > { %v1211_v57 = vadd.f32 %v1105_v48, %v505_v42  ;;  %v3337_v58 = vadd.f32 %v3336_v31, %v3335_v14  ;;  %v1931_v60 = vadd.f32 %v4173_v15, %v1892_v51  ;;  %v2122_v2 = vmul.f32 %v4228_v52, %v4228_v52 }
 0x131   : > { %v4233_v61 = vpop.f32.mrf.mxu0  ;;  %v3338_v1 = vpop.f32.mrf.mxu1  ;;  %v1669_v5 = vld [vmem:[#allocation2 + $0x28] sm:$0xff]  ;;  %v3231_v48 = vadd.f32 %v4161_v53, %v4158_v50 }
 0x132   : > { %1244 = vst.msk [vmem:[#allocation2 + $0x38] sm:$0xff] %vm465_vm0, %v1211_v57  ;;  %v1110_v7 = vadd.f32 %v3337_v58, %v3225_v56  ;;  %v4238_v10 = vmax.f32 %v1931_v60, 0.0  ;;  %v1893_v4 = vmul.f32 %v1756_v55, %v1669_v5  ;;  %v2160_v36 = vsel %vm465_vm0, %v2122_v2, 0.0  ;;  %v508_v55 = vld [vmem:[#allocation2 + $0x50] sm:$0xff] }
 0x133   : > { %v4240_v17 = vpop.f32.mrf.mxu0  ;;  %v3339_v34 = vpop.f32.mrf.mxu1  ;;  %2161 = vadd.xlane.f32.xlu0 %v2160_v36 }
 0x134   : > { %v1212_v9 = vadd.f32 %v1110_v7, %v506_v19  ;;  %v3340_v27 = vadd.f32 %v3339_v34, %v3338_v1  ;;  %v2123_v24 = vmul.f32 %v4238_v10, %v4238_v10  ;;  %v1932_v38 = vadd.f32 %v4173_v15, %v1893_v4  ;;  %v1771_v7 = vpop.permute.xlu0 %1770 }
 0x135   : > { %v4247_v32 = vpop.f32.mrf.mxu0  ;;  %v3341_v35 = vpop.f32.mrf.mxu1  ;;  %v1670_v39 = vld [vmem:[#allocation2 + $0x30] sm:$0xff]  ;;  %v3234_v4 = vadd.f32 %v4166_v0, %v4163_v59 }
 0x136   : > { %1245 = vst.msk [vmem:[#allocation2 + $0x40] sm:$0xff] %vm465_vm0, %v1212_v9  ;;  %v1113_v40 = vadd.f32 %v3340_v27, %v3228_v25  ;;  %v2163_v42 = vsel %vm465_vm0, %v2123_v24, 0.0  ;;  %v1894_v14 = vmul.f32 %v1761_v20, %v1670_v39  ;;  %v4254_v46 = vmax.f32 %v1932_v38, 0.0  ;;  %v509_v25 = vld [vmem:[#allocation2 + $0x58] sm:$0xff] }
 0x137   : > { %v4252_v41 = vpop.f32.mrf.mxu0  ;;  %v3342_v44 = vpop.f32.mrf.mxu1  ;;  %2164 = vadd.xlane.f32.xlu1 %v2163_v42 }
 0x138   : > { %v1213_v49 = vadd.f32 %v1113_v40, %v507_v26  ;;  %v3343_v51 = vadd.f32 %v3342_v44, %v3341_v35  ;;  %v1933_v31 = vadd.f32 %v4173_v15, %v1894_v14  ;;  %v2124_v58 = vmul.f32 %v4254_v46, %v4254_v46  ;;  %v1776_v42 = vpop.permute.xlu1 %1775 }
 0x139   : > { %v4259_v56 = vpop.f32.mrf.mxu0  ;;  %v3344_v57 = vpop.f32.mrf.mxu1  ;;  %v1671_v60 = vld [vmem:[#allocation2 + $0x38] sm:$0xff]  ;;  %v3237_v14 = vadd.f32 %v4176_v22, %v4168_v12 }
 0x13a   : > { %1246 = vst.msk [vmem:[#allocation2 + $0x48] sm:$0xff] %vm465_vm0, %v1213_v49  ;;  %v1118_v19 = vadd.f32 %v3343_v51, %v3231_v48  ;;  %v4264_v1 = vmax.f32 %v1933_v31, 0.0  ;;  %v1895_v2 = vmul.f32 %v1766_v47, %v1671_v60  ;;  %v2166_v53 = vsel %vm465_vm0, %v2124_v58, 0.0  ;;  %v510_v49 = vld [vmem:[#allocation2 + $0x60] sm:$0xff] }
 0x13b   : > { %v4266_v5 = vpop.f32.mrf.mxu0  ;;  %v3345_v50 = vpop.f32.mrf.mxu1  ;;  %2167 = vadd.xlane.f32.xlu0 %v2166_v53  ;;  %v3240_v53 = vadd.f32 %v4189_v16, %v4181_v37 }
 0x13c   : > { %v1214_v34 = vadd.f32 %v1118_v19, %v508_v55  ;;  %v3346_v36 = vadd.f32 %v3345_v50, %v3344_v57  ;;  %v2125_v20 = vmul.f32 %v4264_v1, %v4264_v1  ;;  %v1934_v24 = vadd.f32 %v4173_v15, %v1895_v2  ;;  %v1781_v50 = vpop.permute.xlu0 %1780 }
 0x13d   : > { %v4273_v9 = vpop.f32.mrf.mxu0  ;;  %v3347_v27 = vpop.f32.mrf.mxu1  ;;  %v1672_v26 = vld [vmem:[#allocation2 + $0x40] sm:$0xff] }
 0x13e   : > { %1247 = vst.msk [vmem:[#allocation2 + $0x50] sm:$0xff] %vm465_vm0, %v1214_v34  ;;  %v1121_v35 = vadd.f32 %v3346_v36, %v3234_v4  ;;  %v2169_v38 = vsel %vm465_vm0, %v2125_v20, 0.0  ;;  %v1896_v39 = vmul.f32 %v1771_v7, %v1672_v26  ;;  %v4280_v40 = vmax.f32 %v1934_v24, 0.0  ;;  %v511_v36 = vld [vmem:[#allocation2 + $0x68] sm:$0xff] }
 0x13f   : > { %v4278_v59 = vpop.f32.mrf.mxu0  ;;  %v3348_v0 = vpop.f32.mrf.mxu1  ;;  %2170 = vadd.xlane.f32.xlu1 %v2169_v38 }
 0x140   : > { %v1215_v44 = vadd.f32 %v1121_v35, %v509_v25  ;;  %v3349_v47 = vadd.f32 %v3348_v0, %v3347_v27  ;;  %v1935_v48 = vadd.f32 %v4173_v15, %v1896_v39  ;;  %v2126_v55 = vmul.f32 %v4280_v40, %v4280_v40  ;;  %v1786_v0 = vpop.permute.xlu1 %1785 }
 0x141   : > { %v4285_v51 = vpop.f32.mrf.mxu0  ;;  %v3350_v31 = vpop.f32.mrf.mxu1  ;;  %v1673_v57 = vld [vmem:[#allocation2 + $0x48] sm:$0xff] }
 0x142   : > { %1248 = vst.msk [vmem:[#allocation2 + $0x58] sm:$0xff] %vm465_vm0, %v1215_v44  ;;  %v1126_v58 = vadd.f32 %v3349_v47, %v3237_v14  ;;  %v4290_v60 = vmax.f32 %v1935_v48, 0.0  ;;  %v1897_v19 = vmul.f32 %v1776_v42, %v1673_v57  ;;  %v2172_v22 = vsel %vm465_vm0, %v2126_v55, 0.0  ;;  %v512_v48 = vld [vmem:[#allocation2 + $0x70] sm:$0xff] }
 0x143   : > { %v4292_v2 = vpop.f32.mrf.mxu0  ;;  %v3351_v12 = vpop.f32.mrf.mxu1  ;;  %2173 = vadd.xlane.f32.xlu0 %v2172_v22  ;;  %v3243_v42 = vadd.f32 %v4200_v21, %v4195_v54 }
 0x144   : > { %v1216_v7 = vadd.f32 %v1126_v58, %v510_v49  ;;  %v3352_v4 = vadd.f32 %v3351_v12, %v3350_v31  ;;  %v2127_v34 = vmul.f32 %v4290_v60, %v4290_v60  ;;  %v1936_v27 = vadd.f32 %v4173_v15, %v1897_v19 }
 0x145   : > { %v4299_v20 = vpop.f32.mrf.mxu0  ;;  %v3353_v25 = vpop.f32.mrf.mxu1  ;;  %v1674_v24 = vld [vmem:[#allocation2 + $0x50] sm:$0xff] }
 0x146   : > { %1249 = vst.msk [vmem:[#allocation2 + $0x60] sm:$0xff] %vm465_vm0, %v1216_v7  ;;  %v1129_v26 = vadd.f32 %v3352_v4, %v3240_v53  ;;  %v2175_v35 = vsel %vm465_vm0, %v2127_v34, 0.0  ;;  %v1898_v38 = vmul.f32 %v1781_v50, %v1674_v24  ;;  %v4306_v39 = vmax.f32 %v1936_v27, 0.0  ;;  %v4324_v50 = vld [vmem:[%s4909_s5] ss:$0 sm:$0xff]  ;;  %v1791_v53 = vpop.permute.xlu0 %1790 }
 0x147   : > { %v4304_v37 = vpop.f32.mrf.mxu0  ;;  %v3354_v16 = vpop.f32.mrf.mxu1  ;;  %2176 = vadd.xlane.f32.xlu1 %v2175_v35  ;;  %v3246_v7 = vadd.f32 %v4214_v30, %v4207_v6  ;;  %v3249_v30 = vadd.f32 %v4226_v29, %v4221_v45 }
 0x148   : > { %v1217_v14 = vadd.f32 %v1129_v26, %v511_v36  ;;  %v3355_v44 = vadd.f32 %v3354_v16, %v3353_v25  ;;  %v1937_v47 = vadd.f32 %v4173_v15, %v1898_v38  ;;  %v2128_v55 = vmul.f32 %v4306_v39, %v4306_v39  ;;  %v513_v25 = vld [vmem:[#allocation2 + $0x78] sm:$0xff]  ;;  %v1796_v29 = vpop.permute.xlu1 %1795 }
 0x149   : > { %v4311_v49 = vpop.f32.mrf.mxu0  ;;  %v3356_v31 = vpop.f32.mrf.mxu1  ;;  %v1675_v57 = vld [vmem:[#allocation2 + $0x58] sm:$0xff] }
 0x14a   : > { %1250 = vst.msk [vmem:[#allocation2 + $0x68] sm:$0xff] %vm465_vm0, %v1217_v14  ;;  %v1134_v58 = vadd.f32 %v3355_v44, %v3243_v42  ;;  %v4316_v19 = vmax.f32 %v1937_v47, 0.0  ;;  %v1899_v12 = vmul.f32 %v1786_v0, %v1675_v57  ;;  %v2178_v21 = vsel %vm465_vm0, %v2128_v55, 0.0  ;;  %v514_v57 = vld [vmem:[#allocation2 + $0x80] sm:$0xff] }
 0x14b   : > { %v4318_v22 = vpop.f32.mrf.mxu0  ;;  %v3357_v54 = vpop.f32.mrf.mxu1  ;;  %2179 = vadd.xlane.f32.xlu0 %v2178_v21 }
 0x14c   : > { %4945 = vst [vmem:[#allocation3_spill] sm:$0xff] %v4316_v19  ;;  %v1218_v4 = vadd.f32 %v1134_v58, %v512_v48  ;;  %v3358_v34 = vadd.f32 %v3357_v54, %v3356_v31  ;;  %v2129_v36 = vmul.f32 %v4316_v19, %v4316_v19  ;;  %v1938_v26 = vadd.f32 %v4173_v15, %v1899_v12 }
 0x14d   : > { %v3359_v27 = vpop.f32.mrf.mxu1  ;;  %v3485_v24 = vpop.f32.mrf.mxu0  ;;  %v1676_v35 = vld [vmem:[#allocation2 + $0x60] sm:$0xff] }
 0x14e   : > { %1251 = vst.msk [vmem:[#allocation2 + $0x70] sm:$0xff] %vm465_vm0, %v1218_v4  ;;  %v1137_v38 = vadd.f32 %v3358_v34, %v3246_v7  ;;  %v1514_v16 = vadd.f32 %v3485_v24, %v4324_v50  ;;  %v2181_v0 = vsel %vm465_vm0, %v2129_v36, 0.0  ;;  %v1900_v6 = vmul.f32 %v1791_v53, %v1676_v35 }
 0x14f   : > { %v3360_v42 = vpop.f32.mrf.mxu1  ;;  %v1505_v14 = vpop.f32.mrf.mxu0  ;;  %2182 = vadd.xlane.f32.xlu1 %v2181_v0  ;;  %v4336_v44 = vmax.f32 %v1938_v26, 0.0  ;;  %v3252_v36 = vadd.f32 %v4240_v17, %v4233_v61 }
 0x150   : > { %v1219_v47 = vadd.f32 %v1137_v38, %v513_v25  ;;  %v4338_v48 = vmax.f32 %v1514_v16, 0.0  ;;  %v3361_v31 = vadd.f32 %v3360_v42, %v3359_v27  ;;  %v1506_v55 = vadd.f32 %v4324_v50, %v1505_v14 }
 0x151   : > { %v3362_v58 = vpop.f32.mrf.mxu1  ;;  %v3486_v12 = vpop.f32.mrf.mxu0  ;;  %v2130_v54 = vmul.f32 %v4336_v44, %v4336_v44  ;;  %v1939_v21 = vadd.f32 %v4173_v15, %v1900_v6  ;;  %v1677_v45 = vld [vmem:[#allocation2 + $0x68] sm:$0xff] }
 0x152   : > { %1252 = vst.msk [vmem:[#allocation2 + $0x78] sm:$0xff] %vm465_vm0, %v1219_v47  ;;  %v1142_v53 = vadd.f32 %v3361_v31, %v3249_v30  ;;  %v4345_v7 = vmax.f32 %v1506_v55, 0.0  ;;  %v1517_v4 = vadd.f32 %v3486_v12, %v4324_v50  ;;  %v1993_v34 = vmul.f32 %v4338_v48, %v4338_v48  ;;  %v515_v30 = vld [vmem:[#allocation2 + $0x88] sm:$0xff] }
 0x153   : > { %v3363_v25 = vpop.f32.mrf.mxu1  ;;  %v1508_v27 = vpop.f32.mrf.mxu0  ;;  %v2184_v24 = vsel %vm465_vm0, %v2130_v54, 0.0  ;;  %v4353_v26 = vmax.f32 %v1939_v21, 0.0  ;;  %v1901_v35 = vmul.f32 %v1796_v29, %v1677_v45 }
 0x154   : > { %v1220_v38 = vadd.f32 %v1142_v53, %v514_v57  ;;  %v4355_v16 = vmax.f32 %v1517_v4, 0.0  ;;  %v3364_v0 = vadd.f32 %v3363_v25, %v3362_v58  ;;  %v1509_v6 = vadd.f32 %v4324_v50, %v1508_v27  ;;  %2185 = vadd.xlane.f32.xlu0 %v2184_v24  ;;  %v1801_v4 = vpop.permute.xlu0 %1800 }
 0x155   : > { %4946 = vst [vmem:[#allocation4_spill] sm:$0xff] %v4353_v26  ;;  %v3365_v42 = vpop.f32.mrf.mxu1  ;;  %v3489_v14 = vpop.f32.mrf.mxu0  ;;  %v2029_v47 = vsel %vm465_vm0, %v1993_v34, 0.0  ;;  %v1991_v61 = vmul.f32 %v4345_v7, %v4345_v7  ;;  %v2131_v17 = vmul.f32 %v4353_v26, %v4353_v26  ;;  %v1940_v31 = vadd.f32 %v4173_v15, %v1901_v35  ;;  %v1678_v12 = vld [vmem:[#allocation2 + $0x70] sm:$0xff] }
 0x156   : > { %1253 = vst.msk [vmem:[#allocation2 + $0x80] sm:$0xff] %vm465_vm0, %v1220_v38  ;;  %v1145_v55 = vadd.f32 %v3364_v0, %v3252_v36  ;;  %v4365_v57 = vmax.f32 %v1509_v6, 0.0  ;;  %v1530_v58 = vadd.f32 %v3489_v14, %v4324_v50  ;;  %2030 = vadd.xlane.f32.xlu1 %v2029_v47  ;;  %v1994_v29 = vmul.f32 %v4355_v16, %v4355_v16  ;;  %v516_v35 = vld [vmem:[#allocation2 + $0x90] sm:$0xff] }
 0x157   : > { %v3366_v54 = vpop.f32.mrf.mxu1  ;;  %v1521_v21 = vpop.f32.mrf.mxu0  ;;  %v2023_v45 = vsel %vm465_vm0, %v1991_v61, 0.0  ;;  %v4371_v53 = vmax.f32 %v1940_v31, 0.0  ;;  %v3255_v34 = vadd.f32 %v4252_v41, %v4247_v32  ;;  %v2187_v27 = vsel %vm465_vm0, %v2131_v17, 0.0 }
 0x158   : > { %v1221_v36 = vadd.f32 %v1145_v55, %v515_v30  ;;  %v3367_v25 = vadd.f32 %v3366_v54, %v3365_v42  ;;  %2024 = vadd.xlane.f32.xlu0 %v2023_v45  ;;  %v4376_v24 = vmax.f32 %v1530_v58, 0.0  ;;  %v1522_v38 = vadd.f32 %v4324_v50, %v1521_v21  ;;  %v1806_v31 = vpop.permute.xlu1 %1805 }
 0x159   : > { %4947 = vst [vmem:[#allocation5_spill] sm:$0xff] %v4371_v53  ;;  %v3368_v0 = vpop.f32.mrf.mxu1  ;;  %v3490_v6 = vpop.f32.mrf.mxu0  ;;  %v1992_v14 = vmul.f32 %v4365_v57, %v4365_v57  ;;  %v1902_v47 = vmul.f32 %v1801_v4, %v1678_v12  ;;  %v1679_v61 = vld [vmem:[#allocation2 + $0x78] sm:$0xff]  ;;  %v3258_v30 = vadd.f32 %v4266_v5, %v4259_v56  ;;  %v2032_v55 = vsel %vm465_vm0, %v1994_v29, 0.0 }
 0x15a   : > { %1254 = vst.msk [vmem:[#allocation2 + $0x88] sm:$0xff] %vm465_vm0, %v1221_v36  ;;  %v1150_v32 = vadd.f32 %v3367_v25, %v3255_v34  ;;  %v1533_v41 = vadd.f32 %v3490_v6, %v4324_v50  ;;  %2188 = vadd.xlane.f32.xlu1 %v2187_v27  ;;  %v2132_v58 = vmul.f32 %v4371_v53, %v4371_v53  ;;  %v4391_v34 = vmax.f32 %v1522_v38, 0.0  ;;  %v517_v36 = vld [vmem:[#allocation2 + $0x98] sm:$0xff] }
 0x15b   : > { %v3369_v42 = vpop.f32.mrf.mxu1  ;;  %v1524_v17 = vpop.f32.mrf.mxu0  ;;  %v1903_v54 = vmul.f32 %v1806_v31, %v1679_v61  ;;  %v2026_v56 = vsel %vm465_vm0, %v1992_v14, 0.0  ;;  %v1997_v29 = vmul.f32 %v4376_v24, %v4376_v24  ;;  %v1941_v27 = vadd.f32 %v4173_v15, %v1902_v47 }
 0x15c   : > { %v1222_v12 = vadd.f32 %v1150_v32, %v516_v35  ;;  %v4388_v21 = vmax.f32 %v1533_v41, 0.0  ;;  %v3370_v45 = vadd.f32 %v3369_v42, %v3368_v0  ;;  %v1525_v4 = vadd.f32 %v4324_v50, %v1524_v17  ;;  %2033 = vadd.xlane.f32.xlu0 %v2032_v55  ;;  %v518_v42 = vld [vmem:[#allocation2 + $0xa0] sm:$0xff] }
 0x15d   : > { %v3371_v25 = vpop.f32.mrf.mxu1  ;;  %v3493_v5 = vpop.f32.mrf.mxu0  ;;  %v2190_v38 = vsel %vm465_vm0, %v2132_v58, 0.0  ;;  %v1942_v14 = vadd.f32 %v4173_v15, %v1903_v54  ;;  %v3261_v32 = vadd.f32 %v4278_v59, %v4273_v9  ;;  %v2041_v55 = vsel %vm465_vm0, %v1997_v29, 0.0 }
 0x15e   : > { %1255 = vst.msk [vmem:[#allocation2 + $0x90] sm:$0xff] %vm465_vm0, %v1222_v12  ;;  %v1153_v35 = vadd.f32 %v3370_v45, %v3258_v30  ;;  %2027 = vadd.xlane.f32.xlu1 %v2026_v56  ;;  %v4398_v0 = vmax.f32 %v1525_v4, 0.0  ;;  %v1998_v31 = vmul.f32 %v4388_v21, %v4388_v21  ;;  %v1546_v30 = vadd.f32 %v3493_v5, %v4324_v50  ;;  %v1680_v4 = vld [vmem:[#allocation2 + $0x80] sm:$0xff]  ;;  %v1811_v54 = vpop.permute.xlu0 %1810 }
 0x15f   : > { %v3372_v6 = vpop.f32.mrf.mxu1  ;;  %v1537_v61 = vpop.f32.mrf.mxu0  ;;  %v1995_v58 = vmul.f32 %v4391_v34, %v4391_v34  ;;  %v4410_v45 = vmax.f32 %v1941_v27, 0.0  ;;  %v4417_v29 = vmax.f32 %v1942_v14, 0.0 }
 0x160   : > { %v1223_v41 = vadd.f32 %v1153_v35, %v517_v36  ;;  %v3373_v47 = vadd.f32 %v3372_v6, %v3371_v25  ;;  %2191 = vadd.xlane.f32.xlu0 %v2190_v38  ;;  %v2044_v25 = vsel %vm465_vm0, %v1998_v31, 0.0  ;;  %v1996_v5 = vmul.f32 %v4398_v0, %v4398_v0  ;;  %v1816_v27 = vpop.permute.xlu1 %1815  ;;  %v519_v31 = vld [vmem:[#allocation2 + $0xa8] sm:$0xff] }
 0x161   : > { %v3374_v17 = vpop.f32.mrf.mxu1  ;;  %v3494_v12 = vpop.f32.mrf.mxu0  ;;  %v1681_v35 = vld [vmem:[#allocation2 + $0x88] sm:$0xff]  ;;  %v3264_v6 = vadd.f32 %v4292_v2, %v4285_v51  ;;  %v2035_v53 = vsel %vm465_vm0, %v1995_v58, 0.0  ;;  %v2133_v14 = vmul.f32 %v4410_v45, %v4410_v45 }
 0x162   : > { %1256 = vst.msk [vmem:[#allocation2 + $0x98] sm:$0xff] %vm465_vm0, %v1223_v41  ;;  %v1158_v9 = vadd.f32 %v3373_v47, %v3261_v32  ;;  %2042 = vadd.xlane.f32.xlu1 %v2041_v55  ;;  %v1549_v59 = vadd.f32 %v3494_v12, %v4324_v50  ;;  %v1904_v32 = vmul.f32 %v1811_v54, %v1680_v4  ;;  %v4421_v47 = vmax.f32 %v1546_v30, 0.0 }
 0x163   : > { %v3375_v36 = vpop.f32.mrf.mxu1  ;;  %v1540_v56 = vpop.f32.mrf.mxu0  ;;  %v1538_v55 = vadd.f32 %v4324_v50, %v1537_v61  ;;  %v1905_v51 = vmul.f32 %v1816_v27, %v1681_v35  ;;  %v2038_v61 = vsel %vm465_vm0, %v1996_v5, 0.0  ;;  %v3267_v4 = vadd.f32 %v4304_v37, %v4299_v20 }
 0x164   : > { %v1224_v38 = vadd.f32 %v1158_v9, %v518_v42  ;;  %v3376_v41 = vadd.f32 %v3375_v36, %v3374_v17  ;;  %2045 = vadd.xlane.f32.xlu0 %v2044_v25  ;;  %v4428_v2 = vmax.f32 %v1549_v59, 0.0  ;;  %v1541_v30 = vadd.f32 %v4324_v50, %v1540_v56  ;;  %v520_v59 = vld [vmem:[#allocation2 + $0xb0] sm:$0xff] }
 0x165   : > { %v3377_v12 = vpop.f32.mrf.mxu1  ;;  %v3497_v26 = vpop.f32.mrf.mxu0  ;;  %v2134_v17 = vmul.f32 %v4417_v29, %v4417_v29  ;;  %v4437_v36 = vmax.f32 %v1538_v55, 0.0  ;;  %v2193_v56 = vsel %vm465_vm0, %v2133_v14, 0.0  ;;  %v2001_v5 = vmul.f32 %v4421_v47, %v4421_v47 }
 0x166   : > { %1257 = vst.msk [vmem:[#allocation2 + $0xa0] sm:$0xff] %vm465_vm0, %v1224_v38  ;;  %v1161_v19 = vadd.f32 %v3376_v41, %v3264_v6  ;;  %2036 = vadd.xlane.f32.xlu1 %v2035_v53  ;;  %v1943_v53 = vadd.f32 %v4173_v15, %v1904_v32  ;;  %v1944_v20 = vadd.f32 %v4173_v15, %v1905_v51  ;;  %v4444_v37 = vmax.f32 %v1541_v30, 0.0  ;;  %v521_v51 = vld [vmem:[#allocation2 + $0xb8] sm:$0xff] }
 0x167   : > { %v3378_v42 = vpop.f32.mrf.mxu1  ;;  %v1553_v58 = vpop.f32.mrf.mxu0  ;;  %v2196_v6 = vsel %vm465_vm0, %v2134_v17, 0.0  ;;  %v2002_v38 = vmul.f32 %v4428_v2, %v4428_v2  ;;  %v3270_v32 = vadd.f32 %v4318_v22, %v4311_v49  ;;  %v1562_v14 = vadd.f32 %v3497_v26, %v4324_v50  ;;  %v1682_v22 = vld [vmem:[#allocation2 + $0x90] sm:$0xff] }
 0x168   : > { %v1225_v54 = vadd.f32 %v1161_v19, %v519_v31  ;;  %v3379_v9 = vadd.f32 %v3378_v42, %v3377_v12  ;;  %2039 = vadd.xlane.f32.xlu0 %v2038_v61  ;;  %v4451_v12 = vmax.f32 %v1943_v53, 0.0  ;;  %v2053_v42 = vsel %vm465_vm0, %v2001_v5, 0.0 }
 0x169   : > { %v3380_v25 = vpop.f32.mrf.mxu1  ;;  %v3498_v35 = vpop.f32.mrf.mxu0  ;;  %v1999_v61 = vmul.f32 %v4437_v36, %v4437_v36  ;;  %v4458_v49 = vmax.f32 %v1944_v20, 0.0  ;;  %v2056_v26 = vsel %vm465_vm0, %v2002_v38, 0.0  ;;  %v2000_v53 = vmul.f32 %v4444_v37, %v4444_v37  ;;  %v1683_v20 = vld [vmem:[#allocation2 + $0x98] sm:$0xff] }
 0x16a   : > { %1258 = vst.msk [vmem:[#allocation2 + $0xa8] sm:$0xff] %vm465_vm0, %v1225_v54  ;;  %v1166_v27 = vadd.f32 %v3379_v9, %v3267_v4  ;;  %2194 = vadd.xlane.f32.xlu1 %v2193_v56  ;;  %4948 = vst [vmem:[#allocation6_spill] sm:$0xff] %v4451_v12  ;;  %v1565_v54 = vadd.f32 %v3498_v35, %v4324_v50  ;;  %v2135_v5 = vmul.f32 %v4451_v12, %v4451_v12 }
 0x16b   : > { %v3381_v19 = vpop.f32.mrf.mxu1  ;;  %v1556_v41 = vpop.f32.mrf.mxu0  ;;  %4949 = vst [vmem:[#allocation7_spill] sm:$0xff] %v4458_v49  ;;  %v1554_v35 = vadd.f32 %v4324_v50, %v1553_v58  ;;  %v2047_v38 = vsel %vm465_vm0, %v1999_v61, 0.0  ;;  %v3689_v58 = vld [vmem:[%s4911_s7 + $0x8] sm:$0xff]  }
 0x16c   : > { %v1226_v55 = vadd.f32 %v1166_v27, %v520_v59  ;;  %v3382_v31 = vadd.f32 %v3381_v19, %v3380_v25  ;;  %2197 = vadd.xlane.f32.xlu0 %v2196_v6  ;;  %v1821_v59 = vpop.permute.xlu0 %1820  ;;  %v4468_v19 = vmax.f32 %v1562_v14, 0.0  ;;  %v522_v6 = vld [vmem:[#allocation2 + $0xc0] sm:$0xff]  ;;  %v1557_v61 = vadd.f32 %v4324_v50, %v1556_v41  ;;  %3551 = vmatprep.subr.bf16.mxu0 %v3689_v58 }
 0x16d   : > { %v3383_v30 = vpop.f32.mrf.mxu1  ;;  %v3501_v17 = vpop.f32.mrf.mxu0  ;;  %v3688_v14 = vld [vmem:[%s4912_s8] sm:$0xff]   ;;  %3552 = vmatpush3.bf16.msra.mxu0 %v3689_v58 }
 0x16e   : > { %1259 = vst.msk [vmem:[#allocation2 + $0xb0] sm:$0xff] %vm465_vm0, %v1226_v55  ;;  %v1169_v4 = vadd.f32 %v3382_v31, %v3270_v32  ;;  %2054 = vadd.xlane.f32.xlu1 %v2053_v42  ;;  %v1906_v55 = vmul.f32 %v1821_v59, %v1682_v22  ;;  %v1826_v31 = vpop.permute.xlu1 %1825  ;;  %v4482_v42 = vmax.f32 %v1565_v54, 0.0  ;;  %v2050_v22 = vsel %vm465_vm0, %v2000_v53, 0.0  ;;  %3517 = vmatprep.subr.bf16.mxu1 %v3688_v14 }
 0x16f   : > { %v3384_v9 = vpop.f32.mrf.mxu1  ;;  %v4466_v27 = vpop.f32.mrf.mxu0  ;;  %v2005_v54 = vmul.f32 %v4468_v19, %v4468_v19  ;;  %3518 = vmatpush3.bf16.msra.mxu1 %v3688_v14  ;;  %v1578_v14 = vadd.f32 %v3501_v17, %v4324_v50  ;;  %v3690_v17 = vld [vmem:[%s4911_s7] sm:$0xff]  }
 0x170   : > { %v1227_v25 = vadd.f32 %v1169_v4, %v521_v51  ;;  %v3385_v56 = vadd.f32 %v3384_v9, %v3383_v30  ;;  %2057 = vadd.xlane.f32.xlu0 %v2056_v26  ;;  %v2136_v30 = vmul.f32 %v4458_v49, %v4458_v49  ;;  %v2199_v49 = vsel %vm465_vm0, %v2135_v5, 0.0  ;;  %3553 = vmatprep.subr.bf16.mxu0 %v3690_v17 }
 0x171   : > { %v3386_v32 = vpop.f32.mrf.mxu1  ;;  %v3502_v59 = vpop.f32.mrf.mxu0  ;;  %v1945_v41 = vadd.f32 %v4173_v15, %v1906_v55  ;;  %v2006_v5 = vmul.f32 %v4482_v42, %v4482_v42  ;;  %3554 = vmatpush3.bf16.msra.mxu0 %v3690_v17 }
 0x172   : > { %1260 = vst.msk [vmem:[#allocation2 + $0xb8] sm:$0xff] %vm465_vm0, %v1227_v25  ;;  %v1174_v51 = vadd.f32 %v3385_v56, %v4118_v62  ;;  %2048 = vadd.xlane.f32.xlu1 %v2047_v38  ;;  %v1907_v62 = vmul.f32 %v1826_v31, %v1683_v20  ;;  %v4486_v25 = vmax.f32 %v1554_v35, 0.0  ;;  %v523_v56 = vld [vmem:[#allocation2 + $0xc8] sm:$0xff]  ;;  %v4494_v20 = vmax.f32 %v1557_v61, 0.0 }
 0x173   : > { %v3387_v4 = vpop.f32.mrf.mxu1  ;;  %v4504_v61 = vmax.f32 %v1945_v41, 0.0 }
 0x174   : > { %v1228_v9 = vadd.f32 %v1174_v51, %v522_v6  ;;  %v3388_v26 = vadd.f32 %v3387_v4, %v3386_v32  ;;  %2051 = vadd.xlane.f32.xlu0 %v2050_v22  ;;  %v2202_v6 = vsel %vm465_vm0, %v2136_v30, 0.0  ;;  %v1946_v32 = vadd.f32 %v4173_v15, %v1907_v62  ;;  %v1572_v51 = vpop.f32.mrf.mxu0  ;;  %v524_v4 = vld [vmem:[#allocation2 + $0xd0] sm:$0xff]  ;;  %v1684_v30 = vld [vmem:[#allocation2 + $0xa0] sm:$0xff] }
 0x175   : > { %v3389_v38 = vpop.f32.mrf.mxu1  ;;  %v2003_v58 = vmul.f32 %v4486_v25, %v4486_v25 }
 0x176   : > { %1261 = vst.msk [vmem:[#allocation2 + $0xc0] sm:$0xff] %vm465_vm0, %v1228_v9  ;;  %v1177_v53 = vadd.f32 %v3388_v26, %v4120_v3  ;;  %2200 = vadd.xlane.f32.xlu1 %v2199_v49  ;;  %v2065_v49 = vsel %vm465_vm0, %v2005_v54, 0.0  ;;  %v3505_v62 = vpop.f32.mrf.mxu0  ;;  %v1831_v9 = vpop.permute.xlu0 %1830  ;;  %v1581_v26 = vadd.f32 %v3502_v59, %v4324_v50  ;;  %v2004_v54 = vmul.f32 %v4494_v20, %v4494_v20 }
 0x177   : > { %v3390_v35 = vpop.f32.mrf.mxu1  ;;  %v4515_v41 = vmax.f32 %v1946_v32, 0.0  ;;  %v1570_v59 = vadd.f32 %v4324_v50, %v4466_v27  ;;  %v2137_v32 = vmul.f32 %v4504_v61, %v4504_v61 }
 0x178   : > { %v1229_v31 = vadd.f32 %v1177_v53, %v523_v56  ;;  %v3391_v55 = vadd.f32 %v3390_v35, %v3389_v38  ;;  %2203 = vadd.xlane.f32.xlu0 %v2202_v6  ;;  %v2068_v38 = vsel %vm465_vm0, %v2006_v5, 0.0  ;;  %v1685_v53 = vld [vmem:[#allocation2 + $0xa8] sm:$0xff]  ;;  %v1908_v6 = vmul.f32 %v1831_v9, %v1684_v30 }
 0x179   : > { %v3392_v3 = vpop.f32.mrf.mxu1  ;;  %v2059_v5 = vsel %vm465_vm0, %v2003_v58, 0.0  ;;  %v2062_v9 = vsel %vm465_vm0, %v2004_v54, 0.0  ;;  %v2138_v58 = vmul.f32 %v4515_v41, %v4515_v41 }
 0x17a   : > { %1262 = vst.msk [vmem:[#allocation2 + $0xc8] sm:$0xff] %vm465_vm0, %v1229_v31  ;;  %v1182_v22 = vadd.f32 %v3391_v55, %v4122_v8  ;;  %2066 = vadd.xlane.f32.xlu1 %v2065_v49  ;;  %v1836_v31 = vpop.permute.xlu1 %1835  ;;  %v4517_v55 = vmax.f32 %v1578_v14, 0.0  ;;  %v525_v49 = vld [vmem:[#allocation2 + $0xd8] sm:$0xff]  ;;  %v4526_v14 = vmax.f32 %v1581_v26, 0.0  ;;  %v1947_v17 = vadd.f32 %v4173_v15, %v1908_v6 }
 0x17b   : > { %v3393_v56 = vpop.f32.mrf.mxu1  ;;  %v1909_v30 = vmul.f32 %v1836_v31, %v1685_v53  ;;  %v2205_v26 = vsel %vm465_vm0, %v2137_v32, 0.0 }
 0x17c   : > { %v1230_v35 = vadd.f32 %v1182_v22, %v524_v4  ;;  %v3394_v8 = vadd.f32 %v3393_v56, %v3392_v3  ;;  %2069 = vadd.xlane.f32.xlu0 %v2068_v38  ;;  %4950 = vst [vmem:[#allocation8_spill] sm:$0xff] %v4517_v55  ;;  %v1585_v3 = vpop.f32.mrf.mxu0  ;;  %v1573_v22 = vadd.f32 %v4324_v50, %v1572_v51 }
 0x17d   : > { %v3395_v12 = vpop.f32.mrf.mxu1  ;;  %v2009_v51 = vmul.f32 %v4517_v55, %v4517_v55 }
 0x17e   : > { %1263 = vst.msk [vmem:[#allocation2 + $0xd0] sm:$0xff] %vm465_vm0, %v1230_v35  ;;  %v1185_v4 = vadd.f32 %v3394_v8, %v4124_v13  ;;  %2060 = vadd.xlane.f32.xlu1 %v2059_v5  ;;  %v4533_v35 = vmax.f32 %v1570_v59, 0.0  ;;  %v526_v13 = vld [vmem:[#allocation2 + $0xe0] sm:$0xff]  ;;  %v3506_v53 = vpop.f32.mrf.mxu0  ;;  %v4541_v31 = vmax.f32 %v1573_v22, 0.0  ;;  %v2208_v59 = vsel %vm465_vm0, %v2138_v58, 0.0  ;;  %v1846_v55 = vpop.permute.xlu1 %1845 }
 0x17f   : > { %v3396_v27 = vpop.f32.mrf.mxu1 }
 0x180   : > { %v1231_v56 = vadd.f32 %v1185_v4, %v525_v49  ;;  %v3397_v38 = vadd.f32 %v3396_v27, %v3395_v12  ;;  %2063 = vadd.xlane.f32.xlu0 %v2062_v9  ;;  %v1948_v12 = vadd.f32 %v4173_v15, %v1909_v30  ;;  %v2010_v49 = vmul.f32 %v4526_v14, %v4526_v14  ;;  %v1588_v22 = vpop.f32.mrf.mxu0 }
 0x181   : > { %v3398_v8 = vpop.f32.mrf.mxu1  ;;  %v4546_v4 = vmax.f32 %v1947_v17, 0.0  ;;  %v1594_v27 = vadd.f32 %v3505_v62, %v4324_v50  ;;  %v2007_v15 = vmul.f32 %v4533_v35, %v4533_v35  ;;  %v1597_v17 = vadd.f32 %v3506_v53, %v4324_v50  ;;  %v528_v53 = vld [vmem:[#allocation2 + $0xf0] sm:$0xff] }
 0x182   : > { %1264 = vst.msk [vmem:[#allocation2 + $0xd8] sm:$0xff] %vm465_vm0, %v1231_v56  ;;  %v1190_v54 = vadd.f32 %v3397_v38, %v4130_v18  ;;  %2206 = vadd.xlane.f32.xlu1 %v2205_v26  ;;  %v527_v18 = vld [vmem:[#allocation2 + $0xe8] sm:$0xff]  ;;  %v2077_v56 = vsel %vm465_vm0, %v2009_v51, 0.0  ;;  %v4554_v58 = vmax.f32 %v1948_v12, 0.0  ;;  %v1686_v38 = vld [vmem:[#allocation2 + $0xb0] sm:$0xff]  ;;  %v2080_v62 = vsel %vm465_vm0, %v2010_v49, 0.0  ;;  %v1841_v26 = vpop.permute.xlu0 %1840 }
 0x183   : > { %v3399_v6 = vpop.f32.mrf.mxu1  ;;  %4951 = vst [vmem:[#allocation9_spill] sm:$0xff] %v4546_v4  ;;  %v4562_v12 = vmax.f32 %v1594_v27, 0.0  ;;  %v2071_v49 = vsel %vm465_vm0, %v2007_v15, 0.0  ;;  %v1589_v27 = vadd.f32 %v4324_v50, %v1588_v22  ;;  %v4582_v22 = vld [vmem:[%s4910_s6] ss:$0 sm:$0xff] }
 0x184   : > { %v1232_v5 = vadd.f32 %v1190_v54, %v526_v13  ;;  %v3400_v32 = vadd.f32 %v3399_v6, %v3398_v8  ;;  %2209 = vadd.xlane.f32.xlu0 %v2208_v59  ;;  %4952 = vst [vmem:[#allocation10_spill] sm:$0xff] %v4554_v58  ;;  %v2008_v8 = vmul.f32 %v4541_v31, %v4541_v31  ;;  %v3509_v6 = vpop.f32.mrf.mxu0  ;;  %v1687_v59 = vld [vmem:[#allocation2 + $0xb8] sm:$0xff] }
 0x185   : > { %v3401_v9 = vpop.f32.mrf.mxu1  ;;  %4953 = vst [vmem:[#allocation11_spill] sm:$0xff] %v4562_v12 }
 0x186   : > { %1265 = vst.msk [vmem:[#allocation2 + $0xe0] sm:$0xff] %vm465_vm0, %v1232_v5  ;;  %v1193_v30 = vadd.f32 %v3400_v32, %v4136_v23  ;;  %2078 = vadd.xlane.f32.xlu1 %v2077_v56  ;;  %v2139_v23 = vmul.f32 %v4546_v4, %v4546_v4  ;;  %v1586_v5 = vadd.f32 %v4324_v50, %v1585_v3  ;;  %v2074_v3 = vsel %vm465_vm0, %v2008_v8, 0.0 }
 0x187   : > { %v3402_v13 = vpop.f32.mrf.mxu1  ;;  %v1910_v56 = vmul.f32 %v1841_v26, %v1686_v38  ;;  %v1601_v38 = vpop.f32.mrf.mxu0  ;;  %v4587_v8 = vmax.f32 %v1589_v27, 0.0 }
 0x188   : > { %v1233_v51 = vadd.f32 %v1193_v30, %v527_v18  ;;  %v3403_v54 = vadd.f32 %v3402_v13, %v3401_v9  ;;  %2081 = vadd.xlane.f32.xlu0 %v2080_v62  ;;  %v2140_v9 = vmul.f32 %v4554_v58, %v4554_v58  ;;  %v4570_v30 = vmax.f32 %v1597_v17, 0.0 }
 0x189   : > { %v3404_v32 = vpop.f32.mrf.mxu1  ;;  %v1911_v62 = vmul.f32 %v1846_v55, %v1687_v59  ;;  %v4574_v26 = vmax.f32 %v1586_v5, 0.0  ;;  %v1949_v17 = vadd.f32 %v4582_v22, %v1910_v56  ;;  %4955 = vst [vmem:[#allocation13_spill] sm:$0xff] %v4587_v8 }
 0x18a   : > { %1266 = vst.msk [vmem:[#allocation2 + $0xe8] sm:$0xff] %vm465_vm0, %v1233_v51  ;;  %v1198_v18 = vadd.f32 %v3403_v54, %v4142_v28  ;;  %2072 = vadd.xlane.f32.xlu1 %v2071_v49  ;;  %4954 = vst [vmem:[#allocation12_spill] sm:$0xff] %v4570_v30  ;;  %v529_v51 = vld [vmem:[#allocation2 + $0xf8] sm:$0xff]  ;;  %v2211_v28 = vsel %vm465_vm0, %v2139_v23, 0.0  ;;  %v2013_v54 = vmul.f32 %v4562_v12, %v4562_v12  ;;  %v2214_v59 = vsel %vm465_vm0, %v2140_v9, 0.0  ;;  %v1851_v9 = vpop.permute.xlu0 %1850 }
 0x18b   : > { %v3405_v13 = vpop.f32.mrf.mxu1  ;;  %v2014_v23 = vmul.f32 %v4570_v30, %v4570_v30  ;;  %v1950_v5 = vadd.f32 %v4582_v22, %v1911_v62  ;;  %v1610_v49 = vadd.f32 %v3509_v6, %v4324_v50  ;;  %v1689_v62 = vld [vmem:[#allocation2 + $0xc8] sm:$0xff] }
 0x18c   : > { %v1234_v4 = vadd.f32 %v1198_v18, %v528_v53  ;;  %v3406_v15 = vadd.f32 %v3405_v13, %v3404_v32  ;;  %2075 = vadd.xlane.f32.xlu0 %v2074_v3  ;;  %v3510_v32 = vpop.f32.mrf.mxu0  ;;  %v2089_v56 = vsel %vm465_vm0, %v2013_v54, 0.0  ;;  %v1688_v18 = vld [vmem:[#allocation2 + $0xc0] sm:$0xff]  ;;  %v2012_v3 = vmul.f32 %v4587_v8, %v4587_v8 }
 0x18d   : > { %v1613_v27 = vadd.f32 %v3510_v32, %v4324_v50  ;;  %v2092_v13 = vsel %vm465_vm0, %v2014_v23, 0.0  ;;  %v4604_v6 = vmax.f32 %v1950_v5, 0.0  ;;  %v4606_v54 = vmax.f32 %v1610_v49, 0.0 }
 0x18e   : > { %1267 = vst.msk [vmem:[#allocation2 + $0xf0] sm:$0xff] %vm465_vm0, %v1234_v4  ;;  %v1201_v55 = vadd.f32 %v3406_v15, %v4148_v33  ;;  %2212 = vadd.xlane.f32.xlu1 %v2211_v28  ;;  %v2011_v33 = vmul.f32 %v4574_v26, %v4574_v26  ;;  %v4597_v4 = vmax.f32 %v1949_v17, 0.0  ;;  %v1604_v15 = vpop.f32.mrf.mxu0  ;;  %v1856_v28 = vpop.permute.xlu1 %1855  ;;  %v1602_v17 = vadd.f32 %v4324_v50, %v1601_v38 }
 0x18f   : > { %4957 = vst [vmem:[#allocation15_spill] sm:$0xff] %v4604_v6  ;;  %4958 = vst [vmem:[#allocation16_spill] sm:$0xff] %v4606_v54  ;;  %v4612_v32 = vmax.f32 %v1613_v27, 0.0  ;;  %v1605_v5 = vadd.f32 %v4324_v50, %v1604_v15  ;;  %v2142_v49 = vmul.f32 %v4604_v6, %v4604_v6 }
 0x190   : > { %v1235_v53 = vadd.f32 %v1201_v55, %v529_v51  ;;  %2215 = vadd.xlane.f32.xlu0 %v2214_v59  ;;  %4956 = vst [vmem:[#allocation14_spill] sm:$0xff] %v4597_v4  ;;  %v1912_v51 = vmul.f32 %v1851_v9, %v1688_v18  ;;  %v2083_v55 = vsel %vm465_vm0, %v2011_v33, 0.0  ;;  %v2141_v59 = vmul.f32 %v4597_v4, %v4597_v4  ;;  %v3513_v23 = vpop.f32.mrf.mxu0 }
 0x191   : > { %4959 = vst [vmem:[#allocation17_spill] sm:$0xff] %v4612_v32  ;;  %v4619_v18 = vmax.f32 %v1602_v17, 0.0  ;;  %v2017_v9 = vmul.f32 %v4606_v54, %v4606_v54  ;;  %v4625_v15 = vmax.f32 %v1605_v5, 0.0 }
 0x192   : > { %1268 = vst.msk [vmem:[#allocation2 + $0xf8] sm:$0xff] %vm465_vm0, %v1235_v53  ;;  %2090 = vadd.xlane.f32.xlu1 %v2089_v56  ;;  %v1913_v53 = vmul.f32 %v1856_v28, %v1689_v62  ;;  %v2086_v56 = vsel %vm465_vm0, %v2012_v3, 0.0  ;;  %v1951_v38 = vadd.f32 %v4582_v22, %v1912_v51  ;;  %v2217_v33 = vsel %vm465_vm0, %v2141_v59, 0.0  ;;  %v1617_v27 = vpop.f32.mrf.mxu0  ;;  %v1690_v62 = vld [vmem:[#allocation2 + $0xd0] sm:$0xff]  ;;  %v1861_v51 = vpop.permute.xlu0 %1860 }
 0x193   : > { %4960 = vst [vmem:[#allocation18_spill] sm:$0xff] %v4619_v18  ;;  %4961 = vst [vmem:[#allocation19_spill] sm:$0xff] %v4625_v15  ;;  %v2220_v3 = vsel %vm465_vm0, %v2142_v49, 0.0  ;;  %v2018_v28 = vmul.f32 %v4612_v32, %v4612_v32  ;;  %v1626_v59 = vadd.f32 %v3513_v23, %v4324_v50  ;;  %v1866_v5 = vpop.permute.xlu1 %1865 }
 0x194   : > { %2093 = vadd.xlane.f32.xlu0 %v2092_v13  ;;  %v1952_v13 = vadd.f32 %v4582_v22, %v1913_v53  ;;  %v4630_v17 = vmax.f32 %v1951_v38, 0.0  ;;  %v2015_v53 = vmul.f32 %v4619_v18, %v4619_v18  ;;  %v3514_v54 = vpop.f32.mrf.mxu0  ;;  %v2016_v38 = vmul.f32 %v4625_v15, %v4625_v15 }
 0x195   : > { %v1629_v32 = vadd.f32 %v3514_v54, %v4324_v50  ;;  %v4642_v23 = vmax.f32 %v1626_v59, 0.0 }
 0x196   : > { %2084 = vadd.xlane.f32.xlu1 %v2083_v55  ;;  %4962 = vst [vmem:[#allocation20_spill] sm:$0xff] %v4630_v17  ;;  %v1691_v55 = vld [vmem:[#allocation2 + $0xd8] sm:$0xff]  ;;  %v4636_v49 = vmax.f32 %v1952_v13, 0.0  ;;  %v1871_v13 = vpop.permute.xlu0 %1870  ;;  %v2098_v18 = vsel %vm465_vm0, %v2016_v38, 0.0 }
 0x197   : > { %v1915_v30 = vmul.f32 %v1866_v5, %v1691_v55  ;;  %4964 = vst [vmem:[#allocation22_spill] sm:$0xff] %v4642_v23  ;;  %v4648_v54 = vmax.f32 %v1629_v32, 0.0  ;;  %v1876_v5 = vpop.permute.xlu1 %1875 }
 0x198   : > { %2087 = vadd.xlane.f32.xlu0 %v2086_v56  ;;  %v2101_v56 = vsel %vm465_vm0, %v2017_v9, 0.0  ;;  %4963 = vst [vmem:[#allocation21_spill] sm:$0xff] %v4636_v49  ;;  %v2095_v9 = vsel %vm465_vm0, %v2015_v53, 0.0  ;;  %v2144_v55 = vmul.f32 %v4636_v49, %v4636_v49  ;;  %v1618_v53 = vadd.f32 %v4324_v50, %v1617_v27 }
 0x199   : > { %4965 = vst [vmem:[#allocation23_spill] sm:$0xff] %v4648_v54  ;;  %v1954_v59 = vadd.f32 %v4582_v22, %v1915_v30  ;;  %v2022_v30 = vmul.f32 %v4648_v54, %v4648_v54 }
 0x19a   : > { %2218 = vadd.xlane.f32.xlu1 %v2217_v33  ;;  %v1914_v33 = vmul.f32 %v1861_v51, %v1690_v62  ;;  %v2143_v62 = vmul.f32 %v4630_v17, %v4630_v17  ;;  %v1694_v17 = vld [vmem:[#allocation2 + $0xf0] sm:$0xff]  ;;  %v2226_v49 = vsel %vm465_vm0, %v2144_v55, 0.0  ;;  %v1881_v6 = vpop.permute.xlu0 %1880 }
 0x19b   : > { %v4664_v27 = vmax.f32 %v1954_v59, 0.0  ;;  %v2116_v59 = vsel %vm465_vm0, %v2022_v30, 0.0 }
 0x19c   : > { %2221 = vadd.xlane.f32.xlu0 %v2220_v3  ;;  %v2104_v3 = vsel %vm465_vm0, %v2018_v28, 0.0  ;;  %v1953_v51 = vadd.f32 %v4582_v22, %v1914_v33  ;;  %v1620_v28 = vpop.f32.mrf.mxu0  ;;  %v2223_v33 = vsel %vm465_vm0, %v2143_v62, 0.0  ;;  %v4666_v62 = vmax.f32 %v1618_v53, 0.0 }
 0x19d   : > { %v1621_v38 = vadd.f32 %v4324_v50, %v1620_v28  ;;  %4967 = vst [vmem:[#allocation25_spill] sm:$0xff] %v4664_v27  ;;  %v1886_v28 = vpop.permute.xlu1 %1885 }
 0x19e   : > { %2102 = vadd.xlane.f32.xlu1 %v2101_v56  ;;  %v1692_v56 = vld [vmem:[#allocation2 + $0xe0] sm:$0xff]  ;;  %v4658_v32 = vmax.f32 %v1953_v51, 0.0  ;;  %4968 = vst [vmem:[#allocation26_spill] sm:$0xff] %v4666_v62 }
 0x19f   : > { %v1916_v15 = vmul.f32 %v1871_v13, %v1692_v56  ;;  %v1918_v56 = vmul.f32 %v1881_v6, %v1694_v17  ;;  %v4672_v55 = vmax.f32 %v1621_v38, 0.0 }
 0x1a0   : > { %2105 = vadd.xlane.f32.xlu0 %v2104_v3  ;;  %v1693_v3 = vld [vmem:[#allocation2 + $0xe8] sm:$0xff]  ;;  %4966 = vst [vmem:[#allocation24_spill] sm:$0xff] %v4658_v32  ;;  %v2145_v50 = vmul.f32 %v4658_v32, %v4658_v32 }
 0x1a1   : > { %v1955_v13 = vadd.f32 %v4582_v22, %v1916_v15  ;;  %4969 = vst [vmem:[#allocation27_spill] sm:$0xff] %v4672_v55  ;;  %v1957_v6 = vadd.f32 %v4582_v22, %v1918_v56 }
 0x1a2   : > { %2096 = vadd.xlane.f32.xlu1 %v2095_v9  ;;  %v2021_v9 = vmul.f32 %v4642_v23, %v4642_v23  ;;  %v1695_v23 = vld [vmem:[#allocation2 + $0xf8] sm:$0xff] }
 0x1a3   : > { %v1919_v53 = vmul.f32 %v1886_v28, %v1695_v23  ;;  %v4681_v15 = vmax.f32 %v1955_v13, 0.0 }
 0x1a4   : > { %2099 = vadd.xlane.f32.xlu0 %v2098_v18  ;;  %v1917_v18 = vmul.f32 %v1876_v5, %v1693_v3  ;;  %v2113_v51 = vsel %vm465_vm0, %v2021_v9, 0.0  ;;  %v2146_v5 = vmul.f32 %v4664_v27, %v4664_v27  ;;  %v2229_v3 = vsel %vm465_vm0, %v2145_v50, 0.0 }
 0x1a5   : > { %4970 = vst [vmem:[#allocation28_spill] sm:$0xff] %v4681_v15  ;;  %v2020_v9 = vmul.f32 %v4672_v55, %v4672_v55  ;;  %v1958_v23 = vadd.f32 %v4582_v22, %v1919_v53 }
 0x1a6   : > { %2224 = vadd.xlane.f32.xlu1 %v2223_v33  ;;  %v2019_v33 = vmul.f32 %v4666_v62, %v4666_v62  ;;  %v2232_v17 = vsel %vm465_vm0, %v2146_v5, 0.0 }
 0x1a7   : > { %v2110_v50 = vsel %vm465_vm0, %v2020_v9, 0.0  ;;  %v4698_v56 = vmax.f32 %v1958_v23, 0.0 }
 0x1a8   : > { %2227 = vadd.xlane.f32.xlu0 %v2226_v49  ;;  %v1956_v49 = vadd.f32 %v4582_v22, %v1917_v18  ;;  %v2107_v30 = vsel %vm465_vm0, %v2019_v33, 0.0  ;;  %v2147_v18 = vmul.f32 %v4681_v15, %v4681_v15 }
 0x1a9   : > { %4973 = vst [vmem:[#allocation31_spill] sm:$0xff] %v4698_v56  ;;  %v2150_v5 = vmul.f32 %v4698_v56, %v4698_v56 }
 0x1aa   : > { %2114 = vadd.xlane.f32.xlu1 %v2113_v51  ;;  %v4687_v38 = vmax.f32 %v1956_v49, 0.0  ;;  %v4693_v51 = vmax.f32 %v1957_v6, 0.0  ;;  %v2235_v28 = vsel %vm465_vm0, %v2147_v18, 0.0 }
 0x1ab   : > { %v2244_v53 = vsel %vm465_vm0, %v2150_v5, 0.0 }
 0x1ac   : > { %2117 = vadd.xlane.f32.xlu0 %v2116_v59  ;;  %4971 = vst [vmem:[#allocation29_spill] sm:$0xff] %v4687_v38  ;;  %4972 = vst [vmem:[#allocation30_spill] sm:$0xff] %v4693_v51  ;;  %v2148_v13 = vmul.f32 %v4687_v38, %v4687_v38  ;;  %v2149_v22 = vmul.f32 %v4693_v51, %v4693_v51 }
 0x1ae   : > { %2230 = vadd.xlane.f32.xlu1 %v2229_v3  ;;  %v2238_v59 = vsel %vm465_vm0, %v2148_v13, 0.0  ;;  %v2241_v49 = vsel %vm465_vm0, %v2149_v22, 0.0 }
 0x1b0   : > { %2233 = vadd.xlane.f32.xlu0 %v2232_v17  ;;  %v2153_v3 = vpop.xlane.xlu0 %2152 }
 0x1b2   : > { %2108 = vadd.xlane.f32.xlu1 %v2107_v30 }
 0x1b4   : > { %2111 = vadd.xlane.f32.xlu0 %v2110_v50  ;;  %v2156_v33 = vpop.xlane.xlu0 %2155 }
 0x1b6   : > { %2236 = vadd.xlane.f32.xlu1 %v2235_v28 }
 0x1b8   : > { %2239 = vadd.xlane.f32.xlu0 %v2238_v59  ;;  %v2159_v6 = vpop.xlane.xlu1 %2158 }
 0x1ba   : > { %2242 = vadd.xlane.f32.xlu1 %v2241_v49 }
 0x1bc   : > { %2245 = vadd.xlane.f32.xlu0 %v2244_v53  ;;  %v2162_v17 = vpop.xlane.xlu0 %2161 }
 0x1c0   : > { %v2165_v9 = vpop.xlane.xlu1 %2164 }
 0x1c4   : > { %v2168_v23 = vpop.xlane.xlu0 %2167 }
 0x1c8   : > { %v2171_v30 = vpop.xlane.xlu1 %2170 }
 0x1cc   : > { %v2174_v18 = vpop.xlane.xlu0 %2173 }
 0x1d0   : > { %v2177_v50 = vpop.xlane.xlu1 %2176 }
 0x1d4   : > { %v4708_v13 = vpop.xlane.xlu0 %2179 }
 0x1d8   : > { %v2183_v28 = vpop.xlane.xlu1 %2182 }
 0x1dd   : > { %v2186_v54 = vpop.xlane.xlu0 %2185 }
 0x1df   : > { %v2031_v59 = vpop.xlane.xlu1 %2030 }
 0x1e0   : > { %v2249_v49 = vadd.f32 %v2159_v6, %v2031_v59 }
 0x1e1   : > { %v2025_v56 = vpop.xlane.xlu0 %2024 }
 0x1e2   : > { %v2247_v22 = vadd.f32 %v2153_v3, %v2025_v56  ;;  %v2281_v62 = vmax.f32 %v2249_v49, 1e-24 }
 0x1e3   : > { %v4710_v51 = vpop.xlane.xlu1 %2188 }
 0x1e4   : > { %v2279_v5 = vmax.f32 %v2247_v22, 1e-24 }
 0x1e5   : > { %v2034_v53 = vpop.xlane.xlu0 %2033 }
 0x1e6   : > { %v2250_v55 = vadd.f32 %v2162_v17, %v2034_v53  ;;  %3691 = vrsqrt.f32 %v2279_v5 }
 0x1e7   : > { %v2028_v38 = vpop.xlane.xlu1 %2027 }
 0x1e8   : > { %v2282_v15 = vmax.f32 %v2250_v55, 1e-24  ;;  %v2248_v27 = vadd.f32 %v2156_v33, %v2028_v38 }
 0x1e9   : > { %v4712_v32 = vpop.xlane.xlu0 %2191 }
 0x1ea   : > { %3693 = vrsqrt.f32 %v2282_v15  ;;  %v2280_v12 = vmax.f32 %v2248_v27, 1e-24 }
 0x1eb   : > { %3695 = vrsqrt.f32 %v2281_v62  ;;  %v2043_v4 = vpop.xlane.xlu1 %2042 }
 0x1ec   : > { %3697 = vrsqrt.f32 %v2280_v12  ;;  %v2253_v56 = vadd.f32 %v2171_v30, %v2043_v4 }
 0x1ed   : > { %v2046_v8 = vpop.xlane.xlu0 %2045 }
 0x1ee   : > { %v2254_v3 = vadd.f32 %v2174_v18, %v2046_v8  ;;  %v2285_v17 = vmax.f32 %v2253_v56, 1e-24 }
 0x1ef   : > { %v2037_v6 = vpop.xlane.xlu1 %2036 }
 0x1f0   : > { %v2286_v59 = vmax.f32 %v2254_v3, 1e-24  ;;  %v2251_v22 = vadd.f32 %v2165_v9, %v2037_v6 }
 0x1f1   : > { %v2040_v58 = vpop.xlane.xlu0 %2039 }
 0x1f2   : > { %v2283_v49 = vmax.f32 %v2251_v22, 1e-24  ;;  %3699 = vrsqrt.f32 %v2286_v59  ;;  %v2252_v55 = vadd.f32 %v2168_v23, %v2040_v58 }
 0x1f3   : > { %v2195_v38 = vpop.xlane.xlu1 %2194  ;;  %v3692_v15 = vpop.eup %3691 }
 0x1f4   : > { %3701 = vrsqrt.f32 %v2283_v49  ;;  %v2284_v33 = vmax.f32 %v2252_v55, 1e-24  ;;  %v2391_v18 = vmul.f32 %v3692_v15, %v4184_v43  ;;  %v2343_v59 = vmul.f32 %v3692_v15, %v4345_v7 }
 0x1f5   : > { %v2198_v5 = vpop.xlane.xlu0 %2197  ;;  %3703 = vrsqrt.f32 %v2285_v17 }
 0x1f6   : > { %3705 = vrsqrt.f32 %v2284_v33 }
 0x1f7   : > { %v3694_v27 = vpop.eup %3693  ;;  %v2055_v12 = vpop.xlane.xlu1 %2054 }
 0x1f8   : > { %v3696_v62 = vpop.eup %3695  ;;  %v2394_v8 = vmul.f32 %v3694_v27, %v4228_v52  ;;  %v2257_v30 = vadd.f32 %v2183_v28, %v2055_v12  ;;  %v2346_v53 = vmul.f32 %v3694_v27, %v4355_v16 }
 0x1f9   : > { %v3698_v4 = vpop.eup %3697  ;;  %v2058_v9 = vpop.xlane.xlu0 %2057  ;;  %v2393_v3 = vmul.f32 %v3696_v62, %v4212_v11  ;;  %v2345_v22 = vmul.f32 %v3696_v62, %v4338_v48 }
 0x1fa   : > { %v2258_v58 = vadd.f32 %v2186_v54, %v2058_v9  ;;  %v2392_v23 = vmul.f32 %v3698_v4, %v4202_v63  ;;  %v2344_v56 = vmul.f32 %v3698_v4, %v4365_v57  ;;  %v2289_v49 = vmax.f32 %v2257_v30, 1e-24 }
 0x1fb   : > { %v2049_v6 = vpop.xlane.xlu1 %2048  ;;  %v2424_v33 = vpack.c.bf16 %v2394_v8, %v2393_v3  ;;  %v2376_v63 = vpack.c.bf16 %v2346_v53, %v2345_v22 }
 0x1fc   : > { %v2290_v17 = vmax.f32 %v2258_v58, 1e-24  ;;  %v2255_v52 = vadd.f32 %v2177_v50, %v2049_v6  ;;  %v2423_v28 = vpack.c.bf16 %v2392_v23, %v2391_v18  ;;  %v2375_v43 = vpack.c.bf16 %v2344_v56, %v2343_v59 }
 0x1fd   : > { %v2052_v55 = vpop.xlane.xlu0 %2051 }
 0x1fe   : > { %v2287_v16 = vmax.f32 %v2255_v52, 1e-24  ;;  %v2256_v54 = vadd.f32 %v4708_v13, %v2052_v55  ;;  %3519 = vmatprep.mubr.msk.bf16.mxu1 %vm465_vm0, %v2423_v28  ;;  %3707 = vrsqrt.f32 %v2290_v17  ;;  %3555 = vmatprep.mubr.msk.bf16.mxu0 %vm465_vm0, %v2375_v43 }
 0x1ff   : > { %v4725_v11 = vpop.xlane.xlu1 %2200  ;;  %3520 = vmatmul.mubr.msk.bf16.vlgmr.msra.gmra.mxu1 %vm465_vm0, %v2424_v33  ;;  %v3700_v48 = vpop.eup %3699  ;;  %3556 = vmatmul.mubr.msk.bf16.vlgmr.msra.gmra.mxu0 %vm465_vm0, %v2376_v63 }
 0x200   : > { %3709 = vrsqrt.f32 %v2287_v16  ;;  %v2288_v7 = vmax.f32 %v2256_v54, 1e-24  ;;  %v2398_v62 = vmul.f32 %v3700_v48, %v4280_v40  ;;  %v2350_v4 = vmul.f32 %v3700_v48, %v4388_v21 }
 0x201   : > { %v3702_v57 = vpop.eup %3701  ;;  %3711 = vrsqrt.f32 %v2289_v49  ;;  %v4729_v50 = vpop.xlane.xlu0 %2203 }
 0x202   : > { %3713 = vrsqrt.f32 %v2288_v7  ;;  %v3704_v13 = vpop.eup %3703  ;;  %v2395_v12 = vmul.f32 %v3702_v57, %v4238_v10  ;;  %v2347_v18 = vmul.f32 %v3702_v57, %v4391_v34  ;;  %v4974_v7 = vld [vmem:[#allocation3_spill] sm:$0xff] }
 0x203   : > { %v2067_v15 = vpop.xlane.xlu1 %2066  ;;  %v3706_v27 = vpop.eup %3705  ;;  %v2397_v23 = vmul.f32 %v3704_v13, %v4264_v1  ;;  %v2349_v56 = vmul.f32 %v3704_v13, %v4376_v24 }
 0x204   : > { %v2261_v8 = vadd.f32 %v2195_v38, %v2067_v15  ;;  %v2396_v9 = vmul.f32 %v3706_v27, %v4254_v46  ;;  %v2348_v53 = vmul.f32 %v3706_v27, %v4398_v0 }
 0x205   : > { %v2070_v30 = vpop.xlane.xlu0 %2069  ;;  %v2426_v21 = vpack.c.bf16 %v2398_v62, %v2397_v23  ;;  %v2378_v38 = vpack.c.bf16 %v2350_v4, %v2349_v56 }
 0x206   : > { %v2262_v58 = vadd.f32 %v2198_v5, %v2070_v30  ;;  %v2425_v6 = vpack.c.bf16 %v2396_v9, %v2395_v12  ;;  %v2377_v10 = vpack.c.bf16 %v2348_v53, %v2347_v18  ;;  %v2293_v22 = vmax.f32 %v2261_v8, 1e-24 }
 0x207   : > { %v2061_v3 = vpop.xlane.xlu1 %2060 }
 0x208   : > { %v2294_v59 = vmax.f32 %v2262_v58, 1e-24  ;;  %v2259_v40 = vadd.f32 %v4710_v51, %v2061_v3  ;;  %3523 = vmatprep.mubr.msk.bf16.mxu1 %vm465_vm0, %v2425_v6  ;;  %3559 = vmatprep.mubr.msk.bf16.mxu0 %vm465_vm0, %v2377_v10  ;;  %v4975_v6 = vld [vmem:[#allocation4_spill] sm:$0xff] }
 0x209   : > { %v2064_v46 = vpop.xlane.xlu0 %2063  ;;  %3524 = vmatmul.mubr.msk.bf16.gmra.mxu1 %vm465_vm0, %v2426_v21  ;;  %3560 = vmatmul.mubr.msk.bf16.gmra.mxu0 %vm465_vm0, %v2378_v38 }
 0x20a   : > { %v2291_v34 = vmax.f32 %v2259_v40, 1e-24  ;;  %v2260_v1 = vadd.f32 %v4712_v32, %v2064_v46  ;;  %3715 = vrsqrt.f32 %v2294_v59  ;;  %v4976_v59 = vld [vmem:[#allocation5_spill] sm:$0xff] }
 0x20b   : > { %v2207_v24 = vpop.xlane.xlu1 %2206  ;;  %v3708_v0 = vpop.eup %3707 }
 0x20c   : > { %3717 = vrsqrt.f32 %v2291_v34  ;;  %v2292_v51 = vmax.f32 %v2260_v1, 1e-24  ;;  %v2402_v55 = vmul.f32 %v3708_v0, %v4336_v44  ;;  %v2354_v43 = vmul.f32 %v3708_v0, %v4428_v2 }
 0x20d   : > { %v3710_v5 = vpop.eup %3709  ;;  %3719 = vrsqrt.f32 %v2293_v22  ;;  %v2210_v17 = vpop.xlane.xlu0 %2209 }
 0x20e   : > { %v3712_v52 = vpop.eup %3711  ;;  %3721 = vrsqrt.f32 %v2292_v51  ;;  %v2399_v33 = vmul.f32 %v3710_v5, %v4290_v60  ;;  %v2351_v16 = vmul.f32 %v3710_v5, %v4437_v36 }
 0x20f   : > { %v3714_v28 = vpop.eup %3713  ;;  %v2079_v49 = vpop.xlane.xlu1 %2078  ;;  %v2401_v57 = vmul.f32 %v3712_v52, %v4974_v7  ;;  %v2353_v13 = vmul.f32 %v3712_v52, %v4421_v47 }
 0x210   : > { %v2400_v32 = vmul.f32 %v3714_v28, %v4306_v39  ;;  %v2352_v54 = vmul.f32 %v3714_v28, %v4444_v37  ;;  %v2265_v63 = vadd.f32 %v2207_v24, %v2079_v49 }
 0x211   : > { %v2082_v48 = vpop.xlane.xlu0 %2081  ;;  %v2428_v62 = vpack.c.bf16 %v2402_v55, %v2401_v57  ;;  %v2380_v2 = vpack.c.bf16 %v2354_v43, %v2353_v13  ;;  %v4978_v13 = vld [vmem:[#allocation7_spill] sm:$0xff] }
 0x212   : > { %v2266_v15 = vadd.f32 %v2210_v17, %v2082_v48  ;;  %v2427_v27 = vpack.c.bf16 %v2400_v32, %v2399_v33  ;;  %v2379_v12 = vpack.c.bf16 %v2352_v54, %v2351_v16  ;;  %v2297_v39 = vmax.f32 %v2265_v63, 1e-24  ;;  %v4977_v16 = vld [vmem:[#allocation6_spill] sm:$0xff] }
 0x213   : > { %v2073_v44 = vpop.xlane.xlu1 %2072 }
 0x214   : > { %v2298_v4 = vmax.f32 %v2266_v15, 1e-24  ;;  %v2263_v60 = vadd.f32 %v4725_v11, %v2073_v44  ;;  %3527 = vmatprep.mubr.msk.bf16.mxu1 %vm465_vm0, %v2427_v27  ;;  %3563 = vmatprep.mubr.msk.bf16.mxu0 %vm465_vm0, %v2379_v12 }
 0x215   : > { %3528 = vmatmul.mubr.msk.bf16.gmra.mxu1 %vm465_vm0, %v2428_v62  ;;  %3564 = vmatmul.mubr.msk.bf16.gmra.mxu0 %vm465_vm0, %v2380_v2  ;;  %v2076_v36 = vpop.xlane.xlu0 %2075  ;;  %v4979_v62 = vld [vmem:[#allocation8_spill] sm:$0xff] }
 0x216   : > { %v2295_v47 = vmax.f32 %v2263_v60, 1e-24  ;;  %v2264_v37 = vadd.f32 %v4729_v50, %v2076_v36  ;;  %3723 = vrsqrt.f32 %v2298_v4 }
 0x217   : > { %v2213_v8 = vpop.xlane.xlu1 %2212  ;;  %v3716_v30 = vpop.eup %3715 }
 0x218   : > { %3725 = vrsqrt.f32 %v2295_v47  ;;  %v2296_v9 = vmax.f32 %v2264_v37, 1e-24  ;;  %v2406_v56 = vmul.f32 %v3716_v30, %v4417_v29  ;;  %v2358_v3 = vmul.f32 %v3716_v30, %v4482_v42 }
 0x219   : > { %v3718_v18 = vpop.eup %3717  ;;  %3727 = vrsqrt.f32 %v2297_v39  ;;  %v2216_v11 = vpop.xlane.xlu0 %2215 }
 0x21a   : > { %v3720_v53 = vpop.eup %3719  ;;  %3729 = vrsqrt.f32 %v2296_v9  ;;  %v2403_v10 = vmul.f32 %v3718_v18, %v4975_v6  ;;  %v2355_v40 = vmul.f32 %v3718_v18, %v4486_v25  ;;  %v4980_v18 = vld [vmem:[#allocation9_spill] sm:$0xff] }
 0x21b   : > { %v3722_v58 = vpop.eup %3721  ;;  %v2091_v23 = vpop.xlane.xlu1 %2090  ;;  %v2405_v22 = vmul.f32 %v3720_v53, %v4410_v45  ;;  %v2357_v46 = vmul.f32 %v3720_v53, %v4468_v19 }
 0x21c   : > { %v2404_v50 = vmul.f32 %v3722_v58, %v4976_v59  ;;  %v2356_v21 = vmul.f32 %v3722_v58, %v4494_v20 }
 0x21d   : > { %v2094_v38 = vpop.xlane.xlu0 %2093  ;;  %v2430_v0 = vpack.c.bf16 %v2406_v56, %v2405_v22  ;;  %v2382_v29 = vpack.c.bf16 %v2358_v3, %v2357_v46  ;;  %v4982_v3 = vld [vmem:[#allocation13_spill] sm:$0xff]  ;;  %v4983_v22 = vld [vmem:[#allocation14_spill] sm:$0xff] }
 0x21e   : > { %v2429_v34 = vpack.c.bf16 %v2404_v50, %v2403_v10  ;;  %v2381_v1 = vpack.c.bf16 %v2356_v21, %v2355_v40 }
 0x21f   : > { %v2085_v24 = vpop.xlane.xlu1 %2084 }
 0x220   : > { %v2267_v51 = vadd.f32 %v2213_v8, %v2085_v24  ;;  %3531 = vmatprep.mubr.msk.bf16.mxu1 %vm465_vm0, %v2429_v34  ;;  %3567 = vmatprep.mubr.msk.bf16.mxu0 %vm465_vm0, %v2381_v1  ;;  %v4984_v34 = vld [vmem:[#allocation11_spill] sm:$0xff] }
 0x221   : > { %3532 = vmatmul.mubr.msk.bf16.gmra.mxu1 %vm465_vm0, %v2430_v0  ;;  %3568 = vmatmul.mubr.msk.bf16.gmra.mxu0 %vm465_vm0, %v2382_v29  ;;  %v2088_v42 = vpop.xlane.xlu0 %2087  ;;  %v4986_v29 = vld [vmem:[#allocation12_spill] sm:$0xff] }
 0x222   : > { %v2299_v25 = vmax.f32 %v2267_v51, 1e-24  ;;  %v2268_v20 = vadd.f32 %v2216_v11, %v2088_v42 }
 0x223   : > { %v2219_v45 = vpop.xlane.xlu1 %2218  ;;  %v3724_v5 = vpop.eup %3723 }
 0x224   : > { %3731 = vrsqrt.f32 %v2299_v25  ;;  %v2300_v19 = vmax.f32 %v2268_v20, 1e-24  ;;  %v2269_v17 = vadd.f32 %v2219_v45, %v2091_v23  ;;  %v2410_v48 = vmul.f32 %v3724_v5, %v4515_v41  ;;  %v4981_v23 = vld [vmem:[#allocation10_spill] sm:$0xff] }
 0x225   : > { %v3726_v52 = vpop.eup %3725  ;;  %v2222_v28 = vpop.xlane.xlu0 %2221  ;;  %v2362_v7 = vmul.f32 %v3724_v5, %v4526_v14 }
 0x226   : > { %v3728_v49 = vpop.eup %3727  ;;  %3733 = vrsqrt.f32 %v2300_v19  ;;  %v2301_v55 = vmax.f32 %v2269_v17, 1e-24  ;;  %v2270_v43 = vadd.f32 %v2222_v28, %v2094_v38  ;;  %v2407_v54 = vmul.f32 %v3726_v52, %v4977_v16 }
 0x227   : > { %v3730_v33 = vpop.eup %3729  ;;  %v2103_v32 = vpop.xlane.xlu1 %2102  ;;  %v2359_v63 = vmul.f32 %v3726_v52, %v4533_v35  ;;  %v2409_v44 = vmul.f32 %v3728_v49, %v4504_v61  ;;  %v2361_v2 = vmul.f32 %v3728_v49, %v4979_v62  ;;  %v4990_v62 = vld [vmem:[#allocation19_spill] sm:$0xff] }
 0x228   : > { %3735 = vrsqrt.f32 %v2301_v55  ;;  %v2302_v57 = vmax.f32 %v2270_v43, 1e-24  ;;  %v2408_v15 = vmul.f32 %v3730_v33, %v4978_v13  ;;  %v2360_v27 = vmul.f32 %v3730_v33, %v4541_v31  ;;  %v4988_v13 = vld [vmem:[#allocation21_spill] sm:$0xff] }
 0x229   : > { %v2106_v12 = vpop.xlane.xlu0 %2105  ;;  %v2432_v35 = vpack.c.bf16 %v2410_v48, %v2409_v44  ;;  %v2384_v36 = vpack.c.bf16 %v2362_v7, %v2361_v2 }
 0x22a   : > { %3737 = vrsqrt.f32 %v2302_v57  ;;  %v2431_v4 = vpack.c.bf16 %v2408_v15, %v2407_v54  ;;  %v2383_v60 = vpack.c.bf16 %v2360_v27, %v2359_v63  ;;  %v4987_v63 = vld [vmem:[#allocation20_spill] sm:$0xff] }
 0x22b   : > { %v2097_v39 = vpop.xlane.xlu1 %2096 }
 0x22c   : > { %3535 = vmatprep.mubr.msk.bf16.mxu1 %vm465_vm0, %v2431_v4  ;;  %3571 = vmatprep.mubr.msk.bf16.mxu0 %vm465_vm0, %v2383_v60 }
 0x22d   : > { %3536 = vmatmul.mubr.msk.bf16.gmra.mxu1 %vm465_vm0, %v2432_v35  ;;  %3572 = vmatmul.mubr.msk.bf16.gmra.mxu0 %vm465_vm0, %v2384_v36  ;;  %v2100_v41 = vpop.xlane.xlu0 %2099 }
 0x22f   : > { %v2225_v14 = vpop.xlane.xlu1 %2224 }
 0x230   : > { %v2271_v31 = vadd.f32 %v2225_v14, %v2097_v39 }
 0x231   : > { %v3732_v61 = vpop.eup %3731  ;;  %v2228_v47 = vpop.xlane.xlu0 %2227 }
 0x232   : > { %v2303_v37 = vmax.f32 %v2271_v31, 1e-24  ;;  %v2272_v8 = vadd.f32 %v2228_v47, %v2100_v41  ;;  %v2411_v11 = vmul.f32 %v3732_v61, %v4980_v18  ;;  %v2363_v53 = vmul.f32 %v3732_v61, %v4574_v26  ;;  %v4985_v26 = vld [vmem:[#allocation15_spill] sm:$0xff]  ;;  %v4991_v31 = vld [vmem:[#allocation24_spill] sm:$0xff]  ;;  %v4992_v47 = vld [vmem:[#allocation25_spill] sm:$0xff] }
 0x233   : > { %v3734_v30 = vpop.eup %3733  ;;  %v2115_v9 = vpop.xlane.xlu1 %2114 }
 0x234   : > { %3739 = vrsqrt.f32 %v2303_v37  ;;  %v2304_v58 = vmax.f32 %v2272_v8, 1e-24  ;;  %v2412_v56 = vmul.f32 %v3734_v30, %v4981_v23  ;;  %v2364_v6 = vmul.f32 %v3734_v30, %v4982_v3  ;;  %v4993_v8 = vld [vmem:[#allocation16_spill] sm:$0xff] }
 0x235   : > { %v3736_v10 = vpop.eup %3735  ;;  %v2118_v59 = vpop.xlane.xlu0 %2117 }
 0x236   : > { %3741 = vrsqrt.f32 %v2304_v58  ;;  %v2433_v50 = vpack.c.bf16 %v2412_v56, %v2411_v11  ;;  %v2385_v40 = vpack.c.bf16 %v2364_v6, %v2363_v53  ;;  %v2413_v46 = vmul.f32 %v3736_v10, %v4983_v22  ;;  %v4995_v56 = vld [vmem:[#allocation28_spill] sm:$0xff]  ;;  %v4996_v6 = vld [vmem:[#allocation29_spill] sm:$0xff] }
 0x237   : > { %v3738_v21 = vpop.eup %3737  ;;  %v2231_v38 = vpop.xlane.xlu1 %2230  ;;  %v2365_v1 = vmul.f32 %v3736_v10, %v4984_v34 }
 0x238   : > { %v2273_v24 = vadd.f32 %v2231_v38, %v2103_v32  ;;  %3539 = vmatprep.mubr.msk.bf16.mxu1 %vm465_vm0, %v2433_v50  ;;  %3575 = vmatprep.mubr.msk.bf16.mxu0 %vm465_vm0, %v2385_v40  ;;  %v2414_v0 = vmul.f32 %v3738_v21, %v4985_v26  ;;  %v2366_v51 = vmul.f32 %v3738_v21, %v4986_v29  ;;  %v4998_v40 = vld [vmem:[#allocation27_spill] sm:$0xff]  ;;  %v5001_v29 = vld [vmem:[#allocation22_spill] sm:$0xff] }
 0x239   : > { %v2234_v42 = vpop.xlane.xlu0 %2233  ;;  %v5000_v26 = vld [vmem:[#allocation31_spill] sm:$0xff] }
 0x23a   : > { %v2305_v25 = vmax.f32 %v2273_v24, 1e-24  ;;  %v2274_v20 = vadd.f32 %v2234_v42, %v2106_v12  ;;  %v2434_v45 = vpack.c.bf16 %v2414_v0, %v2413_v46  ;;  %v2386_v5 = vpack.c.bf16 %v2366_v51, %v2365_v1  ;;  %v4989_v12 = vld [vmem:[#allocation18_spill] sm:$0xff]  ;;  %v5002_v42 = vld [vmem:[#allocation23_spill] sm:$0xff] }
 0x23b   : > { %v2109_v19 = vpop.xlane.xlu1 %2108  ;;  %v4999_v1 = vld [vmem:[#allocation30_spill] sm:$0xff] }
 0x23c   : > { %3743 = vrsqrt.f32 %v2305_v25  ;;  %v2306_v17 = vmax.f32 %v2274_v20, 1e-24  ;;  %3540 = vmatmul.mubr.msk.bf16.gmra.mxu1 %vm465_vm0, %v2434_v45  ;;  %3576 = vmatmul.mubr.msk.bf16.gmra.mxu0 %vm465_vm0, %v2386_v5 }
 0x23d   : > { %v2112_v52 = vpop.xlane.xlu0 %2111 }
 0x23e   : > { %3745 = vrsqrt.f32 %v2306_v17  ;;  %v4822_v17 = vld [vmem:[%s4913_s9] ss:$0 sm:$0xff] }
 0x23f   : > { %v2237_v28 = vpop.xlane.xlu1 %2236 }
 0x240   : > { %v2275_v49 = vadd.f32 %v2237_v28, %v2109_v19 }
 0x241   : > { %v3740_v55 = vpop.eup %3739  ;;  %v2240_v43 = vpop.xlane.xlu0 %2239 }
 0x242   : > { %v2307_v33 = vmax.f32 %v2275_v49, 1e-24  ;;  %v2276_v32 = vadd.f32 %v2240_v43, %v2112_v52  ;;  %v2415_v48 = vmul.f32 %v3740_v55, %v4987_v63  ;;  %v2367_v44 = vmul.f32 %v3740_v55, %v4989_v12 }
 0x243   : > { %v3742_v16 = vpop.eup %3741  ;;  %v2243_v54 = vpop.xlane.xlu1 %2242 }
 0x244   : > { %3747 = vrsqrt.f32 %v2307_v33  ;;  %v2308_v7 = vmax.f32 %v2276_v32, 1e-24  ;;  %v2277_v57 = vadd.f32 %v2243_v54, %v2115_v9  ;;  %v2416_v15 = vmul.f32 %v3742_v16, %v4988_v13  ;;  %v4994_v9 = vld [vmem:[#allocation17_spill] sm:$0xff] }
 0x245   : > { %v2246_v27 = vpop.xlane.xlu0 %2245  ;;  %v2368_v2 = vmul.f32 %v3742_v16, %v4990_v62 }
 0x246   : > { %3749 = vrsqrt.f32 %v2308_v7  ;;  %v2309_v4 = vmax.f32 %v2277_v57, 1e-24  ;;  %v2278_v60 = vadd.f32 %v2246_v27, %v2118_v59  ;;  %v2435_v39 = vpack.c.bf16 %v2416_v15, %v2415_v48  ;;  %v4997_v59 = vld [vmem:[#allocation26_spill] sm:$0xff] }
 0x247   : > { %v2387_v35 = vpack.c.bf16 %v2368_v2, %v2367_v44 }
 0x248   : > { %3751 = vrsqrt.f32 %v2309_v4  ;;  %v2310_v36 = vmax.f32 %v2278_v60, 1e-24  ;;  %3543 = vmatprep.mubr.msk.bf16.mxu1 %vm465_vm0, %v2435_v39 }
 0x249   : > { %v3744_v41 = vpop.eup %3743  ;;  %3579 = vmatprep.mubr.msk.bf16.mxu0 %vm465_vm0, %v2387_v35 }
 0x24a   : > { %3753 = vrsqrt.f32 %v2310_v36  ;;  %v2417_v61 = vmul.f32 %v3744_v41, %v4991_v31  ;;  %v2369_v30 = vmul.f32 %v3744_v41, %v4993_v8 }
 0x24b   : > { %v3746_v14 = vpop.eup %3745 }
 0x24c   : > { %v2418_v37 = vmul.f32 %v3746_v14, %v4992_v47  ;;  %v2370_v18 = vmul.f32 %v3746_v14, %v4994_v9 }
 0x24e   : > { %v2436_v11 = vpack.c.bf16 %v2418_v37, %v2417_v61  ;;  %v2388_v53 = vpack.c.bf16 %v2370_v18, %v2369_v30 }
 0x250   : > { %3544 = vmatmul.mubr.msk.bf16.gmra.mxu1 %vm465_vm0, %v2436_v11  ;;  %3580 = vmatmul.mubr.msk.bf16.gmra.mxu0 %vm465_vm0, %v2388_v53 }
 0x251   : > { %v3748_v58 = vpop.eup %3747 }
 0x252   : > { %v2419_v3 = vmul.f32 %v3748_v58, %v4995_v56  ;;  %v2371_v50 = vmul.f32 %v3748_v58, %v4997_v59 }
 0x253   : > { %v3750_v23 = vpop.eup %3749 }
 0x254   : > { %v2420_v10 = vmul.f32 %v3750_v23, %v4996_v6  ;;  %v2372_v21 = vmul.f32 %v3750_v23, %v4998_v40 }
 0x255   : > { %v3752_v38 = vpop.eup %3751 }
 0x256   : > { %v2437_v22 = vpack.c.bf16 %v2420_v10, %v2419_v3  ;;  %v2389_v46 = vpack.c.bf16 %v2372_v21, %v2371_v50  ;;  %v2421_v24 = vmul.f32 %v3752_v38, %v4999_v1  ;;  %v2373_v51 = vmul.f32 %v3752_v38, %v5001_v29 }
 0x257   : > { %v3754_v34 = vpop.eup %3753 }
 0x258   : > { %3547 = vmatprep.mubr.msk.bf16.mxu1 %vm465_vm0, %v2437_v22  ;;  %3583 = vmatprep.mubr.msk.bf16.mxu0 %vm465_vm0, %v2389_v46  ;;  %v2422_v0 = vmul.f32 %v3754_v34, %v5000_v26  ;;  %v2374_v25 = vmul.f32 %v3754_v34, %v5002_v42 }
 0x25a   : > { %v2438_v20 = vpack.c.bf16 %v2422_v0, %v2421_v24  ;;  %v2390_v45 = vpack.c.bf16 %v2374_v25, %v2373_v51 }
 0x25c   : > { %3548 = vmatmul.mubr.msk.bf16.gmra.mxu1 %vm465_vm0, %v2438_v20  ;;  %3584 = vmatmul.mubr.msk.bf16.gmra.mxu0 %vm465_vm0, %v2390_v45 }
 0x2bf   : > { %v3521_v5 = vpop.f32.mrf.mxu1  ;;  %v3557_v19 = vpop.f32.mrf.mxu0 }
 0x2c0   : > { %v2771_v52 = vadd.f32 %v3557_v19, %v3521_v5 }
 0x2c1   : > { %v2541_v28 = vpop.f32.mrf.mxu1  ;;  %v2762_v49 = vpop.f32.mrf.mxu0 }
 0x2c2   : > { %v2898_v55 = vadd.f32 %v4822_v17, %v2771_v52  ;;  %v2763_v43 = vadd.f32 %v2762_v49, %v2541_v28 }
 0x2c3   : > { %v3522_v33 = vpop.f32.mrf.mxu1  ;;  %v3558_v32 = vpop.f32.mrf.mxu0 }
 0x2c4   : > { %2930 = vst [vmem:[%s4829_s25 + $0x10] sm:$0xff] %v2898_v55  ;;  %v2896_v16 = vadd.f32 %v4822_v17, %v2763_v43  ;;  %v2774_v54 = vadd.f32 %v3558_v32, %v3522_v33 }
 0x2c5   : > { %v2544_v63 = vpop.f32.mrf.mxu1  ;;  %v2765_v48 = vpop.f32.mrf.mxu0 }
 0x2c6   : > { %2928 = vst [vmem:[%s4829_s25] sm:$0xff] %v2896_v16  ;;  %v2899_v7 = vadd.f32 %v4822_v17, %v2774_v54  ;;  %v2766_v57 = vadd.f32 %v2765_v48, %v2544_v63 }
 0x2c8   : > { %2931 = vst [vmem:[%s4829_s25 + $0x18] sm:$0xff] %v2899_v7  ;;  %v2897_v13 = vadd.f32 %v4822_v17, %v2766_v57 }
 0x2c9   : > { %v3525_v15 = vpop.f32.mrf.mxu1  ;;  %v3561_v27 = vpop.f32.mrf.mxu0 }
 0x2ca   : > { %2929 = vst [vmem:[%s4829_s25 + $0x8] sm:$0xff] %v2897_v13  ;;  %v2787_v12 = vadd.f32 %v3561_v27, %v3525_v15 }
 0x2cb   : > { %v2557_v44 = vpop.f32.mrf.mxu1  ;;  %v2778_v62 = vpop.f32.mrf.mxu0 }
 0x2cc   : > { %v2902_v2 = vadd.f32 %v4822_v17, %v2787_v12  ;;  %v2779_v4 = vadd.f32 %v2778_v62, %v2557_v44 }
 0x2cd   : > { %v3526_v60 = vpop.f32.mrf.mxu1  ;;  %v3562_v39 = vpop.f32.mrf.mxu0 }
 0x2ce   : > { %2934 = vst [vmem:[%s4829_s25 + $0x30] sm:$0xff] %v2902_v2  ;;  %v2900_v35 = vadd.f32 %v4822_v17, %v2779_v4  ;;  %v2790_v36 = vadd.f32 %v3562_v39, %v3526_v60 }
 0x2cf   : > { %v2560_v41 = vpop.f32.mrf.mxu1  ;;  %v2781_v14 = vpop.f32.mrf.mxu0 }
 0x2d0   : > { %2932 = vst [vmem:[%s4829_s25 + $0x20] sm:$0xff] %v2900_v35  ;;  %v2903_v31 = vadd.f32 %v4822_v17, %v2790_v36  ;;  %v2782_v61 = vadd.f32 %v2781_v14, %v2560_v41 }
 0x2d2   : > { %2935 = vst [vmem:[%s4829_s25 + $0x38] sm:$0xff] %v2903_v31  ;;  %v2901_v47 = vadd.f32 %v4822_v17, %v2782_v61 }
 0x2d4   : > { %2933 = vst [vmem:[%s4829_s25 + $0x28] sm:$0xff] %v2901_v47 }
 0x2d5   : > { %v3529_v37 = vpop.f32.mrf.mxu1  ;;  %v3565_v8 = vpop.f32.mrf.mxu0 }
 0x2d6   : > { %v2803_v30 = vadd.f32 %v3565_v8, %v3529_v37 }
 0x2d7   : > { %v2573_v9 = vpop.f32.mrf.mxu1  ;;  %v2794_v18 = vpop.f32.mrf.mxu0 }
 0x2d8   : > { %v2906_v11 = vadd.f32 %v4822_v17, %v2803_v30  ;;  %v2795_v53 = vadd.f32 %v2794_v18, %v2573_v9 }
 0x2d9   : > { %v3530_v58 = vpop.f32.mrf.mxu1  ;;  %v3566_v23 = vpop.f32.mrf.mxu0 }
 0x2da   : > { %2938 = vst [vmem:[%s4829_s25 + $0x50] sm:$0xff] %v2906_v11  ;;  %v2904_v56 = vadd.f32 %v4822_v17, %v2795_v53  ;;  %v2806_v3 = vadd.f32 %v3566_v23, %v3530_v58 }
 0x2db   : > { %v2576_v6 = vpop.f32.mrf.mxu1  ;;  %v2797_v10 = vpop.f32.mrf.mxu0 }
 0x2dc   : > { %2936 = vst [vmem:[%s4829_s25 + $0x40] sm:$0xff] %v2904_v56  ;;  %v2907_v59 = vadd.f32 %v4822_v17, %v2806_v3  ;;  %v2798_v50 = vadd.f32 %v2797_v10, %v2576_v6 }
 0x2de   : > { %2939 = vst [vmem:[%s4829_s25 + $0x58] sm:$0xff] %v2907_v59  ;;  %v2905_v40 = vadd.f32 %v4822_v17, %v2798_v50 }
 0x2e0   : > { %2937 = vst [vmem:[%s4829_s25 + $0x48] sm:$0xff] %v2905_v40 }
 0x2e1   : > { %v3533_v21 = vpop.f32.mrf.mxu1  ;;  %v3569_v38 = vpop.f32.mrf.mxu0 }
 0x2e2   : > { %v2819_v22 = vadd.f32 %v3569_v38, %v3533_v21 }
 0x2e3   : > { %v2589_v46 = vpop.f32.mrf.mxu1  ;;  %v2810_v34 = vpop.f32.mrf.mxu0 }
 0x2e4   : > { %v2910_v1 = vadd.f32 %v4822_v17, %v2819_v22  ;;  %v2811_v24 = vadd.f32 %v2810_v34, %v2589_v46 }
 0x2e5   : > { %v3534_v26 = vpop.f32.mrf.mxu1  ;;  %v3570_v0 = vpop.f32.mrf.mxu0 }
 0x2e6   : > { %2942 = vst [vmem:[%s4829_s25 + $0x70] sm:$0xff] %v2910_v1  ;;  %v2908_v29 = vadd.f32 %v4822_v17, %v2811_v24  ;;  %v2822_v51 = vadd.f32 %v3570_v0, %v3534_v26 }
 0x2e7   : > { %v2592_v42 = vpop.f32.mrf.mxu1  ;;  %v2813_v25 = vpop.f32.mrf.mxu0 }
 0x2e8   : > { %2940 = vst [vmem:[%s4829_s25 + $0x60] sm:$0xff] %v2908_v29  ;;  %v2911_v20 = vadd.f32 %v4822_v17, %v2822_v51  ;;  %v2814_v45 = vadd.f32 %v2813_v25, %v2592_v42 }
 0x2ea   : > { %2943 = vst [vmem:[%s4829_s25 + $0x78] sm:$0xff] %v2911_v20  ;;  %v2909_v5 = vadd.f32 %v4822_v17, %v2814_v45 }
 0x2ec   : > { %2941 = vst [vmem:[%s4829_s25 + $0x68] sm:$0xff] %v2909_v5 }
 0x2ed   : > { %v3537_v19 = vpop.f32.mrf.mxu1  ;;  %v3573_v52 = vpop.f32.mrf.mxu0 }
 0x2ee   : > { %v2835_v28 = vadd.f32 %v3573_v52, %v3537_v19 }
 0x2ef   : > { %v2605_v49 = vpop.f32.mrf.mxu1  ;;  %v2826_v55 = vpop.f32.mrf.mxu0 }
 0x2f0   : > { %v2914_v43 = vadd.f32 %v4822_v17, %v2835_v28  ;;  %v2827_v33 = vadd.f32 %v2826_v55, %v2605_v49 }
 0x2f1   : > { %v3538_v32 = vpop.f32.mrf.mxu1  ;;  %v3574_v16 = vpop.f32.mrf.mxu0 }
 0x2f2   : > { %2946 = vst [vmem:[%s4829_s25 + $0x90] sm:$0xff] %v2914_v43  ;;  %v2912_v54 = vadd.f32 %v4822_v17, %v2827_v33  ;;  %v2838_v63 = vadd.f32 %v3574_v16, %v3538_v32 }
 0x2f3   : > { %v2608_v48 = vpop.f32.mrf.mxu1  ;;  %v2829_v7 = vpop.f32.mrf.mxu0 }
 0x2f4   : > { %2944 = vst [vmem:[%s4829_s25 + $0x80] sm:$0xff] %v2912_v54  ;;  %v2915_v57 = vadd.f32 %v4822_v17, %v2838_v63  ;;  %v2830_v13 = vadd.f32 %v2829_v7, %v2608_v48 }
 0x2f6   : > { %2947 = vst [vmem:[%s4829_s25 + $0x98] sm:$0xff] %v2915_v57  ;;  %v2913_v15 = vadd.f32 %v4822_v17, %v2830_v13 }
 0x2f8   : > { %2945 = vst [vmem:[%s4829_s25 + $0x88] sm:$0xff] %v2913_v15 }
 0x2fc   : > { %v3541_v27 = vpop.f32.mrf.mxu1  ;;  %v3577_v12 = vpop.f32.mrf.mxu0 }
 0x2fd   : > { %v2851_v44 = vadd.f32 %v3577_v12, %v3541_v27 }
 0x2fe   : > { %v2621_v62 = vpop.f32.mrf.mxu1  ;;  %v2842_v2 = vpop.f32.mrf.mxu0 }
 0x2ff   : > { %v2918_v4 = vadd.f32 %v4822_v17, %v2851_v44  ;;  %v2843_v60 = vadd.f32 %v2842_v2, %v2621_v62 }
 0x300   : > { %v3542_v39 = vpop.f32.mrf.mxu1  ;;  %v3578_v35 = vpop.f32.mrf.mxu0 }
 0x301   : > { %2950 = vst [vmem:[%s4829_s25 + $0xb0] sm:$0xff] %v2918_v4  ;;  %v2916_v36 = vadd.f32 %v4822_v17, %v2843_v60  ;;  %v2854_v41 = vadd.f32 %v3578_v35, %v3542_v39 }
 0x302   : > { %v2624_v14 = vpop.f32.mrf.mxu1  ;;  %v2845_v31 = vpop.f32.mrf.mxu0 }
 0x303   : > { %2948 = vst [vmem:[%s4829_s25 + $0xa0] sm:$0xff] %v2916_v36  ;;  %v2919_v61 = vadd.f32 %v4822_v17, %v2854_v41  ;;  %v2846_v47 = vadd.f32 %v2845_v31, %v2624_v14 }
 0x305   : > { %2951 = vst [vmem:[%s4829_s25 + $0xb8] sm:$0xff] %v2919_v61  ;;  %v2917_v37 = vadd.f32 %v4822_v17, %v2846_v47 }
 0x307   : > { %2949 = vst [vmem:[%s4829_s25 + $0xa8] sm:$0xff] %v2917_v37 }
 0x310   : > { %v3545_v8 = vpop.f32.mrf.mxu1  ;;  %v3581_v30 = vpop.f32.mrf.mxu0 }
 0x311   : > { %v2867_v9 = vadd.f32 %v3581_v30, %v3545_v8 }
 0x312   : > { %v2637_v18 = vpop.f32.mrf.mxu1  ;;  %v2858_v11 = vpop.f32.mrf.mxu0 }
 0x313   : > { %v2922_v53 = vadd.f32 %v4822_v17, %v2867_v9  ;;  %v2859_v58 = vadd.f32 %v2858_v11, %v2637_v18 }
 0x314   : > { %v3546_v23 = vpop.f32.mrf.mxu1  ;;  %v3582_v56 = vpop.f32.mrf.mxu0 }
 0x315   : > { %2954 = vst [vmem:[%s4829_s25 + $0xd0] sm:$0xff] %v2922_v53  ;;  %v2920_v3 = vadd.f32 %v4822_v17, %v2859_v58  ;;  %v2870_v6 = vadd.f32 %v3582_v56, %v3546_v23 }
 0x316   : > { %v2640_v10 = vpop.f32.mrf.mxu1  ;;  %v2861_v59 = vpop.f32.mrf.mxu0 }
 0x317   : > { %2952 = vst [vmem:[%s4829_s25 + $0xc0] sm:$0xff] %v2920_v3  ;;  %v2923_v50 = vadd.f32 %v4822_v17, %v2870_v6  ;;  %v2862_v40 = vadd.f32 %v2861_v59, %v2640_v10 }
 0x319   : > { %2955 = vst [vmem:[%s4829_s25 + $0xd8] sm:$0xff] %v2923_v50  ;;  %v2921_v21 = vadd.f32 %v4822_v17, %v2862_v40 }
 0x31b   : > { %2953 = vst [vmem:[%s4829_s25 + $0xc8] sm:$0xff] %v2921_v21 }
 0x31c   : > { %v3549_v38 = vpop.f32.mrf.mxu1  ;;  %v3585_v22 = vpop.f32.mrf.mxu0 }
 0x31d   : > { %v2883_v46 = vadd.f32 %v3585_v22, %v3549_v38 }
 0x31e   : > { %v2653_v34 = vpop.f32.mrf.mxu1  ;;  %v2874_v1 = vpop.f32.mrf.mxu0 }
 0x31f   : > { %v2926_v24 = vadd.f32 %v4822_v17, %v2883_v46  ;;  %v2875_v26 = vadd.f32 %v2874_v1, %v2653_v34 }
 0x320   : > { %v3550_v0 = vpop.f32.mrf.mxu1  ;;  %v3586_v29 = vpop.f32.mrf.mxu0 }
 0x321   : > { %2958 = vst [vmem:[%s4829_s25 + $0xf0] sm:$0xff] %v2926_v24  ;;  %v2924_v51 = vadd.f32 %v4822_v17, %v2875_v26  ;;  %v2886_v42 = vadd.f32 %v3586_v29, %v3550_v0 }
 0x322   : > { %v2656_v25 = vpop.f32.mrf.mxu1  ;;  %v2877_v20 = vpop.f32.mrf.mxu0 }
 0x323   : > { %2956 = vst [vmem:[%s4829_s25 + $0xe0] sm:$0xff] %v2924_v51  ;;  %v2927_v45 = vadd.f32 %v4822_v17, %v2886_v42  ;;  %v2878_v5 = vadd.f32 %v2877_v20, %v2656_v25 }
 0x325   : > { %2959 = vst [vmem:[%s4829_s25 + $0xf8] sm:$0xff] %v2927_v45  ;;  %v2925_v19 = vadd.f32 %v4822_v17, %v2878_v5 }
 0x327   : > { %2957 = vst [vmem:[%s4829_s25 + $0xe8] sm:$0xff] %v2925_v19 }
 0x328 PF: > { %s20_s15 = sadd.s32 1, %s3778_s15   ;;  %s5003_s13 = smov %s3774_s14 }
 0x329   : > { %p17_p6 = scmp.ge.s32.totalorder %s20_s15, 4   ;;  %s5004_s14 = smov %s5006_s16 }
 0x32b   :  { %19 = sbr.rel (!%p17_p6) target bundleno = 2 (0x2), region = 107 }

// kernel: net_forward.2
= control target key start
LH: loop header
LB: loop body
LE: loop exit
PB: predicated region body
PF: predicated region fallthrough
CT: control target
= control target key end

     0   :  { %s3748_s30 = smov 0   ;;  %s3750_s10 = smov 0   ;;  %s4346_s0 = inlined_call_operand.vmem [shape: s8[512,512], index: 0, kind: input, shape index: {}]   ;;  %s4347_s1 = inlined_call_operand.vmem [shape: bf16[512,16], index: 1, kind: input, shape index: {}, may-alias: {1,2}]   ;;  %s4348_s2 = inlined_call_operand.vmem [shape: bf16[512,16], index: 2, kind: input, shape index: {}, may-alias: {1,2}]   ;;  %s4349_s3 = inlined_call_operand.vmem [shape: f32[512,1], index: 3, kind: input, shape index: {}]   ;;  %s4350_s4 = inlined_call_operand.vmem [shape: bf16[16,128], index: 4, kind: input, shape index: {}]   ;;  %s4351_s5 = inlined_call_operand.vmem [shape: bf16[16,128], index: 5, kind: input, shape index: {}]   ;;  %s4352_s6 = inlined_call_operand.vmem [shape: f32[1,128], index: 6, kind: input, shape index: {}]   ;;  %s4353_s7 = inlined_call_operand.vmem [shape: bf16[128,32], index: 7, kind: input, shape index: {}]   ;;  %s4354_s8 = inlined_call_operand.vmem [shape: bf16[512,128], index: 8, kind: output, shape index: {0}]   ;;  %s4355_s9 = inlined_call_operand.vmem [shape: bf16[512,32], index: 9, kind: output, shape index: {1}]  }
   0x1   :  { %s3752_s11 = smov 0  }
   0x2 LB: > { %s32_s12 = sadd.s32 1, %s3690_s10  ;;  %p2843_p0 = scmp.ge.s32.totalorder %s3694_s11, 1  ;;  %s3694_s11 = sphi %s3752_s11, %s20_s11   ;;  %s3690_s10 = sphi %s3750_s10, %s4357_s10   ;;  %s3686_s30 = sphi %s3748_s30, %s4356_s30  }
   0x3   : > { %p34_p1 = scmp.ge.s32.totalorder %s32_s12, 2  ;;  %p344_p2 = scmp.lt.s32.totalorder %s3694_s11, 3 }
   0x5   : > { %s4359_s12 = smov (%p34_p1, %s32_s12), 0  ;;  %p345_p3 = pnand %p2843_p0, %p344_p2 }
   0x6   : > { %s2844_s15 = sshll.u32 (!%p345_p3), %s3686_s30, 3  ;;  %s2847_s14 = sshll.u32 (!%p345_p3), %s3686_s30, 5 }
   0x7   : > { %348 = sbr.rel (%p345_p3) target bundleno = 824 (0x338), region = 52  ;;  %p407_p4 = scmp.lt.s32.totalorder (!%p345_p3), %s2844_s15, 15 }
   0x8   : > { %p424_p5 = scmp.lt.s32.totalorder (!%p345_p3), %s2847_s14, 63 }
   0xc   : > { %v3614_v0 = vld [vmem:[%s4347_s1 + $0x78] sm:$0xff]   ;;  %v3616_v2 = vld [vmem:[%s4347_s1 + $0x70] sm:$0xff]   ;;  %v3618_v4 = vld [vmem:[%s4347_s1 + $0x68] sm:$0xff]   ;;  %s4361_s15 = smov (!%p407_p4, %s2844_s15), 15  ;;  %v3696_v15 = vmov 0   ;;  %s4363_s14 = smov (!%p424_p5, %s2847_s14), 63 }
   0xd   : > { %v3615_v1 = vld [vmem:[%s4347_s1 + $0x38] sm:$0xff]   ;;  %3570 = vmatprep.subr.bf16.mxu1 %v3614_v0  ;;  %3172 = vmatprep.subr.bf16.mxu0 %v3614_v0  ;;  %v3617_v3 = vld [vmem:[%s4347_s1 + $0x30] sm:$0xff]   ;;  %v3619_v5 = vld [vmem:[%s4347_s1 + $0x28] sm:$0xff]   ;;  %s3012_s28 = sshll.u32 %s4361_s15, 5  ;;  %s2850_s25 = sshll.u32 %s4363_s14, 3  ;;  %vm452_vm0 = vcmask 130048  }
   0xe   : > { %3578 = vmatpush3.bf16.msra.mxu1 %v3615_v1  ;;  %3173 = vmatpush3.bf16.msra.mxu0 %v3615_v1  ;;  %v3620_v6 = vld [vmem:[%s4347_s1 + $0x60] sm:$0xff]   ;;  %v3622_v8 = vld [vmem:[%s4347_s1 + $0x58] sm:$0xff]   ;;  %s3799_s19 = scalar_lea.vmem %s4346_s0, %s3012_s28  ;;  %v3624_v10 = vld [vmem:[%s4347_s1 + $0x50] sm:$0xff]   ;;  %s3849_s13 = scalar_lea.vmem %s4349_s3, %s2850_s25  ;;  %vm2661_vm1 = vcmask 257024  }
   0xf   : > { %3571 = vmatprep.subr.bf16.mxu1 %v3616_v2  ;;  %3174 = vmatprep.subr.bf16.mxu0 %v3616_v2  ;;  %v3621_v7 = vld [vmem:[%s4347_s1 + $0x20] sm:$0xff]   ;;  %v3623_v9 = vld [vmem:[%s4347_s1 + $0x18] sm:$0xff]   ;;  %v542_v11 = vld [vmem:[%s3799_s19 + $0xc8] sm:$0xff]  ;;  %s3980_s25 = sshll.u32 %s4363_s14, 2 }
  0x10   : > { %v598_v12 = vunpack.c.l.s8.bf16 %v542_v11  ;;  %v3625_v13 = vld [vmem:[%s4347_s1 + $0x10] sm:$0xff]   ;;  %v3626_v14 = vld [vmem:[%s4347_s1 + $0x48] sm:$0xff]   ;;  %3612 = vset.pattern.permute.xlu0 %v3696_v15  ;;  %3613 = vset.pattern.permute.xlu1 %v3696_v15  ;;  %v3628_v17 = vld [vmem:[%s4347_s1 + $0x40] sm:$0xff]   ;;  %v602_v22 = vunpack.c.h.s8.bf16 %v542_v11  ;;  %s3986_s28 = scalar_lea.vmem %s4348_s2, %s3980_s25  ;;  %s4221_s16 = scalar_lea.vmem %s4354_s8, %s3980_s25 }
  0x11   : > { %v3627_v16 = vld [vmem:[%s4347_s1 + $0x8] sm:$0xff]   ;;  %v3629_v18 = vld [vmem:[%s4347_s1] sm:$0xff]   ;;  %v3630_v20 = vld [vmem:[%s4347_s1 + $0xf8] sm:$0xff]   ;;  %s4271_s15 = scalar_lea.vmem %s4355_s9, %s3980_s25 }
  0x12   : > { %3579 = vmatpush3.bf16.msra.mxu1 %v3617_v3  ;;  %3175 = vmatpush3.bf16.msra.mxu0 %v3617_v3  ;;  %v541_v19 = vld [vmem:[%s3799_s19 + $0xc0] sm:$0xff]  ;;  %v3631_v23 = vld [vmem:[%s4347_s1 + $0xb8] sm:$0xff]   ;;  %v3632_v24 = vld [vmem:[%s4347_s1 + $0xf0] sm:$0xff]  }
  0x13   : > { %3572 = vmatprep.subr.bf16.mxu1 %v3618_v4  ;;  %3176 = vmatprep.subr.bf16.mxu0 %v3618_v4  ;;  %v597_v21 = vunpack.c.l.s8.bf16 %v541_v19  ;;  %v518_v25 = vld [vmem:[%s3799_s19 + $0x8] sm:$0xff]  ;;  %v517_v28 = vld [vmem:[%s3799_s19] sm:$0xff]  ;;  %v3633_v29 = vld [vmem:[%s4347_s1 + $0xb0] sm:$0xff]   ;;  %v601_v33 = vunpack.c.h.s8.bf16 %v541_v19 }
  0x14   : > { %997 = vmatprep.mubr.bf16.mxu1 %v598_v12  ;;  %v550_v26 = vunpack.c.l.s8.bf16 %v518_v25  ;;  %v554_v27 = vunpack.c.h.s8.bf16 %v518_v25  ;;  %v549_v30 = vunpack.c.l.s8.bf16 %v517_v28  ;;  %v3634_v31 = vld [vmem:[%s4347_s1 + $0xe8] sm:$0xff]   ;;  %v3636_v37 = vld [vmem:[%s4347_s1 + $0xe0] sm:$0xff]   ;;  %v553_v38 = vunpack.c.h.s8.bf16 %v517_v28  ;;  %v1293_v41 = vld [vmem:[%s3849_s13 + $0x10] sm:$0xff] }
  0x15   : > { %v546_v32 = vld [vmem:[%s3799_s19 + $0xe8] sm:$0xff]  ;;  %v1291_v39 = vld [vmem:[%s3849_s13] sm:$0xff]  ;;  %v3638_v45 = vld [vmem:[%s4347_s1 + $0xd8] sm:$0xff]   ;;  %1335 = vperm.xlu1 %3613, %v1293_v41  }
  0x16   : > { %3580 = vmatpush3.bf16.msra.mxu1 %v3619_v5  ;;  %3177 = vmatpush3.bf16.msra.mxu0 %v3619_v5  ;;  %v3635_v34 = vld [vmem:[%s4347_s1 + $0xa8] sm:$0xff]   ;;  %v606_v35 = vunpack.c.l.s8.bf16 %v546_v32  ;;  %v3637_v42 = vld [vmem:[%s4347_s1 + $0xa0] sm:$0xff]   ;;  %v3639_v46 = vld [vmem:[%s4347_s1 + $0x98] sm:$0xff]   ;;  %v610_v52 = vunpack.c.h.s8.bf16 %v546_v32 }
  0x17   : > { %3573 = vmatprep.subr.bf16.mxu1 %v3620_v6  ;;  %3178 = vmatprep.subr.bf16.mxu0 %v3620_v6  ;;  %v522_v36 = vld [vmem:[%s3799_s19 + $0x28] sm:$0xff]  ;;  %v545_v43 = vld [vmem:[%s3799_s19 + $0xe0] sm:$0xff]  ;;  %v1294_v47 = vld [vmem:[%s3849_s13 + $0x18] sm:$0xff] }
  0x18   : > { %901 = vmatprep.mubr.bf16.mxu0 %v550_v26  ;;  %v558_v40 = vunpack.c.l.s8.bf16 %v522_v36  ;;  %1325 = vperm.xlu0 %3612, %v1291_v39   ;;  %v1292_v44 = vld [vmem:[%s3849_s13 + $0x8] sm:$0xff]  ;;  %v605_v48 = vunpack.c.l.s8.bf16 %v545_v43  ;;  %v3640_v49 = vld [vmem:[%s4347_s1 + $0xd0] sm:$0xff]   ;;  %v521_v50 = vld [vmem:[%s3799_s19 + $0x20] sm:$0xff]  ;;  %v562_v58 = vunpack.c.h.s8.bf16 %v522_v36  ;;  %v609_v61 = vunpack.c.h.s8.bf16 %v545_v43 }
  0x19   : > { %v1295_v51 = vld [vmem:[%s3849_s13 + $0x20] sm:$0xff]  ;;  %1340 = vperm.xlu1 %3613, %v1294_v47   ;;  %v3641_v53 = vld [vmem:[%s4347_s1 + $0x90] sm:$0xff]   ;;  %v557_v54 = vunpack.c.l.s8.bf16 %v521_v50  ;;  %v1296_v55 = vld [vmem:[%s3849_s13 + $0x28] sm:$0xff]  ;;  %v561_v3 = vunpack.c.h.s8.bf16 %v521_v50 }
  0x1a   : > { %3581 = vmatpush3.bf16.msra.mxu1 %v3621_v7  ;;  %3179 = vmatpush3.bf16.msra.mxu0 %v3621_v7  ;;  %v3642_v56 = vld [vmem:[%s4347_s1 + $0xc8] sm:$0xff]   ;;  %v520_v57 = vld [vmem:[%s3799_s19 + $0x18] sm:$0xff]  ;;  %v1297_v59 = vld [vmem:[%s3849_s13 + $0x30] sm:$0xff] }
  0x1b   : > { %3574 = vmatprep.subr.bf16.mxu1 %v3622_v8  ;;  %3180 = vmatprep.subr.bf16.mxu0 %v3622_v8  ;;  %v1298_v60 = vld [vmem:[%s3849_s13 + $0x38] sm:$0xff]  ;;  %v3643_v62 = vld [vmem:[%s4347_s1 + $0x88] sm:$0xff]   ;;  %v552_v63 = vunpack.c.l.s8.bf16 %v520_v57  ;;  %v1299_v1 = vld [vmem:[%s3849_s13 + $0x40] sm:$0xff]  ;;  %v556_v12 = vunpack.c.h.s8.bf16 %v520_v57 }
  0x1c   : > { %1330 = vperm.xlu0 %3612, %v1292_v44   ;;  %v526_v0 = vld [vmem:[%s3799_s19 + $0x48] sm:$0xff]  ;;  %v3644_v2 = vld [vmem:[%s4347_s1 + $0xc0] sm:$0xff]   ;;  %v519_v7 = vld [vmem:[%s3799_s19 + $0x10] sm:$0xff] }
  0x1d   : > { %1350 = vperm.xlu1 %3613, %v1296_v55   ;;  %v1300_v4 = vld [vmem:[%s3849_s13 + $0x48] sm:$0xff]  ;;  %v566_v5 = vunpack.c.l.s8.bf16 %v526_v0  ;;  %v3645_v6 = vld [vmem:[%s4347_s1 + $0x80] sm:$0xff]   ;;  %v1301_v8 = vld [vmem:[%s3849_s13 + $0x50] sm:$0xff] }
  0x1e   : > { %3582 = vmatpush3.bf16.msra.mxu1 %v3623_v9  ;;  %3181 = vmatpush3.bf16.msra.mxu0 %v3623_v9  ;;  %v1302_v9 = vld [vmem:[%s3849_s13 + $0x58] sm:$0xff]  ;;  %v525_v11 = vld [vmem:[%s3799_s19 + $0x40] sm:$0xff]  ;;  %v1308_v26 = vld [vmem:[%s3849_s13 + $0x88] sm:$0xff] }
  0x1f   : > { %3575 = vmatprep.subr.bf16.mxu1 %v3624_v10  ;;  %3182 = vmatprep.subr.bf16.mxu0 %v3624_v10  ;;  %v551_v10 = vunpack.c.l.s8.bf16 %v519_v7  ;;  %v565_v15 = vunpack.c.l.s8.bf16 %v525_v11  ;;  %v524_v19 = vld [vmem:[%s3799_s19 + $0x38] sm:$0xff]  ;;  %v569_v25 = vunpack.c.h.s8.bf16 %v525_v11  ;;  %v523_v28 = vld [vmem:[%s3799_s19 + $0x30] sm:$0xff]  ;;  %v529_v32 = vld [vmem:[%s3799_s19 + $0x60] sm:$0xff] }
  0x20   : > { %1345 = vperm.xlu0 %3612, %v1295_v51   ;;  %v1312_v36 = vld [vmem:[%s3849_s13 + $0xa8] sm:$0xff]  ;;  %v528_v39 = vld [vmem:[%s3799_s19 + $0x58] sm:$0xff]  ;;  %v563_v41 = vunpack.c.h.s8.bf16 %v523_v28  ;;  %v1315_v44 = vld [vmem:[%s3849_s13 + $0xc0] sm:$0xff] }
  0x21   : > { %1360 = vperm.xlu1 %3613, %v1298_v60   ;;  %v534_v43 = vld [vmem:[%s3799_s19 + $0x88] sm:$0xff]  ;;  %v1318_v50 = vld [vmem:[%s3849_s13 + $0xd8] sm:$0xff] }
  0x22   : > { %3583 = vmatpush3.bf16.msra.mxu1 %v3625_v13  ;;  %3183 = vmatpush3.bf16.msra.mxu0 %v3625_v13  ;;  %v1303_v13 = vld [vmem:[%s3849_s13 + $0x60] sm:$0xff]  ;;  %v582_v47 = vunpack.c.l.s8.bf16 %v534_v43  ;;  %v586_v57 = vunpack.c.h.s8.bf16 %v534_v43  ;;  %v1322_v60 = vld [vmem:[%s3849_s13 + $0xf8] sm:$0xff] }
  0x23   : > { %3576 = vmatprep.subr.bf16.mxu1 %v3626_v14  ;;  %3184 = vmatprep.subr.bf16.mxu0 %v3626_v14  ;;  %v3646_v14 = vld [vmem:[%s4350_s4] sm:$0xff]   ;;  %v3655_v43 = vld [vmem:[%s3986_s28 + $0x38] sm:$0xff]  }
  0x24   : > { %1355 = vperm.xlu0 %3612, %v1297_v59   ;;  %v532_v59 = vld [vmem:[%s3799_s19 + $0x78] sm:$0xff] }
  0x25   : > { %1370 = vperm.xlu1 %3613, %v1300_v4   ;;  %v537_v4 = vld [vmem:[%s3799_s19 + $0xa0] sm:$0xff] }
  0x26   : > { %3584 = vmatpush3.bf16.msra.mxu1 %v3627_v16  ;;  %3185 = vmatpush3.bf16.msra.mxu0 %v3627_v16  ;;  %v1304_v16 = vld [vmem:[%s3849_s13 + $0x68] sm:$0xff]  ;;  %v593_v11 = vunpack.c.h.s8.bf16 %v537_v4 }
  0x27   : > { %3577 = vmatprep.subr.bf16.mxu1 %v3628_v17  ;;  %3186 = vmatprep.subr.bf16.mxu0 %v3628_v17  ;;  %v570_v17 = vunpack.c.h.s8.bf16 %v526_v0 }
  0x28   : > { %1365 = vperm.xlu0 %3612, %v1299_v1  }
  0x29   : > { %1380 = vperm.xlu1 %3613, %v1302_v9  }
  0x2a   : > { %3585 = vmatpush3.bf16.msra.mxu1 %v3629_v18  ;;  %3187 = vmatpush3.bf16.msra.mxu0 %v3629_v18  ;;  %v1305_v18 = vld [vmem:[%s3849_s13 + $0x70] sm:$0xff] }
  0x2b   : > { %3284 = vmatprep.subr.bf16.mxu1 %v3630_v20  ;;  %v1306_v20 = vld [vmem:[%s3849_s13 + $0x78] sm:$0xff] }
  0x2c   : > { %1375 = vperm.xlu0 %3612, %v1301_v8   ;;  %v536_v8 = vld [vmem:[%s3799_s19 + $0x98] sm:$0xff] }
  0x2d   : > { %998 = vmatmul.mubr.bf16.vlgmr.msra.gmra.mxu1 %v597_v21  ;;  %902 = vmatmul.mubr.bf16.vlgmr.msra.gmra.mxu0 %v549_v30  ;;  %v555_v21 = vunpack.c.h.s8.bf16 %v519_v7  ;;  %v1310_v30 = vld [vmem:[%s3849_s13 + $0x98] sm:$0xff] }
  0x2e   : > { %3285 = vmatpush3.bf16.msra.mxu1 %v3631_v23  ;;  %1005 = vmatprep.mubr.bf16.mxu1 %v602_v22  ;;  %v560_v22 = vunpack.c.l.s8.bf16 %v524_v19  ;;  %v530_v23 = vld [vmem:[%s3799_s19 + $0x68] sm:$0xff] }
  0x2f   : > { %3286 = vmatprep.subr.bf16.mxu1 %v3632_v24  ;;  %909 = vmatprep.mubr.bf16.mxu0 %v554_v27  ;;  %v1307_v24 = vld [vmem:[%s3849_s13 + $0x80] sm:$0xff]  ;;  %v574_v27 = vunpack.c.l.s8.bf16 %v530_v23 }
  0x30   : > { %1385 = vperm.xlu0 %3612, %v1303_v13   ;;  %1390 = vperm.xlu1 %3613, %v1304_v16   ;;  %v535_v13 = vld [vmem:[%s3799_s19 + $0x90] sm:$0xff]  ;;  %v3697_v16 = vmov 0.0  }
  0x31   : > { %453 = vst.msk [vmem:[#allocation2] sm:$0xff] %vm452_vm0, %v3697_v16  ;;  %454 = vst.msk [vmem:[#allocation2 + $0x8] sm:$0xff] %vm452_vm0, %v3697_v16 }
  0x32   : > { %3287 = vmatpush3.bf16.msra.mxu1 %v3633_v29  ;;  %v1309_v29 = vld [vmem:[%s3849_s13 + $0x90] sm:$0xff]  ;;  %455 = vst.msk [vmem:[#allocation2 + $0x10] sm:$0xff] %vm452_vm0, %v3697_v16  ;;  %456 = vst.msk [vmem:[#allocation2 + $0x18] sm:$0xff] %vm452_vm0, %v3697_v16 }
  0x33   : > { %3288 = vmatprep.subr.bf16.mxu1 %v3634_v31  ;;  %v559_v31 = vunpack.c.l.s8.bf16 %v523_v28  ;;  %457 = vst.msk [vmem:[#allocation2 + $0x20] sm:$0xff] %vm452_vm0, %v3697_v16  ;;  %458 = vst.msk [vmem:[#allocation2 + $0x28] sm:$0xff] %vm452_vm0, %v3697_v16 }
  0x34   : > { %1395 = vperm.xlu0 %3612, %v1305_v18   ;;  %1400 = vperm.xlu1 %3613, %v1306_v20   ;;  %459 = vst.msk [vmem:[#allocation2 + $0x30] sm:$0xff] %vm452_vm0, %v3697_v16  ;;  %460 = vst.msk [vmem:[#allocation2 + $0x38] sm:$0xff] %vm452_vm0, %v3697_v16  ;;  %v587_v18 = vunpack.c.h.s8.bf16 %v535_v13  ;;  %v539_v20 = vld [vmem:[%s3799_s19 + $0xb0] sm:$0xff] }
  0x35   : > { %1006 = vmatmul.mubr.bf16.gmra.mxu1 %v601_v33  ;;  %910 = vmatmul.mubr.bf16.gmra.mxu0 %v553_v38  ;;  %v564_v33 = vunpack.c.h.s8.bf16 %v524_v19  ;;  %v1313_v38 = vld [vmem:[%s3849_s13 + $0xb0] sm:$0xff]  ;;  %461 = vst.msk [vmem:[#allocation2 + $0x40] sm:$0xff] %vm452_vm0, %v3697_v16  ;;  %462 = vst.msk [vmem:[#allocation2 + $0x48] sm:$0xff] %vm452_vm0, %v3697_v16 }
  0x36   : > { %3289 = vmatpush3.bf16.msra.mxu1 %v3635_v34  ;;  %1013 = vmatprep.mubr.bf16.mxu1 %v606_v35  ;;  %v1311_v34 = vld [vmem:[%s3849_s13 + $0xa0] sm:$0xff]  ;;  %v573_v35 = vunpack.c.l.s8.bf16 %v529_v32  ;;  %463 = vst.msk [vmem:[#allocation2 + $0x50] sm:$0xff] %vm452_vm0, %v3697_v16  ;;  %464 = vst.msk [vmem:[#allocation2 + $0x58] sm:$0xff] %vm452_vm0, %v3697_v16 }
  0x37   : > { %3290 = vmatprep.subr.bf16.mxu1 %v3636_v37  ;;  %917 = vmatprep.mubr.bf16.mxu0 %v558_v40  ;;  %v578_v37 = vunpack.c.h.s8.bf16 %v530_v23  ;;  %v1314_v40 = vld [vmem:[%s3849_s13 + $0xb8] sm:$0xff]  ;;  %465 = vst.msk [vmem:[#allocation2 + $0x60] sm:$0xff] %vm452_vm0, %v3697_v16  ;;  %466 = vst.msk [vmem:[#allocation2 + $0x68] sm:$0xff] %vm452_vm0, %v3697_v16 }
  0x38   : > { %1405 = vperm.xlu0 %3612, %v1307_v24   ;;  %1410 = vperm.xlu1 %3613, %v1308_v26   ;;  %467 = vst.msk [vmem:[#allocation2 + $0x70] sm:$0xff] %vm452_vm0, %v3697_v16  ;;  %468 = vst.msk [vmem:[#allocation2 + $0x78] sm:$0xff] %vm452_vm0, %v3697_v16  ;;  %v544_v23 = vld [vmem:[%s3799_s19 + $0xd8] sm:$0xff]  ;;  %v595_v24 = vunpack.c.h.s8.bf16 %v539_v20  ;;  %v543_v26 = vld [vmem:[%s3799_s19 + $0xd0] sm:$0xff] }
  0x39   : > { %469 = vst.msk [vmem:[#allocation2 + $0x80] sm:$0xff] %vm452_vm0, %v3697_v16  ;;  %470 = vst.msk [vmem:[#allocation2 + $0x88] sm:$0xff] %vm452_vm0, %v3697_v16  ;;  %v604_v28 = vunpack.c.h.s8.bf16 %v544_v23 }
  0x3a   : > { %3291 = vmatpush3.bf16.msra.mxu1 %v3637_v42  ;;  %v568_v42 = vunpack.c.l.s8.bf16 %v528_v39  ;;  %471 = vst.msk [vmem:[#allocation2 + $0x90] sm:$0xff] %vm452_vm0, %v3697_v16  ;;  %472 = vst.msk [vmem:[#allocation2 + $0x98] sm:$0xff] %vm452_vm0, %v3697_v16 }
  0x3b   : > { %3292 = vmatprep.subr.bf16.mxu1 %v3638_v45  ;;  %v577_v45 = vunpack.c.h.s8.bf16 %v529_v32  ;;  %473 = vst.msk [vmem:[#allocation2 + $0xa0] sm:$0xff] %vm452_vm0, %v3697_v16  ;;  %474 = vst.msk [vmem:[#allocation2 + $0xa8] sm:$0xff] %vm452_vm0, %v3697_v16  ;;  %v547_v32 = vld [vmem:[%s3799_s19 + $0xf0] sm:$0xff] }
  0x3c   : > { %1415 = vperm.xlu0 %3612, %v1309_v29   ;;  %1420 = vperm.xlu1 %3613, %v1310_v30   ;;  %475 = vst.msk [vmem:[#allocation2 + $0xb0] sm:$0xff] %vm452_vm0, %v3697_v16  ;;  %476 = vst.msk [vmem:[#allocation2 + $0xb8] sm:$0xff] %vm452_vm0, %v3697_v16  ;;  %v548_v29 = vld [vmem:[%s3799_s19 + $0xf8] sm:$0xff]  ;;  %v603_v30 = vunpack.c.h.s8.bf16 %v543_v26 }
  0x3d   : > { %1014 = vmatmul.mubr.bf16.gmra.mxu1 %v605_v48  ;;  %918 = vmatmul.mubr.bf16.gmra.mxu0 %v557_v54  ;;  %v527_v48 = vld [vmem:[%s3799_s19 + $0x50] sm:$0xff]  ;;  %v1319_v54 = vld [vmem:[%s3849_s13 + $0xe0] sm:$0xff]  ;;  %477 = vst.msk [vmem:[#allocation2 + $0xc0] sm:$0xff] %vm452_vm0, %v3697_v16  ;;  %478 = vst.msk [vmem:[#allocation2 + $0xc8] sm:$0xff] %vm452_vm0, %v3697_v16 }
  0x3e   : > { %3293 = vmatpush3.bf16.msra.mxu1 %v3639_v46  ;;  %1021 = vmatprep.mubr.bf16.mxu1 %v610_v52  ;;  %v1316_v46 = vld [vmem:[%s3849_s13 + $0xc8] sm:$0xff]  ;;  %v567_v51 = vunpack.c.l.s8.bf16 %v527_v48  ;;  %v533_v52 = vld [vmem:[%s3799_s19 + $0x80] sm:$0xff]  ;;  %479 = vst.msk [vmem:[#allocation2 + $0xd0] sm:$0xff] %vm452_vm0, %v3697_v16  ;;  %480 = vst.msk [vmem:[#allocation2 + $0xd8] sm:$0xff] %vm452_vm0, %v3697_v16 }
  0x3f   : > { %3294 = vmatprep.subr.bf16.mxu1 %v3640_v49  ;;  %925 = vmatprep.mubr.bf16.mxu0 %v562_v58  ;;  %v1317_v49 = vld [vmem:[%s3849_s13 + $0xd0] sm:$0xff]  ;;  %v581_v55 = vunpack.c.l.s8.bf16 %v533_v52  ;;  %v585_v0 = vunpack.c.h.s8.bf16 %v533_v52  ;;  %481 = vst.msk [vmem:[#allocation2 + $0xe0] sm:$0xff] %vm452_vm0, %v3697_v16  ;;  %482 = vst.msk [vmem:[#allocation2 + $0xe8] sm:$0xff] %vm452_vm0, %v3697_v16 }
  0x40   : > { %1425 = vperm.xlu0 %3612, %v1311_v34   ;;  %1430 = vperm.xlu1 %3613, %v1312_v36   ;;  %v1321_v58 = vld [vmem:[%s3849_s13 + $0xf0] sm:$0xff]  ;;  %483 = vst.msk [vmem:[#allocation2 + $0xf0] sm:$0xff] %vm452_vm0, %v3697_v16  ;;  %484 = vst.msk [vmem:[#allocation2 + $0xf8] sm:$0xff] %vm452_vm0, %v3697_v16  ;;  %v612_v34 = vunpack.c.h.s8.bf16 %v548_v29  ;;  %v3648_v36 = vld [vmem:[%s3986_s28] sm:$0xff]  }
  0x42   : > { %3295 = vmatpush3.bf16.msra.mxu1 %v3641_v53  ;;  %v572_v53 = vunpack.c.h.s8.bf16 %v528_v39  ;;  %v3651_v39 = vld [vmem:[%s3986_s28 + $0x18] sm:$0xff]  }
  0x43   : > { %3296 = vmatprep.subr.bf16.mxu1 %v3642_v56  ;;  %v1320_v56 = vld [vmem:[%s3849_s13 + $0xe8] sm:$0xff] }
  0x44   : > { %1435 = vperm.xlu0 %3612, %v1313_v38   ;;  %1440 = vperm.xlu1 %3613, %v1314_v40   ;;  %v3650_v38 = vld [vmem:[%s3986_s28 + $0x10] sm:$0xff]   ;;  %v3652_v40 = vld [vmem:[%s3986_s28 + $0x20] sm:$0xff]  }
  0x45   : > { %1022 = vmatmul.mubr.bf16.gmra.mxu1 %v609_v61  ;;  %926 = vmatmul.mubr.bf16.gmra.mxu0 %v561_v3  ;;  %v571_v61 = vunpack.c.h.s8.bf16 %v527_v48 }
  0x46   : > { %3297 = vmatpush3.bf16.msra.mxu1 %v3643_v62  ;;  %1062 = vmatprep.mubr.bf16.mxu1 %v552_v63  ;;  %v576_v62 = vunpack.c.l.s8.bf16 %v532_v59  ;;  %v538_v63 = vld [vmem:[%s3799_s19 + $0xa8] sm:$0xff] }
  0x47   : > { %3298 = vmatprep.subr.bf16.mxu1 %v3644_v2  ;;  %933 = vmatprep.mubr.bf16.mxu0 %v566_v5  ;;  %v590_v1 = vunpack.c.l.s8.bf16 %v538_v63  ;;  %v531_v2 = vld [vmem:[%s3799_s19 + $0x70] sm:$0xff]  ;;  %v580_v5 = vunpack.c.h.s8.bf16 %v532_v59  ;;  %v594_v7 = vunpack.c.h.s8.bf16 %v538_v63 }
  0x48   : > { %1445 = vperm.xlu0 %3612, %v1315_v44   ;;  %1450 = vperm.xlu1 %3613, %v1316_v46   ;;  %v575_v3 = vunpack.c.l.s8.bf16 %v531_v2  ;;  %v579_v9 = vunpack.c.h.s8.bf16 %v531_v2  ;;  %v3656_v44 = vld [vmem:[%s3986_s28 + $0x40] sm:$0xff]   ;;  %v3658_v63 = vld [vmem:[%s3986_s28 + $0x50] sm:$0xff]   ;;  %v3659_v2 = vld [vmem:[%s3986_s28 + $0x58] sm:$0xff]  }
  0x4a   : > { %3299 = vmatpush3.bf16.msra.mxu1 %v3645_v6  ;;  %v589_v6 = vunpack.c.l.s8.bf16 %v537_v4 }
  0x4b   : > { %3488 = vmatprep.subr.bf16.mxu1 %v3646_v14 }
  0x4c   : > { %1455 = vperm.xlu0 %3612, %v1317_v49   ;;  %1460 = vperm.xlu1 %3613, %v1318_v50  }
  0x4d   : > { %1063 = vmatmul.mubr.bf16.vlgmr.msra.gmra.mxu1 %v551_v10  ;;  %934 = vmatmul.mubr.bf16.gmra.mxu0 %v565_v15  ;;  %v584_v10 = vunpack.c.l.s8.bf16 %v536_v8  ;;  %v588_v15 = vunpack.c.h.s8.bf16 %v536_v8 }
  0x4e   : > { %1070 = vmatprep.mubr.bf16.mxu1 %v556_v12  ;;  %3489 = vmatpush3.bf16.msra.mxu1 %v3646_v14  ;;  %v3647_v12 = vld [vmem:[%s4351_s5] sm:$0xff]   ;;  %v583_v14 = vunpack.c.l.s8.bf16 %v535_v13 }
  0x4f   : > { %941 = vmatprep.mubr.bf16.mxu0 %v570_v17  ;;  %3454 = vmatprep.subr.bf16.mxu0 %v3647_v12  ;;  %v540_v17 = vld [vmem:[%s3799_s19 + $0xb8] sm:$0xff] }
  0x50   : > { %1465 = vperm.xlu0 %3612, %v1319_v54   ;;  %1470 = vperm.xlu1 %3613, %v1320_v56   ;;  %v592_v19 = vunpack.c.l.s8.bf16 %v540_v17 }
  0x51   : > { %3455 = vmatpush3.bf16.msra.mxu0 %v3647_v12 }
  0x54   : > { %1475 = vperm.xlu0 %3612, %v1321_v58   ;;  %1480 = vperm.xlu1 %3613, %v1322_v60  }
  0x55   : > { %1071 = vmatmul.mubr.bf16.gmra.mxu1 %v555_v21  ;;  %942 = vmatmul.mubr.bf16.gmra.mxu0 %v569_v25  ;;  %v591_v21 = vunpack.c.l.s8.bf16 %v539_v20  ;;  %v600_v25 = vunpack.c.l.s8.bf16 %v544_v23 }
  0x56   : > { %1078 = vmatprep.mubr.bf16.mxu1 %v560_v22  ;;  %949 = vmatprep.mubr.bf16.mxu0 %v574_v27  ;;  %v596_v22 = vunpack.c.h.s8.bf16 %v540_v17  ;;  %v599_v27 = vunpack.c.l.s8.bf16 %v543_v26 }
  0x5d   : > { %1079 = vmatmul.mubr.bf16.gmra.mxu1 %v559_v31  ;;  %950 = vmatmul.mubr.bf16.gmra.mxu0 %v573_v35  ;;  %v608_v31 = vunpack.c.l.s8.bf16 %v548_v29  ;;  %v611_v35 = vunpack.c.h.s8.bf16 %v547_v32 }
  0x5e   : > { %1086 = vmatprep.mubr.bf16.mxu1 %v564_v33  ;;  %957 = vmatprep.mubr.bf16.mxu0 %v578_v37  ;;  %v607_v33 = vunpack.c.l.s8.bf16 %v547_v32  ;;  %v3649_v37 = vld [vmem:[%s3986_s28 + $0x8] sm:$0xff]  }
  0x65   : > { %1087 = vmatmul.mubr.bf16.gmra.mxu1 %v563_v41  ;;  %958 = vmatmul.mubr.bf16.gmra.mxu0 %v577_v45  ;;  %v3653_v41 = vld [vmem:[%s3986_s28 + $0x28] sm:$0xff]  }
  0x66   : > { %1094 = vmatprep.mubr.bf16.mxu1 %v568_v42  ;;  %965 = vmatprep.mubr.bf16.mxu0 %v582_v47  ;;  %v3654_v42 = vld [vmem:[%s3986_s28 + $0x30] sm:$0xff]   ;;  %v3657_v45 = vld [vmem:[%s3986_s28 + $0x48] sm:$0xff]  }
  0x6d   : > { %1095 = vmatmul.mubr.bf16.gmra.mxu1 %v567_v51  ;;  %966 = vmatmul.mubr.bf16.gmra.mxu0 %v581_v55 }
  0x6e   : > { %1102 = vmatprep.mubr.bf16.mxu1 %v572_v53  ;;  %973 = vmatprep.mubr.bf16.mxu0 %v586_v57 }
  0x75   : > { %1103 = vmatmul.mubr.bf16.gmra.mxu1 %v571_v61  ;;  %974 = vmatmul.mubr.bf16.gmra.mxu0 %v585_v0 }
  0x76   : > { %1110 = vmatprep.mubr.bf16.mxu1 %v576_v62  ;;  %981 = vmatprep.mubr.bf16.mxu0 %v590_v1 }
  0x7d   : > { %1111 = vmatmul.mubr.bf16.gmra.mxu1 %v575_v3  ;;  %982 = vmatmul.mubr.bf16.gmra.mxu0 %v589_v6 }
  0x7e   : > { %1118 = vmatprep.mubr.bf16.mxu1 %v580_v5  ;;  %989 = vmatprep.mubr.bf16.mxu0 %v594_v7 }
  0x85   : > { %1119 = vmatmul.mubr.bf16.gmra.mxu1 %v579_v9  ;;  %990 = vmatmul.mubr.bf16.gmra.mxu0 %v593_v11 }
  0x86   : > { %1126 = vmatprep.mubr.bf16.mxu1 %v584_v10 }
  0x8d   : > { %1127 = vmatmul.mubr.bf16.gmra.mxu1 %v583_v14 }
  0x8e   : > { %1134 = vmatprep.mubr.bf16.mxu1 %v588_v15 }
  0x95   : > { %1135 = vmatmul.mubr.bf16.gmra.mxu1 %v587_v18 }
  0x96   : > { %1142 = vmatprep.mubr.bf16.mxu1 %v592_v19 }
  0x9d   : > { %1143 = vmatmul.mubr.bf16.gmra.mxu1 %v591_v21  ;;  %v3660_v21 = vld [vmem:[%s3986_s28 + $0x60] sm:$0xff]  }
  0x9e   : > { %1150 = vmatprep.mubr.bf16.mxu1 %v596_v22 }
  0xa5   : > { %1151 = vmatmul.mubr.bf16.gmra.mxu1 %v595_v24  ;;  %v3661_v24 = vld [vmem:[%s3986_s28 + $0x68] sm:$0xff]  }
  0xa6   : > { %1158 = vmatprep.mubr.bf16.mxu1 %v600_v25 }
  0xad   : > { %1159 = vmatmul.mubr.bf16.gmra.mxu1 %v599_v27 }
  0xae   : > { %1166 = vmatprep.mubr.bf16.mxu1 %v604_v28 }
  0xb5   : > { %1167 = vmatmul.mubr.bf16.gmra.mxu1 %v603_v30 }
  0xb6   : > { %1174 = vmatprep.mubr.bf16.mxu1 %v608_v31  ;;  %v485_v31 = vld [vmem:[#allocation2] sm:$0xff] }
  0xbd   : > { %1175 = vmatmul.mubr.bf16.gmra.mxu1 %v607_v33 }
  0xbe   : > { %1182 = vmatprep.mubr.bf16.mxu1 %v612_v34 }
  0xc5   : > { %1183 = vmatmul.mubr.bf16.gmra.mxu1 %v611_v35 }
  0xc6   : > { %3490 = vmatprep.mubr.msk.bf16.mxu1 %vm452_vm0, %v3648_v36 }
  0xcd   : > { %3491 = vmatmul.mubr.msk.bf16.vlgmr.msra.gmra.mxu1 %vm452_vm0, %v3649_v37 }
  0xce   : > { %3494 = vmatprep.mubr.msk.bf16.mxu1 %vm452_vm0, %v3650_v38 }
  0xd5   : > { %3495 = vmatmul.mubr.msk.bf16.gmra.mxu1 %vm452_vm0, %v3651_v39 }
  0xd6   : > { %3498 = vmatprep.mubr.msk.bf16.mxu1 %vm452_vm0, %v3652_v40  ;;  %v486_v40 = vld [vmem:[#allocation2 + $0x8] sm:$0xff] }
  0xdd   : > { %3499 = vmatmul.mubr.msk.bf16.gmra.mxu1 %vm452_vm0, %v3653_v41 }
  0xde   : > { %3502 = vmatprep.mubr.msk.bf16.mxu1 %vm452_vm0, %v3654_v42  ;;  %v3662_v42 = vld [vmem:[%s3986_s28 + $0x70] sm:$0xff]  }
  0xe5   : > { %3503 = vmatmul.mubr.msk.bf16.gmra.mxu1 %vm452_vm0, %v3655_v43 }
  0xe6   : > { %3506 = vmatprep.mubr.msk.bf16.mxu1 %vm452_vm0, %v3656_v44 }
  0xed   : > { %v3260_v46 = vpop.f32.mrf.mxu1  ;;  %3507 = vmatmul.mubr.msk.bf16.gmra.mxu1 %vm452_vm0, %v3657_v45  ;;  %v3188_v49 = vpop.f32.mrf.mxu0 }
  0xee   : > { %3510 = vmatprep.mubr.msk.bf16.mxu1 %vm452_vm0, %v3658_v63 }
  0xef   : > { %v3261_v47 = vpop.f32.mrf.mxu1  ;;  %v3189_v51 = vpop.f32.mrf.mxu0 }
  0xf0   : > { %v4010_v48 = vadd.f32 %v3261_v47, %v3260_v46  ;;  %v3190_v26 = vadd.f32 %v3189_v51, %v3188_v49  ;;  %v3663_v46 = vld [vmem:[%s3986_s28 + $0x78] sm:$0xff]  }
  0xf1   : > { %v3263_v50 = vpop.f32.mrf.mxu1  ;;  %v3191_v54 = vpop.f32.mrf.mxu0 }
  0xf3   : > { %v3264_v52 = vpop.f32.mrf.mxu1  ;;  %v3192_v56 = vpop.f32.mrf.mxu0 }
  0xf4   : > { %v4012_v53 = vadd.f32 %v3264_v52, %v3263_v50  ;;  %v3193_v34 = vadd.f32 %v3192_v56, %v3191_v54  ;;  %v487_v52 = vld [vmem:[#allocation2 + $0x10] sm:$0xff] }
  0xf5   : > { %v3266_v55 = vpop.f32.mrf.mxu1  ;;  %v3194_v59 = vpop.f32.mrf.mxu0  ;;  %3511 = vmatmul.mubr.msk.bf16.gmra.mxu1 %vm452_vm0, %v3659_v2  ;;  %v488_v2 = vld [vmem:[#allocation2 + $0x18] sm:$0xff] }
  0xf6   : > { %3514 = vmatprep.mubr.msk.bf16.mxu1 %vm452_vm0, %v3660_v21 }
  0xf7   : > { %v3267_v57 = vpop.f32.mrf.mxu1  ;;  %v3195_v61 = vpop.f32.mrf.mxu0 }
  0xf8   : > { %v4014_v58 = vadd.f32 %v3267_v57, %v3266_v55  ;;  %v3196_v44 = vadd.f32 %v3195_v61, %v3194_v59  ;;  %v1326_v55 = vpop.permute.xlu0 %1325 }
  0xf9   : > { %v3269_v60 = vpop.f32.mrf.mxu1  ;;  %v3197_v1 = vpop.f32.mrf.mxu0 }
  0xfb   : > { %v3270_v62 = vpop.f32.mrf.mxu1  ;;  %v3198_v4 = vpop.f32.mrf.mxu0 }
  0xfc   : > { %v4017_v0 = vadd.f32 %v3270_v62, %v3269_v60  ;;  %v3199_v57 = vadd.f32 %v3198_v4, %v3197_v1  ;;  %v3664_v1 = vld [vmem:[%s4353_s7 + $0x38] sm:$0xff]  }
  0xfd   : > { %v3272_v3 = vpop.f32.mrf.mxu1  ;;  %v4024_v7 = vpop.f32.mrf.mxu0  ;;  %3515 = vmatmul.mubr.msk.bf16.gmra.mxu1 %vm452_vm0, %v3661_v24  ;;  %3522 = vmatprep.subr.bf16.mxu0 %v3664_v1  ;;  %v489_v24 = vld [vmem:[#allocation2 + $0x20] sm:$0xff] }
  0xfe   : > { %3518 = vmatprep.mubr.msk.bf16.mxu1 %vm452_vm0, %v3662_v42 }
  0xff   : > { %v3273_v5 = vpop.f32.mrf.mxu1  ;;  %v3201_v9 = vpop.f32.mrf.mxu0 }
 0x100   : > { %v4022_v6 = vadd.f32 %v3273_v5, %v3272_v3 }
 0x101   : > { %v3275_v8 = vpop.f32.mrf.mxu1  ;;  %v4028_v12 = vpop.f32.mrf.mxu0 }
 0x103   : > { %v3276_v10 = vpop.f32.mrf.mxu1  ;;  %v4030_v14 = vpop.f32.mrf.mxu0 }
 0x104   : > { %v4026_v11 = vadd.f32 %v3276_v10, %v3275_v8  ;;  %v3202_v8 = vadd.f32 %v3201_v9, %v4024_v7 }
 0x105   : > { %v3278_v13 = vpop.f32.mrf.mxu1  ;;  %v4034_v17 = vpop.f32.mrf.mxu0  ;;  %3519 = vmatmul.mubr.msk.bf16.gmra.mxu1 %vm452_vm0, %v3663_v46 }
 0x107   : > { %v3279_v15 = vpop.f32.mrf.mxu1  ;;  %v4036_v19 = vpop.f32.mrf.mxu0 }
 0x108   : > { %v4032_v16 = vadd.f32 %v3279_v15, %v3278_v13  ;;  %v1331_v15 = vpop.permute.xlu0 %1330 }
 0x109   : > { %v3281_v18 = vpop.f32.mrf.mxu1  ;;  %v4041_v23 = vpop.f32.mrf.mxu0 }
 0x10b   : > { %v3282_v20 = vpop.f32.mrf.mxu1  ;;  %v4045_v27 = vpop.f32.mrf.mxu0 }
 0x10c   : > { %v4039_v22 = vadd.f32 %v3282_v20, %v3281_v18 }
 0x10d   : > { %v3300_v25 = vpop.f32.mrf.mxu1  ;;  %v4048_v30 = vpop.f32.mrf.mxu0 }
 0x10f   : > { %v3301_v28 = vpop.f32.mrf.mxu1  ;;  %v4050_v35 = vpop.f32.mrf.mxu0 }
 0x110   : > { %v3302_v29 = vadd.f32 %v3301_v28, %v3300_v25 }
 0x111   : > { %v3303_v32 = vpop.f32.mrf.mxu1  ;;  %v4052_v39 = vpop.f32.mrf.mxu0 }
 0x112   : > { %v1065_v33 = vadd.f32 %v3302_v29, %v3190_v26  ;;  %v3205_v29 = vadd.f32 %v4030_v14, %v4028_v12 }
 0x113   : > { %v3304_v36 = vpop.f32.mrf.mxu1  ;;  %v4056_v45 = vpop.f32.mrf.mxu0 }
 0x114   : > { %v1191_v37 = vadd.f32 %v1065_v33, %v485_v31  ;;  %v3305_v38 = vadd.f32 %v3304_v36, %v3303_v32  ;;  %v1336_v32 = vpop.permute.xlu1 %1335 }
 0x115   : > { %v3306_v41 = vpop.f32.mrf.mxu1  ;;  %v4060_v51 = vpop.f32.mrf.mxu0 }
 0x116   : > { %1224 = vst.msk [vmem:[#allocation2] sm:$0xff] %vm452_vm0, %v1191_v37  ;;  %v1068_v43 = vadd.f32 %v3305_v38, %v3193_v34 }
 0x117   : > { %v3307_v47 = vpop.f32.mrf.mxu1  ;;  %v4064_v59 = vpop.f32.mrf.mxu0 }
 0x118   : > { %v1192_v49 = vadd.f32 %v1068_v43, %v486_v40  ;;  %v3308_v50 = vadd.f32 %v3307_v47, %v3306_v41  ;;  %v490_v40 = vld [vmem:[#allocation2 + $0x28] sm:$0xff]  ;;  %v3208_v43 = vadd.f32 %v4036_v19, %v4034_v17  ;;  %v3211_v17 = vadd.f32 %v4045_v27, %v4041_v23 }
 0x119   : > { %v3309_v54 = vpop.f32.mrf.mxu1  ;;  %v4066_v63 = vpop.f32.mrf.mxu0  ;;  %v3214_v23 = vadd.f32 %v4050_v35, %v4048_v30 }
 0x11a   : > { %1225 = vst.msk [vmem:[#allocation2 + $0x8] sm:$0xff] %vm452_vm0, %v1192_v49  ;;  %v1073_v56 = vadd.f32 %v3308_v50, %v3196_v44  ;;  %v1341_v50 = vpop.permute.xlu1 %1340 }
 0x11b   : > { %v3310_v60 = vpop.f32.mrf.mxu1  ;;  %v4070_v10 = vpop.f32.mrf.mxu0 }
 0x11c   : > { %v1193_v61 = vadd.f32 %v1073_v56, %v487_v52  ;;  %v3311_v62 = vadd.f32 %v3310_v60, %v3309_v54  ;;  %v491_v54 = vld [vmem:[#allocation2 + $0x30] sm:$0xff] }
 0x11d   : > { %v3312_v3 = vpop.f32.mrf.mxu1  ;;  %v1259_v4 = vld [vmem:[#allocation2] sm:$0xff]  ;;  %v4075_v21 = vpop.f32.mrf.mxu0 }
 0x11e   : > { %1226 = vst.msk [vmem:[#allocation2 + $0x10] sm:$0xff] %vm452_vm0, %v1193_v61  ;;  %v1076_v5 = vadd.f32 %v3311_v62, %v3199_v57  ;;  %v1483_v7 = vmul.f32 %v1326_v55, %v1259_v4  ;;  %v492_v4 = vld [vmem:[#allocation2 + $0x38] sm:$0xff] }
 0x11f   : > { %v3313_v13 = vpop.f32.mrf.mxu1  ;;  %v4080_v31 = vpop.f32.mrf.mxu0 }
 0x120   : > { %v1194_v18 = vadd.f32 %v1076_v5, %v488_v2  ;;  %v3314_v20 = vadd.f32 %v3313_v13, %v3312_v3 }
 0x121   : > { %v1260_v25 = vld [vmem:[#allocation2 + $0x8] sm:$0xff]  ;;  %v3315_v26 = vpop.f32.mrf.mxu1  ;;  %v4082_v38 = vpop.f32.mrf.mxu0 }
 0x122   : > { %1227 = vst.msk [vmem:[#allocation2 + $0x18] sm:$0xff] %vm452_vm0, %v1194_v18  ;;  %v1081_v9 = vadd.f32 %v3314_v20, %v3202_v8  ;;  %v1484_v28 = vmul.f32 %v1331_v15, %v1260_v25  ;;  %v3665_v8 = vld [vmem:[%s4353_s7 + $0x30] sm:$0xff]  }
 0x123   : > { %v3316_v33 = vpop.f32.mrf.mxu1  ;;  %v4088_v12 = vpop.f32.mrf.mxu0 }
 0x124   : > { %v1195_v34 = vadd.f32 %v1081_v9, %v489_v24  ;;  %v1515_v36 = vpack.c.bf16 %v1484_v28, %v1483_v7  ;;  %v3317_v37 = vadd.f32 %v3316_v33, %v3315_v26  ;;  %v1346_v24 = vpop.permute.xlu0 %1345  ;;  %v3666_v9 = vld [vmem:[%s4353_s7 + $0x28] sm:$0xff]   ;;  %v1351_v28 = vpop.permute.xlu1 %1350 }
 0x125   : > { %v3318_v41 = vpop.f32.mrf.mxu1  ;;  %v1261_v14 = vld [vmem:[#allocation2 + $0x10] sm:$0xff]  ;;  %v4090_v49 = vpop.f32.mrf.mxu0 }
 0x126   : > { %1228 = vst.msk [vmem:[#allocation2 + $0x20] sm:$0xff] %vm452_vm0, %v1195_v34  ;;  %v1084_v42 = vadd.f32 %v3317_v37, %v3205_v29  ;;  %3456 = vmatprep.mubr.msk.bf16.mxu0 %vm452_vm0, %v1515_v36  ;;  %v1485_v56 = vmul.f32 %v1336_v32, %v1261_v14  ;;  %v493_v32 = vld [vmem:[#allocation2 + $0x40] sm:$0xff] }
 0x127   : > { %v3319_v44 = vpop.f32.mrf.mxu1  ;;  %v4095_v19 = vpop.f32.mrf.mxu0  ;;  %v3667_v14 = vld [vmem:[%s4353_s7 + $0x20] sm:$0xff]  }
 0x128   : > { %v1196_v46 = vadd.f32 %v1084_v42, %v490_v40  ;;  %v3320_v47 = vadd.f32 %v3319_v44, %v3318_v41  ;;  %v494_v44 = vld [vmem:[#allocation2 + $0x48] sm:$0xff] }
 0x129   : > { %v1262_v52 = vld [vmem:[#allocation2 + $0x18] sm:$0xff]  ;;  %v3321_v55 = vpop.f32.mrf.mxu1  ;;  %v4097_v5 = vpop.f32.mrf.mxu0 }
 0x12a   : > { %1229 = vst.msk [vmem:[#allocation2 + $0x28] sm:$0xff] %vm452_vm0, %v1196_v46  ;;  %v1486_v57 = vmul.f32 %v1341_v50, %v1262_v52  ;;  %v1089_v60 = vadd.f32 %v3320_v47, %v3208_v43 }
 0x12b   : > { %v3322_v61 = vpop.f32.mrf.mxu1  ;;  %v4106_v27 = vpop.f32.mrf.mxu0 }
 0x12c   : > { %v1516_v62 = vpack.c.bf16 %v1486_v57, %v1485_v56  ;;  %v1197_v2 = vadd.f32 %v1089_v60, %v491_v54  ;;  %v3323_v3 = vadd.f32 %v3322_v61, %v3321_v55  ;;  %v1356_v54 = vpop.permute.xlu0 %1355  ;;  %v1361_v57 = vpop.permute.xlu1 %1360 }
 0x12d   : > { %v3324_v13 = vpop.f32.mrf.mxu1  ;;  %v1263_v18 = vld [vmem:[#allocation2 + $0x20] sm:$0xff]  ;;  %v4108_v7 = vpop.f32.mrf.mxu0 }
 0x12e   : > { %1230 = vst.msk [vmem:[#allocation2 + $0x30] sm:$0xff] %vm452_vm0, %v1197_v2  ;;  %v1092_v15 = vadd.f32 %v3323_v3, %v3211_v17  ;;  %3457 = vmatmul.mubr.msk.bf16.vlgmr.msra.gmra.mxu0 %vm452_vm0, %v1516_v62  ;;  %v1487_v30 = vmul.f32 %v1346_v24, %v1263_v18  ;;  %v495_v17 = vld [vmem:[#allocation2 + $0x50] sm:$0xff]  ;;  %v3226_v24 = vadd.f32 %v4080_v31, %v4075_v21 }
 0x12f   : > { %v3325_v20 = vpop.f32.mrf.mxu1  ;;  %3523 = vmatpush3.bf16.msra.mxu0 %v3664_v1  ;;  %v3217_v1 = vadd.f32 %v4056_v45, %v4052_v39  ;;  %v4116_v36 = vpop.f32.mrf.mxu0  ;;  %v3220_v39 = vadd.f32 %v4064_v59, %v4060_v51  ;;  %v3223_v51 = vadd.f32 %v4070_v10, %v4066_v63 }
 0x130   : > { %v1198_v25 = vadd.f32 %v1092_v15, %v492_v4  ;;  %v3326_v26 = vadd.f32 %v3325_v20, %v3324_v13  ;;  %3524 = vmatprep.subr.bf16.mxu0 %v3665_v8  ;;  %v1366_v10 = vpop.permute.xlu0 %1365 }
 0x131   : > { %v1264_v29 = vld [vmem:[#allocation2 + $0x28] sm:$0xff]  ;;  %v3327_v33 = vpop.f32.mrf.mxu1  ;;  %v4118_v43 = vpop.f32.mrf.mxu0 }
 0x132   : > { %v1488_v35 = vmul.f32 %v1351_v28, %v1264_v29  ;;  %1231 = vst.msk [vmem:[#allocation2 + $0x38] sm:$0xff] %vm452_vm0, %v1198_v25  ;;  %v1097_v34 = vadd.f32 %v3326_v26, %v3214_v23  ;;  %v496_v23 = vld [vmem:[#allocation2 + $0x58] sm:$0xff]  ;;  %v1371_v29 = vpop.permute.xlu1 %1370 }
 0x133   : > { %v3328_v37 = vpop.f32.mrf.mxu1  ;;  %3525 = vmatpush3.bf16.msra.mxu0 %v3665_v8  ;;  %v4127_v52 = vpop.f32.mrf.mxu0 }
 0x134   : > { %v1517_v40 = vpack.c.bf16 %v1488_v35, %v1487_v30  ;;  %v1199_v41 = vadd.f32 %v1097_v34, %v493_v32  ;;  %v3329_v42 = vadd.f32 %v3328_v37, %v3327_v33  ;;  %3526 = vmatprep.subr.bf16.mxu0 %v3666_v9  ;;  %v497_v32 = vld [vmem:[#allocation2 + $0x60] sm:$0xff] }
 0x135   : > { %v3330_v46 = vpop.f32.mrf.mxu1  ;;  %v1265_v45 = vld [vmem:[#allocation2 + $0x30] sm:$0xff]  ;;  %v4132_v8 = vpop.f32.mrf.mxu0 }
 0x136   : > { %1232 = vst.msk [vmem:[#allocation2 + $0x40] sm:$0xff] %vm452_vm0, %v1199_v41  ;;  %v1100_v47 = vadd.f32 %v3329_v42, %v3217_v1  ;;  %3460 = vmatprep.mubr.msk.bf16.mxu0 %vm452_vm0, %v1517_v40  ;;  %v1489_v62 = vmul.f32 %v1356_v54, %v1265_v45  ;;  %v3229_v1 = vadd.f32 %v4088_v12, %v4082_v38  ;;  %v1376_v12 = vpop.permute.xlu0 %1375 }
 0x137   : > { %v3331_v50 = vpop.f32.mrf.mxu1  ;;  %3527 = vmatpush3.bf16.msra.mxu0 %v3666_v9  ;;  %v4138_v63 = vpop.f32.mrf.mxu0 }
 0x138   : > { %v1200_v55 = vadd.f32 %v1100_v47, %v494_v44  ;;  %v3332_v56 = vadd.f32 %v3331_v50, %v3330_v46  ;;  %3528 = vmatprep.subr.bf16.mxu0 %v3667_v14  ;;  %v3232_v47 = vadd.f32 %v4095_v19, %v4090_v49 }
 0x139   : > { %v1266_v60 = vld [vmem:[#allocation2 + $0x38] sm:$0xff]  ;;  %v3333_v61 = vpop.f32.mrf.mxu1  ;;  %v4143_v31 = vpop.f32.mrf.mxu0 }
 0x13a   : > { %v1490_v2 = vmul.f32 %v1361_v57, %v1266_v60  ;;  %1233 = vst.msk [vmem:[#allocation2 + $0x48] sm:$0xff] %vm452_vm0, %v1200_v55  ;;  %v1105_v3 = vadd.f32 %v3332_v56, %v3220_v39  ;;  %v1381_v55 = vpop.permute.xlu1 %1380  ;;  %v499_v56 = vld [vmem:[#allocation2 + $0x70] sm:$0xff] }
 0x13b   : > { %v3334_v59 = vpop.f32.mrf.mxu1  ;;  %3529 = vmatpush3.bf16.msra.mxu0 %v3667_v14  ;;  %v498_v14 = vld [vmem:[#allocation2 + $0x68] sm:$0xff]  ;;  %v3246_v38 = vpop.f32.mrf.mxu0 }
 0x13c   : > { %v1518_v4 = vpack.c.bf16 %v1490_v2, %v1489_v62  ;;  %v1201_v13 = vadd.f32 %v1105_v3, %v495_v17  ;;  %v3335_v15 = vadd.f32 %v3334_v59, %v3333_v61  ;;  %v3235_v61 = vadd.f32 %v4106_v27, %v4097_v5  ;;  %v1386_v27 = vpop.permute.xlu0 %1385 }
 0x13d   : > { %v3336_v18 = vpop.f32.mrf.mxu1  ;;  %v1267_v25 = vld [vmem:[#allocation2 + $0x40] sm:$0xff]  ;;  %v3248_v49 = vpop.f32.mrf.mxu0 }
 0x13e   : > { %1234 = vst.msk [vmem:[#allocation2 + $0x50] sm:$0xff] %vm452_vm0, %v1201_v13  ;;  %v1108_v20 = vadd.f32 %v3335_v15, %v3223_v51  ;;  %3461 = vmatmul.mubr.msk.bf16.gmra.mxu0 %vm452_vm0, %v1518_v4  ;;  %v1491_v35 = vmul.f32 %v1366_v10, %v1267_v25  ;;  %v500_v4 = vld [vmem:[#allocation2 + $0x78] sm:$0xff]  ;;  %v501_v10 = vld [vmem:[#allocation2 + $0x80] sm:$0xff] }
 0x13f   : > { %v3337_v26 = vpop.f32.mrf.mxu1  ;;  %v3249_v5 = vpop.f32.mrf.mxu0 }
 0x140   : > { %v1202_v9 = vadd.f32 %v1108_v20, %v496_v23  ;;  %v3338_v28 = vadd.f32 %v3337_v26, %v3336_v18  ;;  %v3238_v23 = vadd.f32 %v4116_v36, %v4108_v7  ;;  %v1391_v26 = vpop.permute.xlu1 %1390 }
 0x141   : > { %v3339_v33 = vpop.f32.mrf.mxu1  ;;  %v1268_v30 = vld [vmem:[#allocation2 + $0x48] sm:$0xff]  ;;  %v3251_v7 = vpop.f32.mrf.mxu0 }
 0x142   : > { %1235 = vst.msk [vmem:[#allocation2 + $0x58] sm:$0xff] %vm452_vm0, %v1202_v9  ;;  %v1113_v34 = vadd.f32 %v3338_v28, %v3226_v24  ;;  %v1492_v37 = vmul.f32 %v1371_v29, %v1268_v30 }
 0x143   : > { %v3340_v21 = vpop.f32.mrf.mxu1 }
 0x144   : > { %v1203_v40 = vadd.f32 %v1113_v34, %v497_v32  ;;  %v3341_v41 = vadd.f32 %v3340_v21, %v3339_v33  ;;  %v1519_v42 = vpack.c.bf16 %v1492_v37, %v1491_v35  ;;  %v3241_v32 = vadd.f32 %v4127_v52, %v4118_v43  ;;  %v502_v37 = vld [vmem:[#allocation2 + $0x88] sm:$0xff]  ;;  %v3252_v43 = vpop.f32.mrf.mxu0  ;;  %v1396_v52 = vpop.permute.xlu0 %1395 }
 0x145   : > { %v3342_v44 = vpop.f32.mrf.mxu1  ;;  %v1269_v45 = vld [vmem:[#allocation2 + $0x50] sm:$0xff] }
 0x146   : > { %1236 = vst.msk [vmem:[#allocation2 + $0x60] sm:$0xff] %vm452_vm0, %v1203_v40  ;;  %v1116_v46 = vadd.f32 %v3341_v41, %v3229_v1  ;;  %3464 = vmatprep.mubr.msk.bf16.mxu0 %vm452_vm0, %v1519_v42  ;;  %v1493_v62 = vmul.f32 %v1376_v12, %v1269_v45  ;;  %v3244_v41 = vadd.f32 %v4138_v63, %v4132_v8 }
 0x147   : > { %v3343_v39 = vpop.f32.mrf.mxu1 }
 0x148   : > { %v1204_v50 = vadd.f32 %v1116_v46, %v498_v14  ;;  %v3344_v54 = vadd.f32 %v3343_v39, %v3342_v44  ;;  %v503_v39 = vld [vmem:[#allocation2 + $0x90] sm:$0xff] }
 0x149   : > { %v3345_v57 = vpop.f32.mrf.mxu1  ;;  %v1270_v60 = vld [vmem:[#allocation2 + $0x58] sm:$0xff] }
 0x14a   : > { %1237 = vst.msk [vmem:[#allocation2 + $0x68] sm:$0xff] %vm452_vm0, %v1204_v50  ;;  %v1121_v17 = vadd.f32 %v3344_v54, %v3232_v47  ;;  %v1494_v2 = vmul.f32 %v1381_v55, %v1270_v60  ;;  %v1401_v47 = vpop.permute.xlu1 %1400  ;;  %v3247_v54 = vadd.f32 %v3246_v38, %v4143_v31  ;;  %v3254_v60 = vpop.f32.mrf.mxu0 }
 0x14b   : > { %v3346_v3 = vpop.f32.mrf.mxu1 }
 0x14c   : > { %v1205_v19 = vadd.f32 %v1121_v17, %v499_v56  ;;  %v3347_v51 = vadd.f32 %v3346_v3, %v3345_v57  ;;  %v1520_v59 = vpack.c.bf16 %v1494_v2, %v1493_v62  ;;  %v3250_v3 = vadd.f32 %v3249_v5, %v3248_v49 }
 0x14d   : > { %v3348_v13 = vpop.f32.mrf.mxu1  ;;  %v1271_v20 = vld [vmem:[#allocation2 + $0x60] sm:$0xff] }
 0x14e   : > { %1238 = vst.msk [vmem:[#allocation2 + $0x70] sm:$0xff] %vm452_vm0, %v1205_v19  ;;  %v1124_v15 = vadd.f32 %v3347_v51, %v3235_v61  ;;  %3465 = vmatmul.mubr.msk.bf16.gmra.mxu0 %vm452_vm0, %v1520_v59  ;;  %v1495_v33 = vmul.f32 %v1386_v27, %v1271_v20  ;;  %v504_v61 = vld [vmem:[#allocation2 + $0x98] sm:$0xff]  ;;  %v3255_v59 = vpop.f32.mrf.mxu0  ;;  %v3253_v27 = vadd.f32 %v3252_v43, %v3251_v7 }
 0x14f   : > { %v3349_v18 = vpop.f32.mrf.mxu1 }
 0x150   : > { %v1206_v24 = vadd.f32 %v1124_v15, %v500_v4  ;;  %v3350_v25 = vadd.f32 %v3349_v18, %v3348_v13  ;;  %v1406_v4 = vpop.permute.xlu0 %1405  ;;  %v1411_v13 = vpop.permute.xlu1 %1410  ;;  %v505_v15 = vld [vmem:[#allocation2 + $0xa0] sm:$0xff] }
 0x151   : > { %v3351_v9 = vpop.f32.mrf.mxu1  ;;  %v1272_v28 = vld [vmem:[#allocation2 + $0x68] sm:$0xff] }
 0x152   : > { %1239 = vst.msk [vmem:[#allocation2 + $0x78] sm:$0xff] %vm452_vm0, %v1206_v24  ;;  %v1129_v29 = vadd.f32 %v3350_v25, %v3238_v23  ;;  %v1496_v30 = vmul.f32 %v1391_v26, %v1272_v28  ;;  %v506_v28 = vld [vmem:[#allocation2 + $0xa8] sm:$0xff] }
 0x153   : > { %v3352_v35 = vpop.f32.mrf.mxu1 }
 0x154   : > { %v1207_v36 = vadd.f32 %v1129_v29, %v501_v10  ;;  %v3353_v34 = vadd.f32 %v3352_v35, %v3351_v9  ;;  %v1521_v1 = vpack.c.bf16 %v1496_v30, %v1495_v33  ;;  %v3257_v10 = vpop.f32.mrf.mxu0  ;;  %v3256_v33 = vadd.f32 %v3255_v59, %v3254_v60 }
 0x155   : > { %v3354_v21 = vpop.f32.mrf.mxu1  ;;  %v1273_v14 = vld [vmem:[#allocation2 + $0x70] sm:$0xff] }
 0x156   : > { %1240 = vst.msk [vmem:[#allocation2 + $0x80] sm:$0xff] %vm452_vm0, %v1207_v36  ;;  %v1132_v40 = vadd.f32 %v3353_v34, %v3241_v32  ;;  %3468 = vmatprep.mubr.msk.bf16.mxu0 %vm452_vm0, %v1521_v1  ;;  %v1497_v55 = vmul.f32 %v1396_v52, %v1273_v14  ;;  %v3258_v35 = vpop.f32.mrf.mxu0  ;;  %v1416_v34 = vpop.permute.xlu0 %1415 }
 0x157   : > { %v3355_v42 = vpop.f32.mrf.mxu1  ;;  %v3259_v14 = vadd.f32 %v3258_v35, %v3257_v10 }
 0x158   : > { %v1208_v44 = vadd.f32 %v1132_v40, %v502_v37  ;;  %v3356_v46 = vadd.f32 %v3355_v42, %v3354_v21  ;;  %v1421_v37 = vpop.permute.xlu1 %1420  ;;  %v507_v21 = vld [vmem:[#allocation2 + $0xb0] sm:$0xff] }
 0x159   : > { %v3357_v45 = vpop.f32.mrf.mxu1  ;;  %v1274_v12 = vld [vmem:[#allocation2 + $0x78] sm:$0xff] }
 0x15a   : > { %1241 = vst.msk [vmem:[#allocation2 + $0x88] sm:$0xff] %vm452_vm0, %v1208_v44  ;;  %v1137_v50 = vadd.f32 %v3356_v46, %v3244_v41  ;;  %v1498_v56 = vmul.f32 %v1401_v47, %v1274_v12  ;;  %v508_v12 = vld [vmem:[#allocation2 + $0xb8] sm:$0xff] }
 0x15b   : > { %v3358_v57 = vpop.f32.mrf.mxu1 }
 0x15c   : > { %v1209_v8 = vadd.f32 %v1137_v50, %v503_v39  ;;  %v3359_v63 = vadd.f32 %v3358_v57, %v3357_v45  ;;  %v1522_v17 = vpack.c.bf16 %v1498_v56, %v1497_v55  ;;  %v3668_v45 = vld [vmem:[%s4353_s7 + $0x18] sm:$0xff]   ;;  %v1426_v57 = vpop.permute.xlu0 %1425 }
 0x15d   : > { %v3360_v62 = vpop.f32.mrf.mxu1  ;;  %v1275_v51 = vld [vmem:[#allocation2 + $0x80] sm:$0xff]  ;;  %3530 = vmatprep.subr.bf16.mxu0 %v3668_v45 }
 0x15e   : > { %1242 = vst.msk [vmem:[#allocation2 + $0x90] sm:$0xff] %vm452_vm0, %v1209_v8  ;;  %v1140_v2 = vadd.f32 %v3359_v63, %v3247_v54  ;;  %3469 = vmatmul.mubr.msk.bf16.gmra.mxu0 %vm452_vm0, %v1522_v17  ;;  %v1499_v24 = vmul.f32 %v1406_v4, %v1275_v51  ;;  %v3669_v63 = vld [vmem:[%s4353_s7 + $0x10] sm:$0xff]   ;;  %v1431_v17 = vpop.permute.xlu1 %1430 }
 0x15f   : > { %v3361_v19 = vpop.f32.mrf.mxu1  ;;  %3531 = vmatpush3.bf16.msra.mxu0 %v3668_v45 }
 0x160   : > { %v1210_v31 = vadd.f32 %v1140_v2, %v504_v61  ;;  %v3362_v38 = vadd.f32 %v3361_v19, %v3360_v62  ;;  %v509_v61 = vld [vmem:[#allocation2 + $0xc0] sm:$0xff]  ;;  %3532 = vmatprep.subr.bf16.mxu0 %v3669_v63 }
 0x161   : > { %v3363_v23 = vpop.f32.mrf.mxu1  ;;  %v1276_v18 = vld [vmem:[#allocation2 + $0x88] sm:$0xff] }
 0x162   : > { %1243 = vst.msk [vmem:[#allocation2 + $0x98] sm:$0xff] %vm452_vm0, %v1210_v31  ;;  %v1145_v20 = vadd.f32 %v3362_v38, %v3250_v3  ;;  %v1500_v25 = vmul.f32 %v1411_v13, %v1276_v18  ;;  %v3670_v13 = vld [vmem:[%s4353_s7 + $0x8] sm:$0xff]   ;;  %v1441_v10 = vpop.permute.xlu1 %1440 }
 0x163   : > { %v3364_v26 = vpop.f32.mrf.mxu1  ;;  %3533 = vmatpush3.bf16.msra.mxu0 %v3669_v63  ;;  %v515_v63 = vld [vmem:[#allocation2 + $0xf0] sm:$0xff] }
 0x164   : > { %v1211_v9 = vadd.f32 %v1145_v20, %v505_v15  ;;  %v3365_v49 = vadd.f32 %v3364_v26, %v3363_v23  ;;  %v1523_v5 = vpack.c.bf16 %v1500_v25, %v1499_v24  ;;  %v510_v15 = vld [vmem:[#allocation2 + $0xc8] sm:$0xff]  ;;  %3534 = vmatprep.subr.bf16.mxu0 %v3670_v13  ;;  %v3671_v26 = vld [vmem:[%s4353_s7] sm:$0xff]  }
 0x165   : > { %v3366_v29 = vpop.f32.mrf.mxu1  ;;  %v1277_v36 = vld [vmem:[#allocation2 + $0x90] sm:$0xff] }
 0x166   : > { %1244 = vst.msk [vmem:[#allocation2 + $0xa0] sm:$0xff] %vm452_vm0, %v1211_v9  ;;  %v1148_v32 = vadd.f32 %v3365_v49, %v3253_v27  ;;  %3472 = vmatprep.mubr.msk.bf16.mxu0 %vm452_vm0, %v1523_v5  ;;  %v1501_v43 = vmul.f32 %v1416_v34, %v1277_v36  ;;  %v1436_v27 = vpop.permute.xlu0 %1435  ;;  %v511_v9 = vld [vmem:[#allocation2 + $0xd0] sm:$0xff]  ;;  %v512_v36 = vld [vmem:[#allocation2 + $0xd8] sm:$0xff] }
 0x167   : > { %v3367_v30 = vpop.f32.mrf.mxu1  ;;  %3535 = vmatpush3.bf16.msra.mxu0 %v3670_v13 }
 0x168   : > { %v1212_v7 = vadd.f32 %v1148_v32, %v506_v28  ;;  %v3368_v1 = vadd.f32 %v3367_v30, %v3366_v29  ;;  %3536 = vmatprep.subr.bf16.mxu0 %v3671_v26 }
 0x169   : > { %v3369_v40 = vpop.f32.mrf.mxu1  ;;  %v1278_v41 = vld [vmem:[#allocation2 + $0x98] sm:$0xff] }
 0x16a   : > { %1245 = vst.msk [vmem:[#allocation2 + $0xa8] sm:$0xff] %vm452_vm0, %v1212_v7  ;;  %v1153_v42 = vadd.f32 %v3368_v1, %v3256_v33  ;;  %v1502_v52 = vmul.f32 %v1421_v37, %v1278_v41  ;;  %v1451_v41 = vpop.permute.xlu1 %1450 }
 0x16b   : > { %v3370_v44 = vpop.f32.mrf.mxu1  ;;  %3537 = vmatpush3.bf16.msra.mxu0 %v3671_v26 }
 0x16c   : > { %v1213_v46 = vadd.f32 %v1153_v42, %v507_v21  ;;  %v3371_v47 = vadd.f32 %v3370_v44, %v3369_v40  ;;  %v1524_v39 = vpack.c.bf16 %v1502_v52, %v1501_v43  ;;  %v1446_v21 = vpop.permute.xlu0 %1445  ;;  %v513_v42 = vld [vmem:[#allocation2 + $0xe0] sm:$0xff] }
 0x16d   : > { %v3372_v50 = vpop.f32.mrf.mxu1  ;;  %v1279_v56 = vld [vmem:[#allocation2 + $0xa0] sm:$0xff] }
 0x16e   : > { %1246 = vst.msk [vmem:[#allocation2 + $0xb0] sm:$0xff] %vm452_vm0, %v1213_v46  ;;  %v1156_v54 = vadd.f32 %v3371_v47, %v3259_v14  ;;  %3473 = vmatmul.mubr.msk.bf16.gmra.mxu0 %vm452_vm0, %v1524_v39  ;;  %v1503_v19 = vmul.f32 %v1426_v57, %v1279_v56 }
 0x16f   : > { %v3373_v55 = vpop.f32.mrf.mxu1 }
 0x170   : > { %v1214_v60 = vadd.f32 %v1156_v54, %v508_v12  ;;  %v3374_v8 = vadd.f32 %v3373_v55, %v3372_v50  ;;  %v514_v12 = vld [vmem:[#allocation2 + $0xe8] sm:$0xff]  ;;  %v1456_v57 = vpop.permute.xlu0 %1455 }
 0x171   : > { %v3375_v62 = vpop.f32.mrf.mxu1  ;;  %v1280_v2 = vld [vmem:[#allocation2 + $0xa8] sm:$0xff] }
 0x172   : > { %1247 = vst.msk [vmem:[#allocation2 + $0xb8] sm:$0xff] %vm452_vm0, %v1214_v60  ;;  %v1161_v3 = vadd.f32 %v3374_v8, %v4010_v48  ;;  %v1504_v51 = vmul.f32 %v1431_v17, %v1280_v2 }
 0x173   : > { %v3376_v59 = vpop.f32.mrf.mxu1 }
 0x174   : > { %v1215_v4 = vadd.f32 %v1161_v3, %v509_v61  ;;  %v3377_v31 = vadd.f32 %v3376_v59, %v3375_v62  ;;  %v1525_v38 = vpack.c.bf16 %v1504_v51, %v1503_v19 }
 0x175   : > { %v3378_v23 = vpop.f32.mrf.mxu1  ;;  %v1281_v20 = vld [vmem:[#allocation2 + $0xb0] sm:$0xff] }
 0x176   : > { %1248 = vst.msk [vmem:[#allocation2 + $0xc0] sm:$0xff] %vm452_vm0, %v1215_v4  ;;  %v1164_v18 = vadd.f32 %v3377_v31, %v4012_v53  ;;  %3476 = vmatprep.mubr.msk.bf16.mxu0 %vm452_vm0, %v1525_v38  ;;  %v1505_v28 = vmul.f32 %v1436_v27, %v1281_v20  ;;  %v516_v4 = vld [vmem:[#allocation2 + $0xf8] sm:$0xff] }
 0x177   : > { %v3379_v48 = vpop.f32.mrf.mxu1 }
 0x178   : > { %v1216_v24 = vadd.f32 %v1164_v18, %v510_v15  ;;  %v3380_v25 = vadd.f32 %v3379_v48, %v3378_v23  ;;  %v1466_v15 = vpop.permute.xlu0 %1465 }
 0x179   : > { %v3381_v49 = vpop.f32.mrf.mxu1  ;;  %v1282_v5 = vld [vmem:[#allocation2 + $0xb8] sm:$0xff] }
 0x17a   : > { %1249 = vst.msk [vmem:[#allocation2 + $0xc8] sm:$0xff] %vm452_vm0, %v1216_v24  ;;  %v1169_v53 = vadd.f32 %v3380_v25, %v4014_v58  ;;  %v1506_v29 = vmul.f32 %v1441_v10, %v1282_v5 }
 0x17b   : > { %v3382_v32 = vpop.f32.mrf.mxu1 }
 0x17c   : > { %v1217_v33 = vadd.f32 %v1169_v53, %v511_v9  ;;  %v3383_v30 = vadd.f32 %v3382_v32, %v3381_v49  ;;  %v1526_v35 = vpack.c.bf16 %v1506_v29, %v1505_v28  ;;  %v1476_v24 = vpop.permute.xlu0 %1475  ;;  %v4211_v32 = vld [vmem:[%s4352_s6] ss:$0 sm:$0xff] }
 0x17d   : > { %v3384_v34 = vpop.f32.mrf.mxu1  ;;  %v1283_v37 = vld [vmem:[#allocation2 + $0xc0] sm:$0xff] }
 0x17e   : > { %1250 = vst.msk [vmem:[#allocation2 + $0xd0] sm:$0xff] %vm452_vm0, %v1217_v33  ;;  %v1172_v7 = vadd.f32 %v3383_v30, %v4017_v0  ;;  %3477 = vmatmul.mubr.msk.bf16.gmra.mxu0 %vm452_vm0, %v1526_v35  ;;  %v1507_v44 = vmul.f32 %v1446_v21, %v1283_v37 }
 0x17f   : > { %v3385_v1 = vpop.f32.mrf.mxu1 }
 0x180   : > { %v1218_v58 = vadd.f32 %v1172_v7, %v512_v36  ;;  %v3386_v40 = vadd.f32 %v3385_v1, %v3384_v34 }
 0x181   : > { %v3387_v14 = vpop.f32.mrf.mxu1  ;;  %v1284_v43 = vld [vmem:[#allocation2 + $0xc8] sm:$0xff] }
 0x182   : > { %1251 = vst.msk [vmem:[#allocation2 + $0xd8] sm:$0xff] %vm452_vm0, %v1218_v58  ;;  %v1177_v52 = vadd.f32 %v3386_v40, %v4022_v6  ;;  %v1508_v46 = vmul.f32 %v1451_v41, %v1284_v43  ;;  %v1461_v6 = vpop.permute.xlu1 %1460 }
 0x183   : > { %v3388_v47 = vpop.f32.mrf.mxu1 }
 0x184   : > { %v1219_v39 = vadd.f32 %v1177_v52, %v513_v42  ;;  %v3389_v0 = vadd.f32 %v3388_v47, %v3387_v14  ;;  %v1527_v45 = vpack.c.bf16 %v1508_v46, %v1507_v44 }
 0x185   : > { %v3390_v50 = vpop.f32.mrf.mxu1  ;;  %v1285_v56 = vld [vmem:[#allocation2 + $0xd0] sm:$0xff] }
 0x186   : > { %1252 = vst.msk [vmem:[#allocation2 + $0xe0] sm:$0xff] %vm452_vm0, %v1219_v39  ;;  %v1180_v54 = vadd.f32 %v3389_v0, %v4026_v11  ;;  %3480 = vmatprep.mubr.msk.bf16.mxu0 %vm452_vm0, %v1527_v45  ;;  %v1509_v2 = vmul.f32 %v1456_v57, %v1285_v56  ;;  %v1471_v23 = vpop.permute.xlu1 %1470 }
 0x187   : > { %v3391_v55 = vpop.f32.mrf.mxu1 }
 0x188   : > { %v1220_v60 = vadd.f32 %v1180_v54, %v514_v12  ;;  %v3392_v8 = vadd.f32 %v3391_v55, %v3390_v50 }
 0x189   : > { %v3393_v17 = vpop.f32.mrf.mxu1  ;;  %v1286_v61 = vld [vmem:[#allocation2 + $0xd8] sm:$0xff] }
 0x18a   : > { %1253 = vst.msk [vmem:[#allocation2 + $0xe8] sm:$0xff] %vm452_vm0, %v1220_v60  ;;  %v1185_v62 = vadd.f32 %v3392_v8, %v4032_v16  ;;  %v1510_v3 = vmul.f32 %v1461_v6, %v1286_v61  ;;  %v1481_v25 = vpop.permute.xlu1 %1480 }
 0x18b   : > { %v3394_v19 = vpop.f32.mrf.mxu1 }
 0x18c   : > { %v1221_v51 = vadd.f32 %v1185_v62, %v515_v63  ;;  %v3395_v11 = vadd.f32 %v3394_v19, %v3393_v17  ;;  %v1528_v59 = vpack.c.bf16 %v1510_v3, %v1509_v2 }
 0x18d   : > { %v1287_v38 = vld [vmem:[#allocation2 + $0xe0] sm:$0xff]  ;;  %v3492_v49 = vpop.f32.mrf.mxu1 }
 0x18e   : > { %1254 = vst.msk [vmem:[#allocation2 + $0xf0] sm:$0xff] %vm452_vm0, %v1221_v51  ;;  %v1188_v31 = vadd.f32 %v3395_v11, %v4039_v22  ;;  %3481 = vmatmul.mubr.msk.bf16.gmra.mxu0 %vm452_vm0, %v1528_v59  ;;  %v1511_v16 = vmul.f32 %v1466_v15, %v1287_v38 }
 0x18f   : > { %v1950_v5 = vpop.f32.mrf.mxu1 }
 0x190   : > { %v1222_v13 = vadd.f32 %v1188_v31, %v516_v4 }
 0x191   : > { %v1288_v18 = vld [vmem:[#allocation2 + $0xe8] sm:$0xff]  ;;  %v3493_v28 = vpop.f32.mrf.mxu1 }
 0x192   : > { %1255 = vst.msk [vmem:[#allocation2 + $0xf8] sm:$0xff] %vm452_vm0, %v1222_v13  ;;  %v1512_v48 = vmul.f32 %v1471_v23, %v1288_v18 }
 0x193   : > { %v1953_v36 = vpop.f32.mrf.mxu1 }
 0x194   : > { %v1529_v20 = vpack.c.bf16 %v1512_v48, %v1511_v16 }
 0x195   : > { %v1289_v27 = vld [vmem:[#allocation2 + $0xf0] sm:$0xff]  ;;  %v3496_v40 = vpop.f32.mrf.mxu1 }
 0x196   : > { %3484 = vmatprep.mubr.msk.bf16.mxu0 %vm452_vm0, %v1529_v20  ;;  %v1513_v10 = vmul.f32 %v1476_v24, %v1289_v27 }
 0x197   : > { %v1966_v46 = vpop.f32.mrf.mxu1 }
 0x199   : > { %v1290_v26 = vld [vmem:[#allocation2 + $0xf8] sm:$0xff]  ;;  %v3497_v0 = vpop.f32.mrf.mxu1 }
 0x19a   : > { %v1514_v22 = vmul.f32 %v1481_v25, %v1290_v26 }
 0x19b   : > { %v1969_v55 = vpop.f32.mrf.mxu1 }
 0x19c   : > { %v1530_v9 = vpack.c.bf16 %v1514_v22, %v1513_v10 }
 0x19d   : > { %v3500_v17 = vpop.f32.mrf.mxu1 }
 0x19e   : > { %3485 = vmatmul.mubr.msk.bf16.gmra.mxu0 %vm452_vm0, %v1530_v9 }
 0x19f   : > { %v1982_v11 = vpop.f32.mrf.mxu1 }
 0x1a1   : > { %v3501_v31 = vpop.f32.mrf.mxu1 }
 0x1a3   : > { %v1985_v18 = vpop.f32.mrf.mxu1 }
 0x1a5   : > { %v3504_v26 = vpop.f32.mrf.mxu1 }
 0x1ee   : > { %v3458_v53 = vpop.f32.mrf.mxu0 }
 0x1ef   : > { %v1959_v29 = vadd.f32 %v3492_v49, %v3458_v53 }
 0x1f0   : > { %v1655_v33 = vpop.f32.mrf.mxu0 }
 0x1f1   : > { %v1951_v30 = vadd.f32 %v1950_v5, %v1655_v33  ;;  %v2086_v34 = vadd.f32 %v4211_v32, %v1959_v29 }
 0x1f2   : > { %v3459_v35 = vpop.f32.mrf.mxu0 }
 0x1f3   : > { %v1962_v7 = vadd.f32 %v3493_v28, %v3459_v35  ;;  %v2084_v37 = vadd.f32 %v4211_v32, %v1951_v30  ;;  %v2118_v41 = vmax.f32 %v2086_v34, 0.0  ;;  %v1998_v28 = vpop.f32.mrf.mxu1 }
 0x1f4   : > { %v1658_v1 = vpop.f32.mrf.mxu0 }
 0x1f5   : > { %v2087_v21 = vadd.f32 %v4211_v32, %v1962_v7  ;;  %v1954_v58 = vadd.f32 %v1953_v36, %v1658_v1  ;;  %v2116_v43 = vmax.f32 %v2084_v37, 0.0  ;;  %v3505_v30 = vpop.f32.mrf.mxu1 }
 0x1f7   : > { %v2119_v42 = vmax.f32 %v2087_v21, 0.0  ;;  %v2085_v14 = vadd.f32 %v4211_v32, %v1954_v58  ;;  %v2001_v1 = vpop.f32.mrf.mxu1 }
 0x1f9   : > { %v2149_v52 = vpack.c.bf16 %v2119_v42, %v2118_v41  ;;  %v2117_v44 = vmax.f32 %v2085_v14, 0.0  ;;  %v3508_v14 = vpop.f32.mrf.mxu1 }
 0x1fb   : > { %3157 = vst [vmem:[%s4221_s16 + $0x8] sm:$0xff] %v2149_v52   ;;  %v2148_v47 = vpack.c.bf16 %v2117_v44, %v2116_v43 }
 0x1fd   : > { %3081 = vst [vmem:[%s4221_s16] sm:$0xff] %v2148_v47   ;;  %3538 = vmatprep.mubr.bf16.mxu0 %v2148_v47 }
 0x1fe   : > { %v3462_v39 = vpop.f32.mrf.mxu0  ;;  %3539 = vmatmul.mubr.bf16.vlgmr.msra.gmra.mxu0 %v2149_v52 }
 0x1ff   : > { %v1975_v45 = vadd.f32 %v3496_v40, %v3462_v39 }
 0x200   : > { %v1671_v12 = vpop.f32.mrf.mxu0 }
 0x201   : > { %v1967_v50 = vadd.f32 %v1966_v46, %v1671_v12  ;;  %v2090_v56 = vadd.f32 %v4211_v32, %v1975_v45 }
 0x202   : > { %v3463_v54 = vpop.f32.mrf.mxu0 }
 0x203   : > { %v1978_v57 = vadd.f32 %v3497_v0, %v3463_v54  ;;  %v2088_v8 = vadd.f32 %v4211_v32, %v1967_v50  ;;  %v2122_v61 = vmax.f32 %v2090_v56, 0.0  ;;  %v2014_v0 = vpop.f32.mrf.mxu1 }
 0x204   : > { %v1674_v60 = vpop.f32.mrf.mxu0 }
 0x205   : > { %v2091_v6 = vadd.f32 %v4211_v32, %v1978_v57  ;;  %v1970_v63 = vadd.f32 %v1969_v55, %v1674_v60  ;;  %v2120_v3 = vmax.f32 %v2088_v8, 0.0  ;;  %v3509_v50 = vpop.f32.mrf.mxu1 }
 0x207   : > { %v2123_v62 = vmax.f32 %v2091_v6, 0.0  ;;  %v2089_v2 = vadd.f32 %v4211_v32, %v1970_v63  ;;  %v2017_v60 = vpop.f32.mrf.mxu1 }
 0x209   : > { %v2121_v19 = vmax.f32 %v2089_v2, 0.0  ;;  %v2151_v51 = vpack.c.bf16 %v2123_v62, %v2122_v61  ;;  %v3512_v2 = vpop.f32.mrf.mxu1 }
 0x20b   : > { %v2150_v59 = vpack.c.bf16 %v2121_v19, %v2120_v3  ;;  %3159 = vst [vmem:[%s4221_s16 + $0x18] sm:$0xff] %v2151_v51  }
 0x20d   : > { %3158 = vst [vmem:[%s4221_s16 + $0x10] sm:$0xff] %v2150_v59   ;;  %3542 = vmatprep.mubr.bf16.mxu0 %v2150_v59 }
 0x20e   : > { %v3466_v4 = vpop.f32.mrf.mxu0  ;;  %3543 = vmatmul.mubr.bf16.gmra.mxu0 %v2151_v51 }
 0x20f   : > { %v1991_v38 = vadd.f32 %v3500_v17, %v3466_v4 }
 0x210   : > { %v1687_v13 = vpop.f32.mrf.mxu0 }
 0x211   : > { %v1983_v15 = vadd.f32 %v1982_v11, %v1687_v13  ;;  %v2094_v16 = vadd.f32 %v4211_v32, %v1991_v38 }
 0x212   : > { %v3467_v23 = vpop.f32.mrf.mxu0 }
 0x213   : > { %v1994_v48 = vadd.f32 %v3501_v31, %v3467_v23  ;;  %v2092_v27 = vadd.f32 %v4211_v32, %v1983_v15  ;;  %v2126_v10 = vmax.f32 %v2094_v16, 0.0  ;;  %v2030_v31 = vpop.f32.mrf.mxu1 }
 0x214   : > { %v1690_v20 = vpop.f32.mrf.mxu0 }
 0x215   : > { %v2095_v24 = vadd.f32 %v4211_v32, %v1994_v48  ;;  %v1986_v25 = vadd.f32 %v1985_v18, %v1690_v20  ;;  %v2124_v49 = vmax.f32 %v2092_v27, 0.0  ;;  %v3513_v15 = vpop.f32.mrf.mxu1 }
 0x217   : > { %v2127_v22 = vmax.f32 %v2095_v24, 0.0  ;;  %v2093_v9 = vadd.f32 %v4211_v32, %v1986_v25  ;;  %v2033_v20 = vpop.f32.mrf.mxu1 }
 0x219   : > { %v2125_v5 = vmax.f32 %v2093_v9, 0.0  ;;  %v2153_v53 = vpack.c.bf16 %v2127_v22, %v2126_v10  ;;  %v3516_v9 = vpop.f32.mrf.mxu1 }
 0x21b   : > { %v2152_v29 = vpack.c.bf16 %v2125_v5, %v2124_v49  ;;  %3161 = vst [vmem:[%s4221_s16 + $0x28] sm:$0xff] %v2153_v53  }
 0x21d   : > { %3160 = vst [vmem:[%s4221_s16 + $0x20] sm:$0xff] %v2152_v29   ;;  %3546 = vmatprep.mubr.bf16.mxu0 %v2152_v29 }
 0x21e   : > { %v3470_v33 = vpop.f32.mrf.mxu0  ;;  %3547 = vmatmul.mubr.bf16.gmra.mxu0 %v2153_v53 }
 0x21f   : > { %v2007_v35 = vadd.f32 %v3504_v26, %v3470_v33 }
 0x220   : > { %v1703_v36 = vpop.f32.mrf.mxu0 }
 0x221   : > { %v1999_v34 = vadd.f32 %v1998_v28, %v1703_v36  ;;  %v2098_v37 = vadd.f32 %v4211_v32, %v2007_v35 }
 0x222   : > { %v3471_v7 = vpop.f32.mrf.mxu0 }
 0x223   : > { %v2010_v21 = vadd.f32 %v3505_v30, %v3471_v7  ;;  %v2096_v40 = vadd.f32 %v4211_v32, %v1999_v34  ;;  %v2130_v43 = vmax.f32 %v2098_v37, 0.0  ;;  %v2046_v30 = vpop.f32.mrf.mxu1 }
 0x224   : > { %v1706_v58 = vpop.f32.mrf.mxu0 }
 0x225   : > { %v2099_v41 = vadd.f32 %v4211_v32, %v2010_v21  ;;  %v2002_v42 = vadd.f32 %v2001_v1, %v1706_v58  ;;  %v2128_v46 = vmax.f32 %v2096_v40, 0.0  ;;  %v3517_v34 = vpop.f32.mrf.mxu1 }
 0x227   : > { %v2131_v52 = vmax.f32 %v2099_v41, 0.0  ;;  %v2097_v44 = vadd.f32 %v4211_v32, %v2002_v42  ;;  %v2049_v58 = vpop.f32.mrf.mxu1 }
 0x229   : > { %v2129_v47 = vmax.f32 %v2097_v44, 0.0  ;;  %v2155_v39 = vpack.c.bf16 %v2131_v52, %v2130_v43 }
 0x22b   : > { %v2154_v45 = vpack.c.bf16 %v2129_v47, %v2128_v46  ;;  %3163 = vst [vmem:[%s4221_s16 + $0x38] sm:$0xff] %v2155_v39  }
 0x22d   : > { %3162 = vst [vmem:[%s4221_s16 + $0x30] sm:$0xff] %v2154_v45   ;;  %3550 = vmatprep.mubr.bf16.mxu0 %v2154_v45 }
 0x22e   : > { %v3474_v12 = vpop.f32.mrf.mxu0  ;;  %3551 = vmatmul.mubr.bf16.gmra.mxu0 %v2155_v39  ;;  %v3520_v39 = vpop.f32.mrf.mxu1 }
 0x22f   : > { %v2023_v54 = vadd.f32 %v3508_v14, %v3474_v12 }
 0x230   : > { %v1719_v55 = vpop.f32.mrf.mxu0 }
 0x231   : > { %v2015_v56 = vadd.f32 %v2014_v0, %v1719_v55  ;;  %v2102_v8 = vadd.f32 %v4211_v32, %v2023_v54  ;;  %v2062_v54 = vpop.f32.mrf.mxu1 }
 0x232   : > { %v3475_v57 = vpop.f32.mrf.mxu0 }
 0x233   : > { %v2026_v6 = vadd.f32 %v3509_v50, %v3475_v57  ;;  %v2100_v17 = vadd.f32 %v4211_v32, %v2015_v56  ;;  %v2134_v3 = vmax.f32 %v2102_v8, 0.0  ;;  %v3521_v57 = vpop.f32.mrf.mxu1 }
 0x234   : > { %v1722_v63 = vpop.f32.mrf.mxu0 }
 0x235   : > { %v2103_v61 = vadd.f32 %v4211_v32, %v2026_v6  ;;  %v2018_v62 = vadd.f32 %v2017_v60, %v1722_v63  ;;  %v2132_v11 = vmax.f32 %v2100_v17, 0.0 }
 0x237   : > { %v2135_v19 = vmax.f32 %v2103_v61, 0.0  ;;  %v2101_v51 = vadd.f32 %v4211_v32, %v2018_v62  ;;  %v2065_v61 = vpop.f32.mrf.mxu1 }
 0x239   : > { %v2133_v59 = vmax.f32 %v2101_v51, 0.0  ;;  %v2157_v4 = vpack.c.bf16 %v2135_v19, %v2134_v3 }
 0x23b   : > { %v2156_v38 = vpack.c.bf16 %v2133_v59, %v2132_v11  ;;  %3165 = vst [vmem:[%s4221_s16 + $0x48] sm:$0xff] %v2157_v4  }
 0x23d   : > { %3164 = vst [vmem:[%s4221_s16 + $0x40] sm:$0xff] %v2156_v38   ;;  %3554 = vmatprep.mubr.bf16.mxu0 %v2156_v38 }
 0x23e   : > { %v3478_v13 = vpop.f32.mrf.mxu0  ;;  %3555 = vmatmul.mubr.bf16.gmra.mxu0 %v2157_v4 }
 0x23f   : > { %v2039_v23 = vadd.f32 %v3512_v2, %v3478_v13 }
 0x240   : > { %v1735_v18 = vpop.f32.mrf.mxu0 }
 0x241   : > { %v2031_v16 = vadd.f32 %v2030_v31, %v1735_v18  ;;  %v2106_v27 = vadd.f32 %v4211_v32, %v2039_v23 }
 0x242   : > { %v3479_v48 = vpop.f32.mrf.mxu0 }
 0x243   : > { %v2042_v24 = vadd.f32 %v3513_v15, %v3479_v48  ;;  %v2104_v26 = vadd.f32 %v4211_v32, %v2031_v16  ;;  %v2138_v49 = vmax.f32 %v2106_v27, 0.0 }
 0x244   : > { %v1738_v25 = vpop.f32.mrf.mxu0 }
 0x245   : > { %v2107_v10 = vadd.f32 %v4211_v32, %v2042_v24  ;;  %v2034_v22 = vadd.f32 %v2033_v20, %v1738_v25  ;;  %v2136_v28 = vmax.f32 %v2104_v26, 0.0 }
 0x247   : > { %v2139_v5 = vmax.f32 %v2107_v10, 0.0  ;;  %v2105_v53 = vadd.f32 %v4211_v32, %v2034_v22 }
 0x249   : > { %v2137_v29 = vmax.f32 %v2105_v53, 0.0  ;;  %v2159_v33 = vpack.c.bf16 %v2139_v5, %v2138_v49 }
 0x24b   : > { %v2158_v35 = vpack.c.bf16 %v2137_v29, %v2136_v28  ;;  %3167 = vst [vmem:[%s4221_s16 + $0x58] sm:$0xff] %v2159_v33  }
 0x24d   : > { %3166 = vst [vmem:[%s4221_s16 + $0x50] sm:$0xff] %v2158_v35   ;;  %3558 = vmatprep.mubr.bf16.mxu0 %v2158_v35 }
 0x24e   : > { %v3482_v36 = vpop.f32.mrf.mxu0  ;;  %3559 = vmatmul.mubr.bf16.gmra.mxu0 %v2159_v33 }
 0x24f   : > { %v2055_v7 = vadd.f32 %v3516_v9, %v3482_v36 }
 0x250   : > { %v1751_v1 = vpop.f32.mrf.mxu0 }
 0x251   : > { %v2047_v37 = vadd.f32 %v2046_v30, %v1751_v1  ;;  %v2110_v40 = vadd.f32 %v4211_v32, %v2055_v7 }
 0x252   : > { %v3483_v21 = vpop.f32.mrf.mxu0 }
 0x253   : > { %v2058_v41 = vadd.f32 %v3517_v34, %v3483_v21  ;;  %v2108_v14 = vadd.f32 %v4211_v32, %v2047_v37  ;;  %v2142_v44 = vmax.f32 %v2110_v40, 0.0 }
 0x254   : > { %v1754_v42 = vpop.f32.mrf.mxu0 }
 0x255   : > { %v2111_v43 = vadd.f32 %v4211_v32, %v2058_v41  ;;  %v2050_v52 = vadd.f32 %v2049_v58, %v1754_v42  ;;  %v2140_v0 = vmax.f32 %v2108_v14, 0.0 }
 0x257   : > { %v2143_v46 = vmax.f32 %v2111_v43, 0.0  ;;  %v2109_v47 = vadd.f32 %v4211_v32, %v2050_v52 }
 0x259   : > { %v2141_v45 = vmax.f32 %v2109_v47, 0.0  ;;  %v2161_v12 = vpack.c.bf16 %v2143_v46, %v2142_v44 }
 0x25b   : > { %v2160_v50 = vpack.c.bf16 %v2141_v45, %v2140_v0  ;;  %3169 = vst [vmem:[%s4221_s16 + $0x68] sm:$0xff] %v2161_v12  }
 0x25d   : > { %3168 = vst [vmem:[%s4221_s16 + $0x60] sm:$0xff] %v2160_v50   ;;  %3562 = vmatprep.mubr.bf16.mxu0 %v2160_v50 }
 0x25e   : > { %v3486_v55 = vpop.f32.mrf.mxu0  ;;  %3563 = vmatmul.mubr.bf16.gmra.mxu0 %v2161_v12 }
 0x25f   : > { %v2071_v56 = vadd.f32 %v3520_v39, %v3486_v55 }
 0x260   : > { %v1767_v60 = vpop.f32.mrf.mxu0 }
 0x261   : > { %v2063_v8 = vadd.f32 %v2062_v54, %v1767_v60  ;;  %v2114_v63 = vadd.f32 %v4211_v32, %v2071_v56 }
 0x262   : > { %v3487_v6 = vpop.f32.mrf.mxu0 }
 0x263   : > { %v2074_v17 = vadd.f32 %v3521_v57, %v3487_v6  ;;  %v2112_v2 = vadd.f32 %v4211_v32, %v2063_v8  ;;  %v2146_v51 = vmax.f32 %v2114_v63, 0.0 }
 0x264   : > { %v1770_v62 = vpop.f32.mrf.mxu0 }
 0x265   : > { %v2115_v3 = vadd.f32 %v4211_v32, %v2074_v17  ;;  %v2066_v19 = vadd.f32 %v2065_v61, %v1770_v62  ;;  %v2144_v4 = vmax.f32 %v2112_v2, 0.0 }
 0x267   : > { %v2147_v11 = vmax.f32 %v2115_v3, 0.0  ;;  %v2113_v59 = vadd.f32 %v4211_v32, %v2066_v19 }
 0x269   : > { %v2145_v31 = vmax.f32 %v2113_v59, 0.0  ;;  %v2163_v38 = vpack.c.bf16 %v2147_v11, %v2146_v51 }
 0x26b   : > { %v2162_v13 = vpack.c.bf16 %v2145_v31, %v2144_v4  ;;  %3171 = vst [vmem:[%s4221_s16 + $0x78] sm:$0xff] %v2163_v38  }
 0x26d   : > { %3170 = vst [vmem:[%s4221_s16 + $0x70] sm:$0xff] %v2162_v13   ;;  %3566 = vmatprep.mubr.bf16.mxu0 %v2162_v13 }
 0x26e   : > { %3567 = vmatmul.mubr.bf16.gmra.mxu0 %v2163_v38 }
 0x2be   : > { %v3540_v15 = vpop.f32.mrf.mxu0 }
 0x2bf   : > { %v3047_v32 = vpack.c.bf16 %v3540_v15, %v3540_v15 }
 0x2c0   : > { %v2406_v23 = vpop.f32.mrf.mxu0 }
 0x2c1   : > { %2664 = vst.msk [vmem:[%s4271_s15 + $0x8] sm:$0xf] %vm2661_vm1, %v3047_v32  ;;  %v3045_v18 = vpack.c.bf16 %v2406_v23, %v2406_v23 }
 0x2c2   : > { %v3541_v16 = vpop.f32.mrf.mxu0 }
 0x2c3   : > { %2662 = vst.msk [vmem:[%s4271_s15] sm:$0xf] %vm2661_vm1, %v3045_v18  ;;  %v3048_v48 = vpack.c.bf16 %v3541_v16, %v3541_v16 }
 0x2c4   : > { %v2409_v20 = vpop.f32.mrf.mxu0 }
 0x2c5   : > { %2665 = vst.msk [vmem:[%s4271_s15 + $0xc] sm:$0xf] %vm2661_vm1, %v3048_v48  ;;  %v3046_v27 = vpack.c.bf16 %v2409_v20, %v2409_v20 }
 0x2c7   : > { %2663 = vst.msk [vmem:[%s4271_s15 + $0x4] sm:$0xf] %vm2661_vm1, %v3046_v27 }
 0x2ce   : > { %v3544_v24 = vpop.f32.mrf.mxu0 }
 0x2cf   : > { %v3051_v25 = vpack.c.bf16 %v3544_v24, %v3544_v24 }
 0x2d0   : > { %v2422_v26 = vpop.f32.mrf.mxu0 }
 0x2d1   : > { %2668 = vst.msk [vmem:[%s4271_s15 + $0x18] sm:$0xf] %vm2661_vm1, %v3051_v25  ;;  %v3049_v10 = vpack.c.bf16 %v2422_v26, %v2422_v26 }
 0x2d2   : > { %v3545_v22 = vpop.f32.mrf.mxu0 }
 0x2d3   : > { %2666 = vst.msk [vmem:[%s4271_s15 + $0x10] sm:$0xf] %vm2661_vm1, %v3049_v10  ;;  %v3052_v9 = vpack.c.bf16 %v3545_v22, %v3545_v22 }
 0x2d4   : > { %v2425_v49 = vpop.f32.mrf.mxu0 }
 0x2d5   : > { %2669 = vst.msk [vmem:[%s4271_s15 + $0x1c] sm:$0xf] %vm2661_vm1, %v3052_v9  ;;  %v3050_v5 = vpack.c.bf16 %v2425_v49, %v2425_v49 }
 0x2d7   : > { %2667 = vst.msk [vmem:[%s4271_s15 + $0x14] sm:$0xf] %vm2661_vm1, %v3050_v5 }
 0x2de   : > { %v3548_v53 = vpop.f32.mrf.mxu0 }
 0x2df   : > { %v3055_v28 = vpack.c.bf16 %v3548_v53, %v3548_v53 }
 0x2e0   : > { %v2438_v29 = vpop.f32.mrf.mxu0 }
 0x2e1   : > { %2672 = vst.msk [vmem:[%s4271_s15 + $0x28] sm:$0xf] %vm2661_vm1, %v3055_v28  ;;  %v3053_v33 = vpack.c.bf16 %v2438_v29, %v2438_v29 }
 0x2e2   : > { %v3549_v30 = vpop.f32.mrf.mxu0 }
 0x2e3   : > { %2670 = vst.msk [vmem:[%s4271_s15 + $0x20] sm:$0xf] %vm2661_vm1, %v3053_v33  ;;  %v3056_v35 = vpack.c.bf16 %v3549_v30, %v3549_v30 }
 0x2e4   : > { %v2441_v36 = vpop.f32.mrf.mxu0 }
 0x2e5   : > { %2673 = vst.msk [vmem:[%s4271_s15 + $0x2c] sm:$0xf] %vm2661_vm1, %v3056_v35  ;;  %v3054_v34 = vpack.c.bf16 %v2441_v36, %v2441_v36 }
 0x2e7   : > { %2671 = vst.msk [vmem:[%s4271_s15 + $0x24] sm:$0xf] %vm2661_vm1, %v3054_v34 }
 0x2ee   : > { %v3552_v7 = vpop.f32.mrf.mxu0 }
 0x2ef   : > { %v3059_v1 = vpack.c.bf16 %v3552_v7, %v3552_v7 }
 0x2f0   : > { %v2454_v37 = vpop.f32.mrf.mxu0 }
 0x2f1   : > { %2676 = vst.msk [vmem:[%s4271_s15 + $0x38] sm:$0xf] %vm2661_vm1, %v3059_v1  ;;  %v3057_v21 = vpack.c.bf16 %v2454_v37, %v2454_v37 }
 0x2f2   : > { %v3553_v58 = vpop.f32.mrf.mxu0 }
 0x2f3   : > { %2674 = vst.msk [vmem:[%s4271_s15 + $0x30] sm:$0xf] %vm2661_vm1, %v3057_v21  ;;  %v3060_v40 = vpack.c.bf16 %v3553_v58, %v3553_v58 }
 0x2f4   : > { %v2457_v41 = vpop.f32.mrf.mxu0 }
 0x2f5   : > { %2677 = vst.msk [vmem:[%s4271_s15 + $0x3c] sm:$0xf] %vm2661_vm1, %v3060_v40  ;;  %v3058_v42 = vpack.c.bf16 %v2457_v41, %v2457_v41 }
 0x2f7   : > { %2675 = vst.msk [vmem:[%s4271_s15 + $0x34] sm:$0xf] %vm2661_vm1, %v3058_v42 }
 0x2fe   : > { %v3556_v14 = vpop.f32.mrf.mxu0 }
 0x2ff   : > { %v3063_v43 = vpack.c.bf16 %v3556_v14, %v3556_v14 }
 0x300   : > { %v2470_v52 = vpop.f32.mrf.mxu0 }
 0x301   : > { %2680 = vst.msk [vmem:[%s4271_s15 + $0x48] sm:$0xf] %vm2661_vm1, %v3063_v43  ;;  %v3061_v44 = vpack.c.bf16 %v2470_v52, %v2470_v52 }
 0x302   : > { %v3557_v46 = vpop.f32.mrf.mxu0 }
 0x303   : > { %2678 = vst.msk [vmem:[%s4271_s15 + $0x40] sm:$0xf] %vm2661_vm1, %v3061_v44  ;;  %v3064_v47 = vpack.c.bf16 %v3557_v46, %v3557_v46 }
 0x304   : > { %v2473_v39 = vpop.f32.mrf.mxu0 }
 0x305   : > { %2681 = vst.msk [vmem:[%s4271_s15 + $0x4c] sm:$0xf] %vm2661_vm1, %v3064_v47  ;;  %v3062_v0 = vpack.c.bf16 %v2473_v39, %v2473_v39 }
 0x307   : > { %2679 = vst.msk [vmem:[%s4271_s15 + $0x44] sm:$0xf] %vm2661_vm1, %v3062_v0 }
 0x30e   : > { %v3560_v45 = vpop.f32.mrf.mxu0 }
 0x30f   : > { %v3067_v12 = vpack.c.bf16 %v3560_v45, %v3560_v45 }
 0x310   : > { %v2486_v50 = vpop.f32.mrf.mxu0 }
 0x311   : > { %2684 = vst.msk [vmem:[%s4271_s15 + $0x58] sm:$0xf] %vm2661_vm1, %v3067_v12  ;;  %v3065_v54 = vpack.c.bf16 %v2486_v50, %v2486_v50 }
 0x312   : > { %v3561_v55 = vpop.f32.mrf.mxu0 }
 0x313   : > { %2682 = vst.msk [vmem:[%s4271_s15 + $0x50] sm:$0xf] %vm2661_vm1, %v3065_v54  ;;  %v3068_v56 = vpack.c.bf16 %v3561_v55, %v3561_v55 }
 0x314   : > { %v2489_v57 = vpop.f32.mrf.mxu0 }
 0x315   : > { %2685 = vst.msk [vmem:[%s4271_s15 + $0x5c] sm:$0xf] %vm2661_vm1, %v3068_v56  ;;  %v3066_v60 = vpack.c.bf16 %v2489_v57, %v2489_v57 }
 0x317   : > { %2683 = vst.msk [vmem:[%s4271_s15 + $0x54] sm:$0xf] %vm2661_vm1, %v3066_v60 }
 0x31e   : > { %v3564_v8 = vpop.f32.mrf.mxu0 }
 0x31f   : > { %v3071_v6 = vpack.c.bf16 %v3564_v8, %v3564_v8 }
 0x320   : > { %v2502_v63 = vpop.f32.mrf.mxu0 }
 0x321   : > { %2688 = vst.msk [vmem:[%s4271_s15 + $0x68] sm:$0xf] %vm2661_vm1, %v3071_v6  ;;  %v3069_v17 = vpack.c.bf16 %v2502_v63, %v2502_v63 }
 0x322   : > { %v3565_v61 = vpop.f32.mrf.mxu0 }
 0x323   : > { %2686 = vst.msk [vmem:[%s4271_s15 + $0x60] sm:$0xf] %vm2661_vm1, %v3069_v17  ;;  %v3072_v62 = vpack.c.bf16 %v3565_v61, %v3565_v61 }
 0x324   : > { %v2505_v2 = vpop.f32.mrf.mxu0 }
 0x325   : > { %2689 = vst.msk [vmem:[%s4271_s15 + $0x6c] sm:$0xf] %vm2661_vm1, %v3072_v62  ;;  %v3070_v3 = vpack.c.bf16 %v2505_v2, %v2505_v2 }
 0x327   : > { %2687 = vst.msk [vmem:[%s4271_s15 + $0x64] sm:$0xf] %vm2661_vm1, %v3070_v3 }
 0x32e   : > { %v3568_v19 = vpop.f32.mrf.mxu0 }
 0x32f   : > { %v3075_v51 = vpack.c.bf16 %v3568_v19, %v3568_v19 }
 0x330   : > { %v2518_v11 = vpop.f32.mrf.mxu0 }
 0x331   : > { %2692 = vst.msk [vmem:[%s4271_s15 + $0x78] sm:$0xf] %vm2661_vm1, %v3075_v51  ;;  %v3073_v59 = vpack.c.bf16 %v2518_v11, %v2518_v11 }
 0x332   : > { %v3569_v4 = vpop.f32.mrf.mxu0 }
 0x333   : > { %2690 = vst.msk [vmem:[%s4271_s15 + $0x70] sm:$0xf] %vm2661_vm1, %v3073_v59  ;;  %v3076_v31 = vpack.c.bf16 %v3569_v4, %v3569_v4 }
 0x334   : > { %v2521_v38 = vpop.f32.mrf.mxu0 }
 0x335   : > { %2693 = vst.msk [vmem:[%s4271_s15 + $0x7c] sm:$0xf] %vm2661_vm1, %v3076_v31  ;;  %v3074_v13 = vpack.c.bf16 %v2521_v38, %v2521_v38 }
 0x337   : > { %2691 = vst.msk [vmem:[%s4271_s15 + $0x74] sm:$0xf] %vm2661_vm1, %v3074_v13 }
 0x338 PF: > { %s20_s11 = sadd.s32 1, %s3694_s11   ;;  %s4356_s30 = smov %s3690_s10 }
 0x339   : > { %p17_p6 = scmp.ge.s32.totalorder %s20_s11, 4   ;;  %s4357_s10 = smov %s4359_s12 }
 0x33b   :  { %19 = sbr.rel (!%p17_p6) target bundleno = 2 (0x2), region = 111 }

</bundles_post_ra>
